<compile_context>
chip_gen: v7x
topology: tpu7x:2x2x1
jax: 0.10.0
libtpu: 0.0.40
codegen_flags: <defaults>
</compile_context>

<pallas_src>
import math
from functools import partial

import jax
import jax.numpy as jnp
from jax import lax
from jax.experimental import pallas as pl
from jax.experimental.pallas import tpu as pltpu


# ----------------------------- kernel helpers ------------------------------

def _layernorm(x, w, b, eps=1e-5):
    mean = jnp.mean(x, axis=-1, keepdims=True)
    var = jnp.mean(jnp.square(x - mean), axis=-1, keepdims=True)
    return (x - mean) * lax.rsqrt(var + eps) * w + b


def _gelu_tanh(x):
    # tanh-approximate GELU (runs on the EUP; |diff| vs exact erf GELU < ~1e-3).
    c = math.sqrt(2.0 / math.pi)
    return 0.5 * x * (1.0 + jnp.tanh(c * (x + 0.044715 * (x * x * x))))


# ------------------------------- the kernel --------------------------------

def _fused_layer_kernel(num_heads, head_dim,
                        xq_ref, xkv_ref, mask_ref,
                        wq, bq, wk, bk, wv, bv, wo3, bo,
                        g1, be1, wu, bu, wd, bd, g2, be2,
                        out_ref,
                        qh_sc, kh_sc, vh_sc):
    xq = xq_ref[0]                       # (TQ, H) f32  query rows / residual
    xkv = xkv_ref[0]                     # (S,  H) f32  full sequence for K/V
    mask = mask_ref[0]                   # (1,  S) additive key mask

    xq_bf = xq.astype(jnp.bfloat16)
    xkv_bf = xkv.astype(jnp.bfloat16)

    # LoRA-folded projections: bf16 MXU inputs, f32 accumulation, f32 bias add.
    q = jnp.dot(xq_bf, wq[...], preferred_element_type=jnp.float32) + bq[...]
    k = jnp.dot(xkv_bf, wk[...], preferred_element_type=jnp.float32) + bk[...]
    v = jnp.dot(xkv_bf, wv[...], preferred_element_type=jnp.float32) + bv[...]

    # Split heads into (nh, *, hd) scratch via leading-dim stores (one slice
    # copy per head; no lane concatenation anywhere downstream).
    for h in range(num_heads):
        sl = slice(h * head_dim, (h + 1) * head_dim)
        qh_sc[h] = q[:, sl].astype(jnp.bfloat16)
        kh_sc[h] = k[:, sl].astype(jnp.bfloat16)
        vh_sc[h] = v[:, sl].astype(jnp.bfloat16)
    qh = qh_sc[...]                      # (nh, TQ, hd) bf16
    kh = kh_sc[...]                      # (nh, S,  hd) bf16
    vh = vh_sc[...]                      # (nh, S,  hd) bf16

    # Batched attention over heads.
    s = jnp.einsum("hqd,hkd->hqk", qh, kh,
                   preferred_element_type=jnp.float32)
    s = s * (1.0 / math.sqrt(head_dim))
    s = s + mask[None, :, :]             # (1,1,S) broadcast over heads/queries
    s = s - jnp.max(s, axis=-1, keepdims=True)
    p = jnp.exp(s)
    attn = p * pl.reciprocal(jnp.sum(p, axis=-1, keepdims=True), approx=True)

    o = jnp.einsum("hqk,hkd->hqd", attn.astype(jnp.bfloat16), vh,
                   preferred_element_type=jnp.float32)   # (nh, TQ, hd) f32

    # Output projection: head re-concat folded into per-head contraction chunks
    # (wo3 is the folded W_o reshaped to (nh, hd, H) in the wrapper).
    o_final = xq + bo[...]
    for h in range(num_heads):
        o_final = o_final + jnp.dot(o[h].astype(jnp.bfloat16), wo3[h],
                                    preferred_element_type=jnp.float32)
    x_medium = _layernorm(o_final, g1[...], be1[...])

    # FFN.
    up = jnp.dot(x_medium.astype(jnp.bfloat16), wu[...],
                 preferred_element_type=jnp.float32) + bu[...]
    fn = _gelu_tanh(up)
    down = jnp.dot(fn.astype(jnp.bfloat16), wd[...],
                   preferred_element_type=jnp.float32) + bd[...] + x_medium
    out_ref[0] = _layernorm(down, g2[...], be2[...]).astype(out_ref.dtype)


# ------------------------------- wrapper ------------------------------------

def _fold(w, a, b):
    # x @ W + (x @ A) @ B  ==  x @ (W + A @ B); fold once, store bf16.
    wf = w.astype(jnp.float32) + a.astype(jnp.float32) @ b.astype(jnp.float32)
    return wf.astype(jnp.bfloat16)


@partial(jax.jit, static_argnames=("num_heads", "head_dim"))
def fused_roberta_layer(x, attention_mask, params, num_heads, head_dim):
    (wq, bq, aq, Bq, wk, bk, ak, Bk, wv, bv, av, Bv,
     wo, bo, ao, Bo, g1, be1, wu, bu, au, Bu, wd, bd, ad, Bd, g2, be2) = params

    B, S, H = x.shape
    assert H == num_heads * head_dim

    # Fold LoRA into base weights once, outside the kernel (XLA, not Pallas).
    wq_e = _fold(wq, aq, Bq)
    wk_e = _fold(wk, ak, Bk)
    wv_e = _fold(wv, av, Bv)
    wo_e = _fold(wo, ao, Bo).reshape(num_heads, head_dim, H)
    wu_e = _fold(wu, au, Bu)
    wd_e = _fold(wd, ad, Bd)

    folded = (wq_e, bq, wk_e, bk, wv_e, bv, wo_e, bo,
              g1, be1, wu_e, bu, wd_e, bd, g2, be2)

    TQ = min(S, 256)
    assert S % TQ == 0
    num_qt = S // TQ

    kernel = partial(_fused_layer_kernel, num_heads, head_dim)

    def _const_spec(arr):
        nd = arr.ndim
        return pl.BlockSpec(arr.shape, lambda b, qi, _nd=nd: (0,) * _nd)

    in_specs = [
        pl.BlockSpec((1, TQ, H), lambda b, qi: (b, qi, 0)),   # query rows of x
        pl.BlockSpec((1, S, H), lambda b, qi: (b, 0, 0)),     # full-seq x (K/V)
        pl.BlockSpec((1, 1, S), lambda b, qi: (b, 0, 0)),     # additive mask
    ] + [_const_spec(p) for p in folded]                      # resident weights

    return pl.pallas_call(
        kernel,
        out_shape=jax.ShapeDtypeStruct((B, S, H), x.dtype),
        grid=(B, num_qt),
        in_specs=in_specs,
        out_specs=pl.BlockSpec((1, TQ, H), lambda b, qi: (b, qi, 0)),
        scratch_shapes=[
            pltpu.VMEM((num_heads, TQ, head_dim), jnp.bfloat16),
            pltpu.VMEM((num_heads, S, head_dim), jnp.bfloat16),
            pltpu.VMEM((num_heads, S, head_dim), jnp.bfloat16),
        ],
        compiler_params=pltpu.CompilerParams(
            dimension_semantics=("parallel", "parallel"),
            vmem_limit_bytes=48 * 1024 * 1024,
        ),
    )(x, x, attention_mask, *folded)


# ---------------------------- pure-JAX reference ----------------------------

def reference(x, mask, params, num_heads, head_dim):
    (wq, bq, aq, Bq, wk, bk, ak, Bk, wv, bv, av, Bv,
     wo, bo, ao, Bo, g1, be1, wu, bu, au, Bu, wd, bd, ad, Bd, g2, be2) = params

    def lora(xx, w, b, a, bm):
        return xx @ w + b + (xx @ a) @ bm

    def ln(xx, g, be):
        m = xx.mean(-1, keepdims=True)
        v_ = ((xx - m) ** 2).mean(-1, keepdims=True)
        return (xx - m) / jnp.sqrt(v_ + 1e-5) * g + be

    B, S, H = x.shape
    q = lora(x, wq, bq, aq, Bq)
    k = lora(x, wk, bk, ak, Bk)
    v = lora(x, wv, bv, av, Bv)

    def to_heads(t):
        return t.reshape(B, S, num_heads, head_dim).transpose(0, 2, 1, 3)

    qh, kh, vh = to_heads(q), to_heads(k), to_heads(v)
    s = jnp.einsum("bhqd,bhkd->bhqk", qh, kh) / math.sqrt(head_dim)
    s = s + mask[:, None, :, :]
    a = jax.nn.softmax(s, axis=-1)
    o = jnp.einsum("bhqk,bhkd->bhqd", a, vh).transpose(0, 2, 1, 3).reshape(B, S, H)

    o_final = lora(o, wo, bo, ao, Bo) + x
    xm = ln(o_final, g1, be1)
    up = lora(xm, wu, bu, au, Bu)
    fn = 0.5 * up * (1.0 + jax.scipy.special.erf(up / math.sqrt(2.0)))
    down = lora(fn, wd, bd, ad, Bd) + xm
    return ln(down, g2, be2)


# --------------------------------- main --------------------------------------

if __name__ == "__main__":
    B, S = 2, 128
    num_heads, head_dim = 2, 64          # H = 128 (lane-dense output stores)
    H = num_heads * head_dim
    I = 4 * H                            # FFN intermediate size
    R = 8                                # LoRA rank

    key = jax.random.PRNGKey(0)
    ks = iter(jax.random.split(key, 64))

    def rnd(shape, scale=0.05):
        return jax.random.normal(next(ks), shape, jnp.float32) * scale

    # q / k / v / o projections + LoRA
    wq, bq, aq, Bq = rnd((H, H)), rnd((1, H)), rnd((H, R)), rnd((R, H))
    wk, bk, ak, Bk = rnd((H, H)), rnd((1, H)), rnd((H, R)), rnd((R, H))
    wv, bv, av, Bv = rnd((H, H)), rnd((1, H)), rnd((H, R)), rnd((R, H))
    wo, bo, ao, Bo = rnd((H, H)), rnd((1, H)), rnd((H, R)), rnd((R, H))
    # layernorm 1
    g1 = 1.0 + rnd((1, H), 0.02)
    be1 = rnd((1, H), 0.02)
    # up / down projections + LoRA
    wu, bu, au, Bu = rnd((H, I)), rnd((1, I)), rnd((H, R)), rnd((R, I))
    wd, bd, ad, Bd = rnd((I, H)), rnd((1, H)), rnd((I, R)), rnd((R, H))
    # layernorm 2
    g2 = 1.0 + rnd((1, H), 0.02)
    be2 = rnd((1, H), 0.02)

    params = (wq, bq, aq, Bq, wk, bk, ak, Bk, wv, bv, av, Bv,
              wo, bo, ao, Bo, g1, be1, wu, bu, au, Bu, wd, bd, ad, Bd, g2, be2)

    x = jax.random.normal(next(ks), (B, S, H), jnp.float32)

    # additive attention mask: mask out the last 16 key positions of batch 1
    mask = jnp.zeros((B, 1, S), jnp.float32)
    mask = mask.at[1, 0, S - 16:].set(-10000.0)

    out = fused_roberta_layer(x, mask, params, num_heads=num_heads,
                              head_dim=head_dim)
    out = jax.block_until_ready(out)

    ref = reference(x, mask, params, num_heads, head_dim)
    assert out.shape == (B, S, H)
    # bf16 MXU inputs + tanh GELU + approx reciprocal shift numerics slightly
    # vs the pure-f32 exact-erf reference.
    assert jnp.allclose(out, ref, rtol=2e-2, atol=2e-2), \
        f"max abs diff {jnp.max(jnp.abs(out - ref))}"

    print("KERNEL_OK")
</pallas_src>

<mosaic_0001>
module attributes {stable_mosaic.version = 11 : i64} {
  func.func @_fused_layer_kernel(%arg0: i32, %arg1: i32, %arg2: memref<1x128x128xf32, #tpu.memory_space<vmem>>, %arg3: memref<1x128x128xf32, #tpu.memory_space<vmem>>, %arg4: memref<1x1x128xf32, #tpu.memory_space<vmem>>, %arg5: memref<128x128xbf16, #tpu.memory_space<vmem>>, %arg6: memref<1x128xf32, #tpu.memory_space<vmem>>, %arg7: memref<128x128xbf16, #tpu.memory_space<vmem>>, %arg8: memref<1x128xf32, #tpu.memory_space<vmem>>, %arg9: memref<128x128xbf16, #tpu.memory_space<vmem>>, %arg10: memref<1x128xf32, #tpu.memory_space<vmem>>, %arg11: memref<2x64x128xbf16, #tpu.memory_space<vmem>>, %arg12: memref<1x128xf32, #tpu.memory_space<vmem>>, %arg13: memref<1x128xf32, #tpu.memory_space<vmem>>, %arg14: memref<1x128xf32, #tpu.memory_space<vmem>>, %arg15: memref<128x512xbf16, #tpu.memory_space<vmem>>, %arg16: memref<1x512xf32, #tpu.memory_space<vmem>>, %arg17: memref<512x128xbf16, #tpu.memory_space<vmem>>, %arg18: memref<1x128xf32, #tpu.memory_space<vmem>>, %arg19: memref<1x128xf32, #tpu.memory_space<vmem>>, %arg20: memref<1x128xf32, #tpu.memory_space<vmem>>, %arg21: memref<1x128x128xf32, #tpu.memory_space<vmem>>, %arg22: memref<2x128x64xbf16, #tpu.memory_space<vmem>>, %arg23: memref<2x128x64xbf16, #tpu.memory_space<vmem>>, %arg24: memref<2x128x64xbf16, #tpu.memory_space<vmem>>) attributes {dimension_semantics = [#tpu.dimension_semantics<parallel>, #tpu.dimension_semantics<parallel>], iteration_bounds = array<i64: 2, 1>, scalar_prefetch = 0 : i64, scratch_operands = 3 : i64, tpu.core_type = #tpu.core_type<tc>, window_params = [{transform_indices = @transform_0, window_bounds = array<i64: 1, 128, 128>}, {transform_indices = @transform_1, window_bounds = array<i64: 1, 128, 128>}, {transform_indices = @transform_2, window_bounds = array<i64: 1, 1, 128>}, {pipeline_mode = #tpu.pipeline_mode<synchronous>, transform_indices = @transform_3, window_bounds = array<i64: 128, 128>}, {pipeline_mode = #tpu.pipeline_mode<synchronous>, transform_indices = @transform_4, window_bounds = array<i64: 1, 128>}, {pipeline_mode = #tpu.pipeline_mode<synchronous>, transform_indices = @transform_5, window_bounds = array<i64: 128, 128>}, {pipeline_mode = #tpu.pipeline_mode<synchronous>, transform_indices = @transform_6, window_bounds = array<i64: 1, 128>}, {pipeline_mode = #tpu.pipeline_mode<synchronous>, transform_indices = @transform_7, window_bounds = array<i64: 128, 128>}, {pipeline_mode = #tpu.pipeline_mode<synchronous>, transform_indices = @transform_8, window_bounds = array<i64: 1, 128>}, {pipeline_mode = #tpu.pipeline_mode<synchronous>, transform_indices = @transform_9, window_bounds = array<i64: 2, 64, 128>}, {pipeline_mode = #tpu.pipeline_mode<synchronous>, transform_indices = @transform_10, window_bounds = array<i64: 1, 128>}, {pipeline_mode = #tpu.pipeline_mode<synchronous>, transform_indices = @transform_11, window_bounds = array<i64: 1, 128>}, {pipeline_mode = #tpu.pipeline_mode<synchronous>, transform_indices = @transform_12, window_bounds = array<i64: 1, 128>}, {pipeline_mode = #tpu.pipeline_mode<synchronous>, transform_indices = @transform_13, window_bounds = array<i64: 128, 512>}, {pipeline_mode = #tpu.pipeline_mode<synchronous>, transform_indices = @transform_14, window_bounds = array<i64: 1, 512>}, {pipeline_mode = #tpu.pipeline_mode<synchronous>, transform_indices = @transform_15, window_bounds = array<i64: 512, 128>}, {pipeline_mode = #tpu.pipeline_mode<synchronous>, transform_indices = @transform_16, window_bounds = array<i64: 1, 128>}, {pipeline_mode = #tpu.pipeline_mode<synchronous>, transform_indices = @transform_17, window_bounds = array<i64: 1, 128>}, {pipeline_mode = #tpu.pipeline_mode<synchronous>, transform_indices = @transform_18, window_bounds = array<i64: 1, 128>}, {transform_indices = @transform_19, window_bounds = array<i64: 1, 128, 128>}]} {
    %c0 = arith.constant 0 : index
    %c0_0 = arith.constant 0 : index
    %c0_1 = arith.constant 0 : index
    %0 = vector.load %arg2[%c0, %c0_0, %c0_1] : memref<1x128x128xf32, #tpu.memory_space<vmem>>, vector<1x128x128xf32>
    %1 = vector.shape_cast %0 : vector<1x128x128xf32> to vector<128x128xf32>
    %c0_2 = arith.constant 0 : index
    %c0_3 = arith.constant 0 : index
    %c0_4 = arith.constant 0 : index
    %2 = vector.load %arg3[%c0_2, %c0_3, %c0_4] : memref<1x128x128xf32, #tpu.memory_space<vmem>>, vector<1x128x128xf32>
    %3 = vector.shape_cast %2 : vector<1x128x128xf32> to vector<128x128xf32>
    %c0_5 = arith.constant 0 : index
    %c0_6 = arith.constant 0 : index
    %c0_7 = arith.constant 0 : index
    %4 = vector.load %arg4[%c0_5, %c0_6, %c0_7] : memref<1x1x128xf32, #tpu.memory_space<vmem>>, vector<1x1x128xf32>
    %5 = vector.shape_cast %4 : vector<1x1x128xf32> to vector<1x128xf32>
    %6 = arith.truncf %1 : vector<128x128xf32> to vector<128x128xbf16>
    %7 = arith.truncf %3 : vector<128x128xf32> to vector<128x128xbf16>
    %c0_8 = arith.constant 0 : index
    %c0_9 = arith.constant 0 : index
    %8 = vector.load %arg5[%c0_8, %c0_9] : memref<128x128xbf16, #tpu.memory_space<vmem>>, vector<128x128xbf16>
    %cst = arith.constant dense<0.000000e+00> : vector<128x128xf32>
    %9 = tpu.matmul %6, %8, %cst {dimension_numbers = #tpu.dot_dimension_numbers<[1], [0], [0], [1], [0, 0, 1, 1], [], []>} : vector<128x128xbf16>, vector<128x128xbf16>, vector<128x128xf32> -> vector<128x128xf32>
    %c0_10 = arith.constant 0 : index
    %c0_11 = arith.constant 0 : index
    %10 = vector.load %arg6[%c0_10, %c0_11] : memref<1x128xf32, #tpu.memory_space<vmem>>, vector<1x128xf32>
    %11 = vector.broadcast %10 : vector<1x128xf32> to vector<128x128xf32>
    %12 = arith.addf %9, %11 : vector<128x128xf32>
    %c0_12 = arith.constant 0 : index
    %c0_13 = arith.constant 0 : index
    %13 = vector.load %arg7[%c0_12, %c0_13] : memref<128x128xbf16, #tpu.memory_space<vmem>>, vector<128x128xbf16>
    %cst_14 = arith.constant dense<0.000000e+00> : vector<128x128xf32>
    %14 = tpu.matmul %7, %13, %cst_14 {dimension_numbers = #tpu.dot_dimension_numbers<[1], [0], [0], [1], [0, 0, 1, 1], [], []>} : vector<128x128xbf16>, vector<128x128xbf16>, vector<128x128xf32> -> vector<128x128xf32>
    %c0_15 = arith.constant 0 : index
    %c0_16 = arith.constant 0 : index
    %15 = vector.load %arg8[%c0_15, %c0_16] : memref<1x128xf32, #tpu.memory_space<vmem>>, vector<1x128xf32>
    %16 = vector.broadcast %15 : vector<1x128xf32> to vector<128x128xf32>
    %17 = arith.addf %14, %16 : vector<128x128xf32>
    %c0_17 = arith.constant 0 : index
    %c0_18 = arith.constant 0 : index
    %18 = vector.load %arg9[%c0_17, %c0_18] : memref<128x128xbf16, #tpu.memory_space<vmem>>, vector<128x128xbf16>
    %cst_19 = arith.constant dense<0.000000e+00> : vector<128x128xf32>
    %19 = tpu.matmul %7, %18, %cst_19 {dimension_numbers = #tpu.dot_dimension_numbers<[1], [0], [0], [1], [0, 0, 1, 1], [], []>} : vector<128x128xbf16>, vector<128x128xbf16>, vector<128x128xf32> -> vector<128x128xf32>
    %c0_20 = arith.constant 0 : index
    %c0_21 = arith.constant 0 : index
    %20 = vector.load %arg10[%c0_20, %c0_21] : memref<1x128xf32, #tpu.memory_space<vmem>>, vector<1x128xf32>
    %21 = vector.broadcast %20 : vector<1x128xf32> to vector<128x128xf32>
    %22 = arith.addf %19, %21 : vector<128x128xf32>
    %23 = vector.extract_strided_slice %12 {offsets = [0, 0], sizes = [128, 64], strides = [1, 1]} : vector<128x128xf32> to vector<128x64xf32>
    %24 = arith.truncf %23 : vector<128x64xf32> to vector<128x64xbf16>
    %c0_22 = arith.constant 0 : index
    %c0_23 = arith.constant 0 : index
    %c0_24 = arith.constant 0 : index
    %25 = vector.load %arg22[%c0_22, %c0_23, %c0_24] : memref<2x128x64xbf16, #tpu.memory_space<vmem>>, vector<1x128x64xbf16>
    %26 = vector.shape_cast %25 : vector<1x128x64xbf16> to vector<128x64xbf16>
    %27 = vector.shape_cast %24 : vector<128x64xbf16> to vector<1x128x64xbf16>
    tpu.vector_store %arg22[%c0_22, %c0_23, %c0_24], %27 {strides = array<i32>} : memref<2x128x64xbf16, #tpu.memory_space<vmem>>, vector<1x128x64xbf16>,
    %28 = vector.extract_strided_slice %17 {offsets = [0, 0], sizes = [128, 64], strides = [1, 1]} : vector<128x128xf32> to vector<128x64xf32>
    %29 = arith.truncf %28 : vector<128x64xf32> to vector<128x64xbf16>
    %c0_25 = arith.constant 0 : index
    %c0_26 = arith.constant 0 : index
    %c0_27 = arith.constant 0 : index
    %30 = vector.load %arg23[%c0_25, %c0_26, %c0_27] : memref<2x128x64xbf16, #tpu.memory_space<vmem>>, vector<1x128x64xbf16>
    %31 = vector.shape_cast %30 : vector<1x128x64xbf16> to vector<128x64xbf16>
    %32 = vector.shape_cast %29 : vector<128x64xbf16> to vector<1x128x64xbf16>
    tpu.vector_store %arg23[%c0_25, %c0_26, %c0_27], %32 {strides = array<i32>} : memref<2x128x64xbf16, #tpu.memory_space<vmem>>, vector<1x128x64xbf16>,
    %33 = vector.extract_strided_slice %22 {offsets = [0, 0], sizes = [128, 64], strides = [1, 1]} : vector<128x128xf32> to vector<128x64xf32>
    %34 = arith.truncf %33 : vector<128x64xf32> to vector<128x64xbf16>
    %c0_28 = arith.constant 0 : index
    %c0_29 = arith.constant 0 : index
    %c0_30 = arith.constant 0 : index
    %35 = vector.load %arg24[%c0_28, %c0_29, %c0_30] : memref<2x128x64xbf16, #tpu.memory_space<vmem>>, vector<1x128x64xbf16>
    %36 = vector.shape_cast %35 : vector<1x128x64xbf16> to vector<128x64xbf16>
    %37 = vector.shape_cast %34 : vector<128x64xbf16> to vector<1x128x64xbf16>
    tpu.vector_store %arg24[%c0_28, %c0_29, %c0_30], %37 {strides = array<i32>} : memref<2x128x64xbf16, #tpu.memory_space<vmem>>, vector<1x128x64xbf16>,
    %38 = vector.extract_strided_slice %12 {offsets = [0, 64], sizes = [128, 64], strides = [1, 1]} : vector<128x128xf32> to vector<128x64xf32>
    %39 = arith.truncf %38 : vector<128x64xf32> to vector<128x64xbf16>
    %c1 = arith.constant 1 : index
    %c0_31 = arith.constant 0 : index
    %c0_32 = arith.constant 0 : index
    %40 = vector.load %arg22[%c1, %c0_31, %c0_32] : memref<2x128x64xbf16, #tpu.memory_space<vmem>>, vector<1x128x64xbf16>
    %41 = vector.shape_cast %40 : vector<1x128x64xbf16> to vector<128x64xbf16>
    %42 = vector.shape_cast %39 : vector<128x64xbf16> to vector<1x128x64xbf16>
    tpu.vector_store %arg22[%c1, %c0_31, %c0_32], %42 {strides = array<i32>} : memref<2x128x64xbf16, #tpu.memory_space<vmem>>, vector<1x128x64xbf16>,
    %43 = vector.extract_strided_slice %17 {offsets = [0, 64], sizes = [128, 64], strides = [1, 1]} : vector<128x128xf32> to vector<128x64xf32>
    %44 = arith.truncf %43 : vector<128x64xf32> to vector<128x64xbf16>
    %c1_33 = arith.constant 1 : index
    %c0_34 = arith.constant 0 : index
    %c0_35 = arith.constant 0 : index
    %45 = vector.load %arg23[%c1_33, %c0_34, %c0_35] : memref<2x128x64xbf16, #tpu.memory_space<vmem>>, vector<1x128x64xbf16>
    %46 = vector.shape_cast %45 : vector<1x128x64xbf16> to vector<128x64xbf16>
    %47 = vector.shape_cast %44 : vector<128x64xbf16> to vector<1x128x64xbf16>
    tpu.vector_store %arg23[%c1_33, %c0_34, %c0_35], %47 {strides = array<i32>} : memref<2x128x64xbf16, #tpu.memory_space<vmem>>, vector<1x128x64xbf16>,
    %48 = vector.extract_strided_slice %22 {offsets = [0, 64], sizes = [128, 64], strides = [1, 1]} : vector<128x128xf32> to vector<128x64xf32>
    %49 = arith.truncf %48 : vector<128x64xf32> to vector<128x64xbf16>
    %c1_36 = arith.constant 1 : index
    %c0_37 = arith.constant 0 : index
    %c0_38 = arith.constant 0 : index
    %50 = vector.load %arg24[%c1_36, %c0_37, %c0_38] : memref<2x128x64xbf16, #tpu.memory_space<vmem>>, vector<1x128x64xbf16>
    %51 = vector.shape_cast %50 : vector<1x128x64xbf16> to vector<128x64xbf16>
    %52 = vector.shape_cast %49 : vector<128x64xbf16> to vector<1x128x64xbf16>
    tpu.vector_store %arg24[%c1_36, %c0_37, %c0_38], %52 {strides = array<i32>} : memref<2x128x64xbf16, #tpu.memory_space<vmem>>, vector<1x128x64xbf16>,
    %c0_39 = arith.constant 0 : index
    %c0_40 = arith.constant 0 : index
    %c0_41 = arith.constant 0 : index
    %53 = vector.load %arg22[%c0_39, %c0_40, %c0_41] : memref<2x128x64xbf16, #tpu.memory_space<vmem>>, vector<2x128x64xbf16>
    %c0_42 = arith.constant 0 : index
    %c0_43 = arith.constant 0 : index
    %c0_44 = arith.constant 0 : index
    %54 = vector.load %arg23[%c0_42, %c0_43, %c0_44] : memref<2x128x64xbf16, #tpu.memory_space<vmem>>, vector<2x128x64xbf16>
    %c0_45 = arith.constant 0 : index
    %c0_46 = arith.constant 0 : index
    %c0_47 = arith.constant 0 : index
    %55 = vector.load %arg24[%c0_45, %c0_46, %c0_47] : memref<2x128x64xbf16, #tpu.memory_space<vmem>>, vector<2x128x64xbf16>
    "tpu.trace_start"() <{level = 10 : i32, message = "hqd,hkd->hqk"}> : () -> ()
    %cst_48 = arith.constant dense<0.000000e+00> : vector<2x128x128xf32>
    %56 = tpu.matmul %53, %54, %cst_48 {dimension_numbers = #tpu.dot_dimension_numbers<[2], [2], [1], [1], [0, 0, 0, 1, 1, 1], [0], [0]>} : vector<2x128x64xbf16>, vector<2x128x64xbf16>, vector<2x128x128xf32> -> vector<2x128x128xf32>
    "tpu.trace_stop"() : () -> ()
    %cst_49 = arith.constant 1.250000e-01 : f32
    %57 = vector.broadcast %cst_49 : f32 to vector<2x128x128xf32>
    %58 = arith.mulf %56, %57 : vector<2x128x128xf32>
    %59 = vector.shape_cast %5 : vector<1x128xf32> to vector<1x1x128xf32>
    %60 = vector.broadcast %59 : vector<1x1x128xf32> to vector<2x128x128xf32>
    %61 = arith.addf %58, %60 : vector<2x128x128xf32>
    %cst_50 = arith.constant dense<0xFF800000> : vector<2x128xf32>
    %62 = vector.multi_reduction <maximumf>, %61, %cst_50 [2] : vector<2x128x128xf32> to vector<2x128xf32>
    %63 = vector.shape_cast %62 : vector<2x128xf32> to vector<2x128x1xf32>
    %64 = vector.broadcast %63 : vector<2x128x1xf32> to vector<2x128x128xf32>
    %65 = arith.subf %61, %64 : vector<2x128x128xf32>
    %66 = math.exp %65 : vector<2x128x128xf32>
    %cst_51 = arith.constant dense<0.000000e+00> : vector<2x128xf32>
    %67 = vector.multi_reduction <add>, %66, %cst_51 [2] : vector<2x128x128xf32> to vector<2x128xf32>
    %68 = vector.shape_cast %67 : vector<2x128xf32> to vector<2x128x1xf32>
    %69 = tpu.reciprocal %68 {approx = true} : vector<2x128x1xf32> -> vector<2x128x1xf32>
    %70 = vector.broadcast %69 : vector<2x128x1xf32> to vector<2x128x128xf32>
    %71 = arith.mulf %66, %70 : vector<2x128x128xf32>
    %72 = arith.truncf %71 : vector<2x128x128xf32> to vector<2x128x128xbf16>
    "tpu.trace_start"() <{level = 10 : i32, message = "hqk,hkd->hqd"}> : () -> ()
    %cst_52 = arith.constant dense<0.000000e+00> : vector<2x128x64xf32>
    %73 = tpu.matmul %72, %55, %cst_52 {dimension_numbers = #tpu.dot_dimension_numbers<[2], [1], [1], [2], [0, 0, 0, 1, 1, 2], [0], [0]>} : vector<2x128x128xbf16>, vector<2x128x64xbf16>, vector<2x128x64xf32> -> vector<2x128x64xf32>
    "tpu.trace_stop"() : () -> ()
    %c0_53 = arith.constant 0 : index
    %c0_54 = arith.constant 0 : index
    %74 = vector.load %arg12[%c0_53, %c0_54] : memref<1x128xf32, #tpu.memory_space<vmem>>, vector<1x128xf32>
    %75 = vector.broadcast %74 : vector<1x128xf32> to vector<128x128xf32>
    %76 = arith.addf %1, %75 : vector<128x128xf32>
    %77 = vector.extract_strided_slice %73 {offsets = [0, 0, 0], sizes = [1, 128, 64], strides = [1, 1, 1]} : vector<2x128x64xf32> to vector<1x128x64xf32>
    %78 = vector.shape_cast %77 : vector<1x128x64xf32> to vector<128x64xf32>
    %79 = arith.truncf %78 : vector<128x64xf32> to vector<128x64xbf16>
    %c0_55 = arith.constant 0 : index
    %c0_56 = arith.constant 0 : index
    %c0_57 = arith.constant 0 : index
    %80 = vector.load %arg11[%c0_55, %c0_56, %c0_57] : memref<2x64x128xbf16, #tpu.memory_space<vmem>>, vector<1x64x128xbf16>
    %81 = vector.shape_cast %80 : vector<1x64x128xbf16> to vector<64x128xbf16>
    %cst_58 = arith.constant dense<0.000000e+00> : vector<128x128xf32>
    %82 = tpu.matmul %79, %81, %cst_58 {dimension_numbers = #tpu.dot_dimension_numbers<[1], [0], [0], [1], [0, 0, 1, 1], [], []>} : vector<128x64xbf16>, vector<64x128xbf16>, vector<128x128xf32> -> vector<128x128xf32>
    %83 = arith.addf %76, %82 : vector<128x128xf32>
    %84 = vector.extract_strided_slice %73 {offsets = [1, 0, 0], sizes = [1, 128, 64], strides = [1, 1, 1]} : vector<2x128x64xf32> to vector<1x128x64xf32>
    %85 = vector.shape_cast %84 : vector<1x128x64xf32> to vector<128x64xf32>
    %86 = arith.truncf %85 : vector<128x64xf32> to vector<128x64xbf16>
    %c1_59 = arith.constant 1 : index
    %c0_60 = arith.constant 0 : index
    %c0_61 = arith.constant 0 : index
    %87 = vector.load %arg11[%c1_59, %c0_60, %c0_61] : memref<2x64x128xbf16, #tpu.memory_space<vmem>>, vector<1x64x128xbf16>
    %88 = vector.shape_cast %87 : vector<1x64x128xbf16> to vector<64x128xbf16>
    %cst_62 = arith.constant dense<0.000000e+00> : vector<128x128xf32>
    %89 = tpu.matmul %86, %88, %cst_62 {dimension_numbers = #tpu.dot_dimension_numbers<[1], [0], [0], [1], [0, 0, 1, 1], [], []>} : vector<128x64xbf16>, vector<64x128xbf16>, vector<128x128xf32> -> vector<128x128xf32>
    %90 = arith.addf %83, %89 : vector<128x128xf32>
    %c0_63 = arith.constant 0 : index
    %c0_64 = arith.constant 0 : index
    %91 = vector.load %arg13[%c0_63, %c0_64] : memref<1x128xf32, #tpu.memory_space<vmem>>, vector<1x128xf32>
    %c0_65 = arith.constant 0 : index
    %c0_66 = arith.constant 0 : index
    %92 = vector.load %arg14[%c0_65, %c0_66] : memref<1x128xf32, #tpu.memory_space<vmem>>, vector<1x128xf32>
    %cst_67 = arith.constant dense<0.000000e+00> : vector<128xf32>
    %93 = vector.multi_reduction <add>, %90, %cst_67 [1] : vector<128x128xf32> to vector<128xf32>
    %94 = vector.shape_cast %93 : vector<128xf32> to vector<128x1xf32>
    %cst_68 = arith.constant 1.280000e+02 : f32
    %95 = vector.broadcast %cst_68 : f32 to vector<128x1xf32>
    %96 = arith.divf %94, %95 : vector<128x1xf32>
    %97 = vector.broadcast %96 : vector<128x1xf32> to vector<128x128xf32>
    %98 = arith.subf %90, %97 : vector<128x128xf32>
    %99 = arith.mulf %98, %98 : vector<128x128xf32>
    %cst_69 = arith.constant dense<0.000000e+00> : vector<128xf32>
    %100 = vector.multi_reduction <add>, %99, %cst_69 [1] : vector<128x128xf32> to vector<128xf32>
    %101 = vector.shape_cast %100 : vector<128xf32> to vector<128x1xf32>
    %cst_70 = arith.constant 1.280000e+02 : f32
    %102 = vector.broadcast %cst_70 : f32 to vector<128x1xf32>
    %103 = arith.divf %101, %102 : vector<128x1xf32>
    %104 = vector.broadcast %96 : vector<128x1xf32> to vector<128x128xf32>
    %105 = arith.subf %90, %104 : vector<128x128xf32>
    %cst_71 = arith.constant 9.99999974E-6 : f32
    %106 = vector.broadcast %cst_71 : f32 to vector<128x1xf32>
    %107 = arith.addf %103, %106 : vector<128x1xf32>
    %108 = math.rsqrt %107 : vector<128x1xf32>
    %109 = vector.broadcast %108 : vector<128x1xf32> to vector<128x128xf32>
    %110 = arith.mulf %105, %109 : vector<128x128xf32>
    %111 = vector.broadcast %91 : vector<1x128xf32> to vector<128x128xf32>
    %112 = arith.mulf %110, %111 : vector<128x128xf32>
    %113 = vector.broadcast %92 : vector<1x128xf32> to vector<128x128xf32>
    %114 = arith.addf %112, %113 : vector<128x128xf32>
    %115 = arith.truncf %114 : vector<128x128xf32> to vector<128x128xbf16>
    %c0_72 = arith.constant 0 : index
    %c0_73 = arith.constant 0 : index
    %116 = vector.load %arg15[%c0_72, %c0_73] : memref<128x512xbf16, #tpu.memory_space<vmem>>, vector<128x512xbf16>
    %cst_74 = arith.constant dense<0.000000e+00> : vector<128x512xf32>
    %117 = tpu.matmul %115, %116, %cst_74 {dimension_numbers = #tpu.dot_dimension_numbers<[1], [0], [0], [1], [0, 0, 1, 1], [], []>} : vector<128x128xbf16>, vector<128x512xbf16>, vector<128x512xf32> -> vector<128x512xf32>
    %c0_75 = arith.constant 0 : index
    %c0_76 = arith.constant 0 : index
    %118 = vector.load %arg16[%c0_75, %c0_76] : memref<1x512xf32, #tpu.memory_space<vmem>>, vector<1x512xf32>
    %119 = vector.broadcast %118 : vector<1x512xf32> to vector<128x512xf32>
    %120 = arith.addf %117, %119 : vector<128x512xf32>
    %cst_77 = arith.constant 5.000000e-01 : f32
    %121 = vector.broadcast %cst_77 : f32 to vector<128x512xf32>
    %122 = arith.mulf %121, %120 : vector<128x512xf32>
    %123 = arith.mulf %120, %120 : vector<128x512xf32>
    %124 = arith.mulf %123, %120 : vector<128x512xf32>
    %cst_78 = arith.constant 4.471500e-02 : f32
    %125 = vector.broadcast %cst_78 : f32 to vector<128x512xf32>
    %126 = arith.mulf %125, %124 : vector<128x512xf32>
    %127 = arith.addf %120, %126 : vector<128x512xf32>
    %cst_79 = arith.constant 0.797884583 : f32
    %128 = vector.broadcast %cst_79 : f32 to vector<128x512xf32>
    %129 = arith.mulf %128, %127 : vector<128x512xf32>
    %130 = math.tanh %129 : vector<128x512xf32>
    %cst_80 = arith.constant 1.000000e+00 : f32
    %131 = vector.broadcast %cst_80 : f32 to vector<128x512xf32>
    %132 = arith.addf %131, %130 : vector<128x512xf32>
    %133 = arith.mulf %122, %132 : vector<128x512xf32>
    %134 = arith.truncf %133 : vector<128x512xf32> to vector<128x512xbf16>
    %c0_81 = arith.constant 0 : index
    %c0_82 = arith.constant 0 : index
    %135 = vector.load %arg17[%c0_81, %c0_82] : memref<512x128xbf16, #tpu.memory_space<vmem>>, vector<512x128xbf16>
    %cst_83 = arith.constant dense<0.000000e+00> : vector<128x128xf32>
    %136 = tpu.matmul %134, %135, %cst_83 {dimension_numbers = #tpu.dot_dimension_numbers<[1], [0], [0], [1], [0, 0, 1, 1], [], []>} : vector<128x512xbf16>, vector<512x128xbf16>, vector<128x128xf32> -> vector<128x128xf32>
    %c0_84 = arith.constant 0 : index
    %c0_85 = arith.constant 0 : index
    %137 = vector.load %arg18[%c0_84, %c0_85] : memref<1x128xf32, #tpu.memory_space<vmem>>, vector<1x128xf32>
    %138 = vector.broadcast %137 : vector<1x128xf32> to vector<128x128xf32>
    %139 = arith.addf %136, %138 : vector<128x128xf32>
    %140 = arith.addf %139, %114 : vector<128x128xf32>
    %c0_86 = arith.constant 0 : index
    %c0_87 = arith.constant 0 : index
    %141 = vector.load %arg19[%c0_86, %c0_87] : memref<1x128xf32, #tpu.memory_space<vmem>>, vector<1x128xf32>
    %c0_88 = arith.constant 0 : index
    %c0_89 = arith.constant 0 : index
    %142 = vector.load %arg20[%c0_88, %c0_89] : memref<1x128xf32, #tpu.memory_space<vmem>>, vector<1x128xf32>
    %cst_90 = arith.constant dense<0.000000e+00> : vector<128xf32>
    %143 = vector.multi_reduction <add>, %140, %cst_90 [1] : vector<128x128xf32> to vector<128xf32>
    %144 = vector.shape_cast %143 : vector<128xf32> to vector<128x1xf32>
    %cst_91 = arith.constant 1.280000e+02 : f32
    %145 = vector.broadcast %cst_91 : f32 to vector<128x1xf32>
    %146 = arith.divf %144, %145 : vector<128x1xf32>
    %147 = vector.broadcast %146 : vector<128x1xf32> to vector<128x128xf32>
    %148 = arith.subf %140, %147 : vector<128x128xf32>
    %149 = arith.mulf %148, %148 : vector<128x128xf32>
    %cst_92 = arith.constant dense<0.000000e+00> : vector<128xf32>
    %150 = vector.multi_reduction <add>, %149, %cst_92 [1] : vector<128x128xf32> to vector<128xf32>
    %151 = vector.shape_cast %150 : vector<128xf32> to vector<128x1xf32>
    %cst_93 = arith.constant 1.280000e+02 : f32
    %152 = vector.broadcast %cst_93 : f32 to vector<128x1xf32>
    %153 = arith.divf %151, %152 : vector<128x1xf32>
    %154 = vector.broadcast %146 : vector<128x1xf32> to vector<128x128xf32>
    %155 = arith.subf %140, %154 : vector<128x128xf32>
    %cst_94 = arith.constant 9.99999974E-6 : f32
    %156 = vector.broadcast %cst_94 : f32 to vector<128x1xf32>
    %157 = arith.addf %153, %156 : vector<128x1xf32>
    %158 = math.rsqrt %157 : vector<128x1xf32>
    %159 = vector.broadcast %158 : vector<128x1xf32> to vector<128x128xf32>
    %160 = arith.mulf %155, %159 : vector<128x128xf32>
    %161 = vector.broadcast %141 : vector<1x128xf32> to vector<128x128xf32>
    %162 = arith.mulf %160, %161 : vector<128x128xf32>
    %163 = vector.broadcast %142 : vector<1x128xf32> to vector<128x128xf32>
    %164 = arith.addf %162, %163 : vector<128x128xf32>
    %c0_95 = arith.constant 0 : index
    %c0_96 = arith.constant 0 : index
    %c0_97 = arith.constant 0 : index
    %165 = vector.load %arg21[%c0_95, %c0_96, %c0_97] : memref<1x128x128xf32, #tpu.memory_space<vmem>>, vector<1x128x128xf32>
    %166 = vector.shape_cast %165 : vector<1x128x128xf32> to vector<128x128xf32>
    %167 = vector.shape_cast %164 : vector<128x128xf32> to vector<1x128x128xf32>
    tpu.vector_store %arg21[%c0_95, %c0_96, %c0_97], %167 {strides = array<i32>} : memref<1x128x128xf32, #tpu.memory_space<vmem>>, vector<1x128x128xf32>,
    return
  }
  func.func @transform_0(%arg0: i32, %arg1: i32) -> (i32, i32, i32) {
    %c0_i32 = arith.constant 0 : i32
    %c0_i32_0 = arith.constant 0 : i32
    return %arg0, %arg1, %c0_i32 : i32, i32, i32
  }
  func.func @transform_1(%arg0: i32, %arg1: i32) -> (i32, i32, i32) {
    %c0_i32 = arith.constant 0 : i32
    %c0_i32_0 = arith.constant 0 : i32
    %c0_i32_1 = arith.constant 0 : i32
    return %arg0, %c0_i32, %c0_i32_0 : i32, i32, i32
  }
  func.func @transform_2(%arg0: i32, %arg1: i32) -> (i32, i32, i32) {
    %c0_i32 = arith.constant 0 : i32
    %c0_i32_0 = arith.constant 0 : i32
    %c0_i32_1 = arith.constant 0 : i32
    return %arg0, %c0_i32, %c0_i32_0 : i32, i32, i32
  }
  func.func @transform_3(%arg0: i32, %arg1: i32) -> (i32, i32) {
    %c0_i32 = arith.constant 0 : i32
    %c0_i32_0 = arith.constant 0 : i32
    %c0_i32_1 = arith.constant 0 : i32
    return %c0_i32, %c0_i32_0 : i32, i32
  }
  func.func @transform_4(%arg0: i32, %arg1: i32) -> (i32, i32) {
    %c0_i32 = arith.constant 0 : i32
    %c0_i32_0 = arith.constant 0 : i32
    %c0_i32_1 = arith.constant 0 : i32
    return %c0_i32, %c0_i32_0 : i32, i32
  }
  func.func @transform_5(%arg0: i32, %arg1: i32) -> (i32, i32) {
    %c0_i32 = arith.constant 0 : i32
    %c0_i32_0 = arith.constant 0 : i32
    %c0_i32_1 = arith.constant 0 : i32
    return %c0_i32, %c0_i32_0 : i32, i32
  }
  func.func @transform_6(%arg0: i32, %arg1: i32) -> (i32, i32) {
    %c0_i32 = arith.constant 0 : i32
    %c0_i32_0 = arith.constant 0 : i32
    %c0_i32_1 = arith.constant 0 : i32
    return %c0_i32, %c0_i32_0 : i32, i32
  }
  func.func @transform_7(%arg0: i32, %arg1: i32) -> (i32, i32) {
    %c0_i32 = arith.constant 0 : i32
    %c0_i32_0 = arith.constant 0 : i32
    %c0_i32_1 = arith.constant 0 : i32
    return %c0_i32, %c0_i32_0 : i32, i32
  }
  func.func @transform_8(%arg0: i32, %arg1: i32) -> (i32, i32) {
    %c0_i32 = arith.constant 0 : i32
    %c0_i32_0 = arith.constant 0 : i32
    %c0_i32_1 = arith.constant 0 : i32
    return %c0_i32, %c0_i32_0 : i32, i32
  }
  func.func @transform_9(%arg0: i32, %arg1: i32) -> (i32, i32, i32) {
    %c0_i32 = arith.constant 0 : i32
    %c0_i32_0 = arith.constant 0 : i32
    %c0_i32_1 = arith.constant 0 : i32
    %c0_i32_2 = arith.constant 0 : i32
    return %c0_i32, %c0_i32_0, %c0_i32_1 : i32, i32, i32
  }
  func.func @transform_10(%arg0: i32, %arg1: i32) -> (i32, i32) {
    %c0_i32 = arith.constant 0 : i32
    %c0_i32_0 = arith.constant 0 : i32
    %c0_i32_1 = arith.constant 0 : i32
    return %c0_i32, %c0_i32_0 : i32, i32
  }
  func.func @transform_11(%arg0: i32, %arg1: i32) -> (i32, i32) {
    %c0_i32 = arith.constant 0 : i32
    %c0_i32_0 = arith.constant 0 : i32
    %c0_i32_1 = arith.constant 0 : i32
    return %c0_i32, %c0_i32_0 : i32, i32
  }
  func.func @transform_12(%arg0: i32, %arg1: i32) -> (i32, i32) {
    %c0_i32 = arith.constant 0 : i32
    %c0_i32_0 = arith.constant 0 : i32
    %c0_i32_1 = arith.constant 0 : i32
    return %c0_i32, %c0_i32_0 : i32, i32
  }
  func.func @transform_13(%arg0: i32, %arg1: i32) -> (i32, i32) {
    %c0_i32 = arith.constant 0 : i32
    %c0_i32_0 = arith.constant 0 : i32
    %c0_i32_1 = arith.constant 0 : i32
    return %c0_i32, %c0_i32_0 : i32, i32
  }
  func.func @transform_14(%arg0: i32, %arg1: i32) -> (i32, i32) {
    %c0_i32 = arith.constant 0 : i32
    %c0_i32_0 = arith.constant 0 : i32
    %c0_i32_1 = arith.constant 0 : i32
    return %c0_i32, %c0_i32_0 : i32, i32
  }
  func.func @transform_15(%arg0: i32, %arg1: i32) -> (i32, i32) {
    %c0_i32 = arith.constant 0 : i32
    %c0_i32_0 = arith.constant 0 : i32
    %c0_i32_1 = arith.constant 0 : i32
    return %c0_i32, %c0_i32_0 : i32, i32
  }
  func.func @transform_16(%arg0: i32, %arg1: i32) -> (i32, i32) {
    %c0_i32 = arith.constant 0 : i32
    %c0_i32_0 = arith.constant 0 : i32
    %c0_i32_1 = arith.constant 0 : i32
    return %c0_i32, %c0_i32_0 : i32, i32
  }
  func.func @transform_17(%arg0: i32, %arg1: i32) -> (i32, i32) {
    %c0_i32 = arith.constant 0 : i32
    %c0_i32_0 = arith.constant 0 : i32
    %c0_i32_1 = arith.constant 0 : i32
    return %c0_i32, %c0_i32_0 : i32, i32
  }
  func.func @transform_18(%arg0: i32, %arg1: i32) -> (i32, i32) {
    %c0_i32 = arith.constant 0 : i32
    %c0_i32_0 = arith.constant 0 : i32
    %c0_i32_1 = arith.constant 0 : i32
    return %c0_i32, %c0_i32_0 : i32, i32
  }
  func.func @transform_19(%arg0: i32, %arg1: i32) -> (i32, i32, i32) {
    %c0_i32 = arith.constant 0 : i32
    %c0_i32_0 = arith.constant 0 : i32
    return %arg0, %arg1, %c0_i32 : i32, i32, i32
  }
}

</mosaic_0001>

<bundles_post_ra>
// kernel: fused_roberta_layer.1
= control target key start
LH: loop header
LB: loop body
LE: loop exit
PB: predicated region body
PF: predicated region fallthrough
CT: control target
= control target key end

     0   :  { %s8621_s0 = inlined_call_operand.vmem [shape: f32[2,128,128], index: 0, kind: input, shape index: {}, may-alias: {0,1}]   ;;  %s8622_s1 = inlined_call_operand.vmem [shape: f32[2,128,128], index: 1, kind: input, shape index: {}, may-alias: {0,1}]   ;;  %s8623_s2 = inlined_call_operand.vmem [shape: f32[2,1,128], index: 2, kind: input, shape index: {}]   ;;  %s8624_s3 = inlined_call_operand.vmem [shape: bf16[128,128], index: 3, kind: input, shape index: {}]   ;;  %s8625_s4 = inlined_call_operand.vmem [shape: f32[1,128], index: 4, kind: input, shape index: {}]   ;;  %s8626_s5 = inlined_call_operand.vmem [shape: bf16[128,128], index: 5, kind: input, shape index: {}]   ;;  %s8627_s6 = inlined_call_operand.vmem [shape: f32[1,128], index: 6, kind: input, shape index: {}]   ;;  %s8628_s7 = inlined_call_operand.vmem [shape: bf16[128,128], index: 7, kind: input, shape index: {}]   ;;  %s8629_s8 = inlined_call_operand.vmem [shape: f32[1,128], index: 8, kind: input, shape index: {}]   ;;  %s8630_s9 = inlined_call_operand.vmem [shape: bf16[2,64,128], index: 9, kind: input, shape index: {}]   ;;  %s8631_s10 = inlined_call_operand.vmem [shape: f32[1,128], index: 10, kind: input, shape index: {}]   ;;  %s8632_s11 = inlined_call_operand.vmem [shape: f32[1,128], index: 11, kind: input, shape index: {}]   ;;  %s8633_s12 = inlined_call_operand.vmem [shape: f32[1,128], index: 12, kind: input, shape index: {}]   ;;  %s8634_s13 = inlined_call_operand.vmem [shape: bf16[128,512], index: 13, kind: input, shape index: {}]   ;;  %s8635_s14 = inlined_call_operand.vmem [shape: f32[1,512], index: 14, kind: input, shape index: {}]   ;;  %s8636_s15 = inlined_call_operand.vmem [shape: bf16[512,128], index: 15, kind: input, shape index: {}]   ;;  %s8637_s16 = inlined_call_operand.vmem [shape: f32[1,128], index: 16, kind: input, shape index: {}]   ;;  %s8638_s17 = inlined_call_operand.vmem [shape: f32[1,128], index: 17, kind: input, shape index: {}]   ;;  %s8639_s18 = inlined_call_operand.vmem [shape: f32[1,128], index: 18, kind: input, shape index: {}]   ;;  %s8640_s19 = inlined_call_operand.hbm [shape: f32[2,128,128], index: 19, kind: output, shape index: {}]  }
   0x1   :  { %8692 = sst [smem:[#allocation68_spill]] %s8621_s0 }
   0x2   :  { %8693 = sst [smem:[#allocation69_spill]] %s8622_s1 }
   0x3   :  { %8694 = sst [smem:[#allocation70_spill]] %s8623_s2 }
   0x4   :  { %8695 = sst [smem:[#allocation71_spill]] %s8624_s3 }
   0x5   :  { %8696 = sst [smem:[#allocation72_spill]] %s8640_s19 }
   0x6   :  { %24 = vsyncpa [#allocation6], 0 }
   0x7   :  { %26 = vsyncpa [#allocation6 + $0x1], 0  ;;  %s6238_s0 = smov 0   ;;  %s6240_s30 = smov 0  }
   0x8   :  { %s6242_s20 = smov 0   ;;  %s6244_s21 = smov 0  }
   0x9   :  { %s6246_s1 = smov 0   ;;  %s6248_s22 = smov 0  }
   0xa LB: > { %8697 = sst [smem:[#allocation8_spill]] %s6111_s0  ;;  %s4782_s2 = sadd.s32 4294967295, %s6131_s22   ;;  %s6131_s22 = sphi %s6248_s22, %s32_s22   ;;  %s6127_s1 = sphi %s6246_s1, %s8829_s1   ;;  %s6123_s21 = sphi %s6244_s21, %s8828_s21   ;;  %s6119_s20 = sphi %s6242_s20, %s8827_s20   ;;  %s6115_s30 = sphi %s6240_s30, %s8831_s30   ;;  %s6111_s0 = sphi %s6238_s0, %s8830_s0  }
   0xb   : > { %8698 = sst [smem:[#allocation9_spill]] %s6119_s20  ;;  %s4783_s23 = sadd.s32 4294967294, %s6131_s22  }
   0xc   : > { %8699 = sst [smem:[#allocation10_spill]] %s6127_s1  ;;  %s44_s24 = sadd.s32 1, %s6127_s1 }
   0xd   : > { %8700 = sst [smem:[#allocation11_spill]] %s6131_s22  ;;  %s469_s25 = sadd.s32 1, %s6119_s20 }
   0xe   : > { %p46_p0 = scmp.ge.s32.totalorder %s44_s24, 2  ;;  %p479_p1 = scmp.ne.s32.totalorder %s6119_s20, %s6115_s30 }
   0xf   : > { %p480_p2 = scmp.eq.s32.totalorder %s4782_s2, 1  ;;  %p485_p3 = scmp.ne.s32.totalorder %s6115_s30, %s6111_s0 }
  0x10   : > { %s8833_s24 = smov (%p46_p0, %s44_s24), 0  ;;  %p486_p5 = scmp.eq.s32.totalorder %s4783_s23, 1 }
  0x11   : > { %8701 = sst [smem:[#allocation12_spill]] %s8833_s24  ;;  %p6278_p4 = por %p480_p2, %p479_p1 }
  0x12   : > { %s464_s26 = ssub.s32 %s6127_s1, %s8833_s24  ;;  %p4786_p6 = scmp.ge.s32.totalorder %s6131_s22, 1 }
  0x13   : > { %s8702_s3 = scalar_select %p6278_p4, 1, 0 }
  0x14   : > { %p467_p7 = scmp.eq.s32.totalorder %s464_s26, 0  ;;  %p6285_p8 = por %p486_p5, %p485_p3 }
  0x15   : > { %8703 = sst [smem:[#allocation13_spill]] %s8702_s3  ;;  %p579_p9 = scmp.lt.s32.totalorder %s6131_s22, 3 }
  0x16   : > { %s8704_s27 = scalar_select %p6285_p8, 1, 0 }
  0x17   : > { %s6291_s28 = scalar_select %p467_p7, %s6119_s20, %s469_s25  }
  0x18   : > { %8705 = sst [smem:[#allocation14_spill]] %s8704_s27  ;;  %p580_p10 = pnand %p4786_p6, %p579_p9 }
  0x19   : > { %8706 = sst [smem:[#allocation15_spill]] %s6291_s28 }
  0x1a   : > { %583 = sbr.rel (%p580_p10) target bundleno = 2728 (0xaa8), region = 96 }
  0x21   : > { %v5605_v0 = vld [vmem:[%s8626_s5] sm:$0xff]   ;;  %p648_p11 = scmp.lt.s32.totalorder %s6123_s21, 1  ;;  %v5606_v1 = vld [vmem:[%s8626_s5 + $0x8] sm:$0xff]   ;;  %v5607_v2 = vld [vmem:[%s8626_s5 + $0x10] sm:$0xff]   ;;  %s8707_s20 = sld [smem:[#allocation69_spill]]  ;;  %vm1228_vm0 = vcmask 523264  }
  0x22   : > { %5242 = vmatprep.subr.bf16.mxu1 %v5605_v0  ;;  %v5608_v3 = vld [vmem:[%s8626_s5 + $0x18] sm:$0xff]   ;;  %s8708_s29 = sld [smem:[#allocation71_spill]]  ;;  %v5609_v8 = vld [vmem:[%s8626_s5 + $0x20] sm:$0xff]   ;;  %v5610_v11 = vld [vmem:[%s8626_s5 + $0x28] sm:$0xff]   ;;  %s8709_s2 = sld [smem:[#allocation68_spill]] }
  0x23   : > { %s6301_s26 = scalar_select %p648_p11, %s6123_s21, 1  ;;  %5243 = vmatpush3.bf16.msra.mxu1 %v5605_v0  ;;  %v5611_v13 = vld [vmem:[%s8626_s5 + $0x30] sm:$0xff]   ;;  %v5612_v18 = vld [vmem:[%s8626_s5 + $0x38] sm:$0xff]   ;;  %v5621_v36 = vld [vmem:[%s8628_s7] sm:$0xff]  }
  0x24   : > { %5244 = vmatprep.subr.bf16.mxu1 %v5606_v1  ;;  %s6133_s0 = smov 64   ;;  %s8710_s1 = sld [smem:[#allocation70_spill]] }
  0x25   : > { %s4943_s28 = sshll.u32 %s6301_s26, 7 }
  0x27   : > { %s6310_s27 = scalar_lea.vmem %s8707_s20, %s4943_s28  ;;  %5245 = vmatpush3.bf16.msra.mxu1 %v5606_v1  ;;  %v5622_v1 = vld [vmem:[%s8628_s7 + $0x8] sm:$0xff]  }
  0x28   : > { %5246 = vmatprep.subr.bf16.mxu1 %v5607_v2  ;;  %v683_v4 = vld [vmem:[%s6310_s27] sm:$0xff]  ;;  %v684_v5 = vld [vmem:[%s6310_s27 + $0x8] sm:$0xff]  ;;  %v5615_v10 = vld [vmem:[%s8708_s29 + $0x10] sm:$0xff]   ;;  %s6338_s3 = scalar_lea.vmem %s8709_s2, %s4943_s28  ;;  %s4945_s28 = sshll.u32 %s6123_s21, 11 }
  0x29   : > { %v6317_v6 = vpack.c.bf16 %v684_v5, %v683_v4  ;;  %v5613_v7 = vld [vmem:[%s8708_s29] sm:$0xff]   ;;  %v5614_v9 = vld [vmem:[%s8708_s29 + $0x8] sm:$0xff]   ;;  %v5616_v12 = vld [vmem:[%s8708_s29 + $0x18] sm:$0xff]  }
  0x2a   : > { %5210 = vmatprep.subr.bf16.mxu0 %v5613_v7  ;;  %v667_v14 = vld [vmem:[%s6338_s3] sm:$0xff]  ;;  %v668_v15 = vld [vmem:[%s6338_s3 + $0x8] sm:$0xff]  ;;  %v685_v19 = vld [vmem:[%s6310_s27 + $0x10] sm:$0xff]  ;;  %s664_s25 = scalar_lea.vmem %s8710_s1, %s6301_s26  ;;  %s8821_s1 = sld [smem:[#allocation72_spill]] }
  0x2b   : > { %5247 = vmatpush3.bf16.msra.mxu1 %v5607_v2  ;;  %5258 = vmatprep.mubr.bf16.mxu1 %v6317_v6  ;;  %v5617_v16 = vld [vmem:[%s8708_s29 + $0x20] sm:$0xff]   ;;  %v700_v17 = vpack.c.bf16 %v668_v15, %v667_v14  ;;  %v686_v20 = vld [vmem:[%s6310_s27 + $0x18] sm:$0xff]  ;;  %v5618_v22 = vld [vmem:[%s8708_s29 + $0x28] sm:$0xff]  }
  0x2c   : > { %5248 = vmatprep.subr.bf16.mxu1 %v5608_v3  ;;  %5211 = vmatpush3.bf16.msra.mxu0 %v5613_v7  ;;  %v687_v21 = vld [vmem:[%s6310_s27 + $0x20] sm:$0xff]  ;;  %v688_v23 = vld [vmem:[%s6310_s27 + $0x28] sm:$0xff]  ;;  %v5619_v24 = vld [vmem:[%s8708_s29 + $0x30] sm:$0xff]   ;;  %v6364_v25 = vpack.c.bf16 %v686_v20, %v685_v19 }
  0x2d   : > { %5212 = vmatprep.subr.bf16.mxu0 %v5614_v9  ;;  %5226 = vmatprep.mubr.bf16.mxu0 %v700_v17  ;;  %v6366_v26 = vpack.c.bf16 %v688_v23, %v687_v21  ;;  %v689_v27 = vld [vmem:[%s6310_s27 + $0x30] sm:$0xff]  ;;  %v690_v28 = vld [vmem:[%s6310_s27 + $0x38] sm:$0xff]  ;;  %v691_v30 = vld [vmem:[%s6310_s27 + $0x40] sm:$0xff] }
  0x2e   : > { %v5620_v29 = vld [vmem:[%s8708_s29 + $0x38] sm:$0xff]   ;;  %v692_v31 = vld [vmem:[%s6310_s27 + $0x48] sm:$0xff]  ;;  %v669_v32 = vld [vmem:[%s6338_s3 + $0x10] sm:$0xff]  ;;  %v6384_v37 = vpack.c.bf16 %v690_v28, %v689_v27 }
  0x2f   : > { %5249 = vmatpush3.bf16.msra.mxu1 %v5608_v3  ;;  %v670_v33 = vld [vmem:[%s6338_s3 + $0x18] sm:$0xff]  ;;  %v671_v34 = vld [vmem:[%s6338_s3 + $0x20] sm:$0xff]  ;;  %v672_v35 = vld [vmem:[%s6338_s3 + $0x28] sm:$0xff]  ;;  %v6386_v38 = vpack.c.bf16 %v692_v31, %v691_v30 }
  0x30   : > { %5250 = vmatprep.subr.bf16.mxu1 %v5609_v8  ;;  %5213 = vmatpush3.bf16.msra.mxu0 %v5614_v9  ;;  %v693_v39 = vld [vmem:[%s6310_s27 + $0x50] sm:$0xff]  ;;  %v694_v40 = vld [vmem:[%s6310_s27 + $0x58] sm:$0xff]  ;;  %v701_v41 = vpack.c.bf16 %v670_v33, %v669_v32  ;;  %v695_v42 = vld [vmem:[%s6310_s27 + $0x60] sm:$0xff]  ;;  %v702_v44 = vpack.c.bf16 %v672_v35, %v671_v34  ;;  %s8822_s26 = smov %s8821_s1  ;;  %s8566_s20 = scalar_lea.hbm %s8821_s1, %s4945_s28 }
  0x31   : > { %5214 = vmatprep.subr.bf16.mxu0 %v5615_v10  ;;  %v696_v43 = vld [vmem:[%s6310_s27 + $0x68] sm:$0xff]  ;;  %v673_v45 = vld [vmem:[%s6338_s3 + $0x30] sm:$0xff]  ;;  %v674_v46 = vld [vmem:[%s6338_s3 + $0x38] sm:$0xff]  ;;  %v713_v49 = vpack.c.bf16 %v694_v40, %v693_v39 }
  0x32   : > { %v675_v47 = vld [vmem:[%s6338_s3 + $0x40] sm:$0xff]  ;;  %v676_v48 = vld [vmem:[%s6338_s3 + $0x48] sm:$0xff]  ;;  %v714_v50 = vpack.c.bf16 %v696_v43, %v695_v42  ;;  %v697_v51 = vld [vmem:[%s6310_s27 + $0x70] sm:$0xff]  ;;  %v703_v53 = vpack.c.bf16 %v674_v46, %v673_v45 }
  0x33   : > { %5251 = vmatpush3.bf16.msra.mxu1 %v5609_v8  ;;  %v698_v52 = vld [vmem:[%s6310_s27 + $0x78] sm:$0xff]  ;;  %v704_v54 = vpack.c.bf16 %v676_v48, %v675_v47  ;;  %v677_v55 = vld [vmem:[%s6338_s3 + $0x50] sm:$0xff]  ;;  %v679_v57 = vld [vmem:[%s6338_s3 + $0x60] sm:$0xff] }
  0x34   : > { %5252 = vmatprep.subr.bf16.mxu1 %v5610_v11  ;;  %5215 = vmatpush3.bf16.msra.mxu0 %v5615_v10  ;;  %v678_v56 = vld [vmem:[%s6338_s3 + $0x58] sm:$0xff]  ;;  %v680_v58 = vld [vmem:[%s6338_s3 + $0x68] sm:$0xff]  ;;  %v715_v59 = vpack.c.bf16 %v698_v52, %v697_v51  ;;  %v681_v62 = vld [vmem:[%s6338_s3 + $0x70] sm:$0xff] }
  0x35   : > { %5216 = vmatprep.subr.bf16.mxu0 %v5616_v12  ;;  %v705_v60 = vpack.c.bf16 %v678_v56, %v677_v55  ;;  %v706_v61 = vpack.c.bf16 %v680_v58, %v679_v57  ;;  %v682_v63 = vld [vmem:[%s6338_s3 + $0x78] sm:$0xff]  ;;  %v5623_v2 = vld [vmem:[%s8628_s7 + $0x10] sm:$0xff]   ;;  %v5625_v4 = vld [vmem:[%s8628_s7 + $0x20] sm:$0xff]  }
  0x36   : > { %v707_v0 = vpack.c.bf16 %v682_v63, %v681_v62  ;;  %v5624_v3 = vld [vmem:[%s8628_s7 + $0x18] sm:$0xff]   ;;  %v5626_v5 = vld [vmem:[%s8628_s7 + $0x28] sm:$0xff]   ;;  %v6435_v9 = vld [vmem:[%s8627_s6] ss:$0 sm:$0xff] }
  0x37   : > { %5253 = vmatpush3.bf16.msra.mxu1 %v5610_v11  ;;  %v5628_v7 = vld [vmem:[%s8628_s7 + $0x38] sm:$0xff]  }
  0x38   : > { %5254 = vmatprep.subr.bf16.mxu1 %v5611_v13  ;;  %5217 = vmatpush3.bf16.msra.mxu0 %v5616_v12 }
  0x39   : > { %5218 = vmatprep.subr.bf16.mxu0 %v5617_v16 }
  0x3b   : > { %5255 = vmatpush3.bf16.msra.mxu1 %v5611_v13 }
  0x3c   : > { %5256 = vmatprep.subr.bf16.mxu1 %v5612_v18  ;;  %5219 = vmatpush3.bf16.msra.mxu0 %v5617_v16 }
  0x3d   : > { %5220 = vmatprep.subr.bf16.mxu0 %v5618_v22 }
  0x3f   : > { %5257 = vmatpush3.bf16.msra.mxu1 %v5612_v18 }
  0x40   : > { %5221 = vmatpush3.bf16.msra.mxu0 %v5618_v22  ;;  %v6448_v22 = vld [vmem:[%s8625_s4] ss:$0 sm:$0xff] }
  0x41   : > { %5222 = vmatprep.subr.bf16.mxu0 %v5619_v24 }
  0x42   : > { %5259 = vmatmul.mubr.bf16.vlgmr.msra.gmra.mrb[0].mxu1 %v6364_v25 }
  0x43   : > { %5262 = vmatprep.mubr.bf16.mxu1 %v6366_v26 }
  0x44   : > { %5223 = vmatpush3.bf16.msra.mxu0 %v5619_v24 }
  0x45   : > { %5224 = vmatprep.subr.bf16.mxu0 %v5620_v29 }
  0x48   : > { %5225 = vmatpush3.bf16.msra.mxu0 %v5620_v29 }
  0x49   : > { %5274 = vmatprep.subr.bf16.mxu0 %v5621_v36 }
  0x4a   : > { %5263 = vmatmul.mubr.bf16.gmra.mrb[4].mxu1 %v6384_v37 }
  0x4b   : > { %5266 = vmatprep.mubr.bf16.mxu1 %v6386_v38  ;;  %5227 = vmatmul.mubr.bf16.vlgmr.msra.gmra.mrb[0].mxu0 %v701_v41 }
  0x4c   : > { %5230 = vmatprep.mubr.bf16.mxu0 %v702_v44  ;;  %5275 = vmatpush3.bf16.msra.mxu0 %v5621_v36 }
  0x4d   : > { %5276 = vmatprep.subr.bf16.mxu0 %v5622_v1 }
  0x50   : > { %5277 = vmatpush3.bf16.msra.mxu0 %v5622_v1 }
  0x51   : > { %5278 = vmatprep.subr.bf16.mxu0 %v5623_v2 }
  0x52   : > { %5267 = vmatmul.mubr.bf16.gmra.mrb[8].mxu1 %v713_v49 }
  0x53   : > { %5270 = vmatprep.mubr.bf16.mxu1 %v714_v50  ;;  %5231 = vmatmul.mubr.bf16.gmra.mrb[4].mxu0 %v703_v53 }
  0x54   : > { %5234 = vmatprep.mubr.bf16.mxu0 %v704_v54  ;;  %5279 = vmatpush3.bf16.msra.mxu0 %v5623_v2 }
  0x55   : > { %5280 = vmatprep.subr.bf16.mxu0 %v5624_v3 }
  0x58   : > { %5281 = vmatpush3.bf16.msra.mxu0 %v5624_v3 }
  0x59   : > { %5282 = vmatprep.subr.bf16.mxu0 %v5625_v4 }
  0x5a   : > { %5271 = vmatmul.mubr.bf16.gmra.mrb[12].mxu1 %v715_v59 }
  0x5b   : > { %5235 = vmatmul.mubr.bf16.gmra.mrb[8].mxu0 %v705_v60 }
  0x5c   : > { %5238 = vmatprep.mubr.bf16.mxu0 %v706_v61  ;;  %5283 = vmatpush3.bf16.msra.mxu0 %v5625_v4 }
  0x5d   : > { %5284 = vmatprep.subr.bf16.mxu0 %v5626_v5 }
  0x60   : > { %5285 = vmatpush3.bf16.msra.mxu0 %v5626_v5 }
  0x63   : > { %5239 = vmatmul.mubr.bf16.gmra.mrb[12].mxu0 %v707_v0 }
  0x64   : > { %5290 = vmatprep.mubr.bf16.mxu0 %v6317_v6  ;;  %v5627_v6 = vld [vmem:[%s8628_s7 + $0x30] sm:$0xff]  }
  0x65   : > { %5286 = vmatprep.subr.bf16.mxu0 %v5627_v6 }
  0x66   : > { %5287 = vmatpush3.bf16.msra.mxu0 %v5627_v6 }
  0x67   : > { %5288 = vmatprep.subr.bf16.mxu0 %v5628_v7 }
  0x6a   : > { %5289 = vmatpush3.bf16.msra.mxu0 %v5628_v7 }
  0x6d   : > { %5291 = vmatmul.mubr.bf16.vlgmr.msra.gmra.mrb[16].mxu0 %v6364_v25 }
  0x6e   : > { %5294 = vmatprep.mubr.bf16.mxu0 %v6366_v26 }
  0x75   : > { %5295 = vmatmul.mubr.bf16.gmra.mrb[20].mxu0 %v6384_v37 }
  0x76   : > { %5298 = vmatprep.mubr.bf16.mxu0 %v6386_v38 }
  0x7d   : > { %5299 = vmatmul.mubr.bf16.gmra.mrb[24].mxu0 %v713_v49 }
  0x7e   : > { %5302 = vmatprep.mubr.bf16.mxu0 %v714_v50 }
  0x85   : > { %5303 = vmatmul.mubr.bf16.gmra.mrb[28].mxu0 %v715_v59 }
 0x115   : > { %v5260_v8 = vpop.f32.mrb[0].mxu1 }
 0x116   : > { %v989_v10 = vpop.f32.mrb[1].mxu1  ;;  %v998_v12 = vadd.f32 %v5260_v8, %v6435_v9 }
 0x117   : > { %v5261_v11 = vpop.f32.mrb[2].mxu1  ;;  %v990_v15 = vadd.f32 %v6435_v9, %v989_v10 }
 0x118   : > { %v1001_v13 = vadd.f32 %v5261_v11, %v6435_v9  ;;  %v992_v14 = vpop.f32.mrb[3].mxu1 }
 0x119   : > { %v993_v16 = vadd.f32 %v6435_v9, %v992_v14 }
 0x11a   : > { %v1238_v17 = vpack.c.bf16 %v1001_v13, %v998_v12 }
 0x11b   : > { %v1237_v18 = vpack.c.bf16 %v993_v16, %v990_v15 }
 0x11c   : > { %1246 = vst.msk [vmem:[#allocation3 + $0x8] sm:$0xff] %vm1228_vm0, %v1238_v17 }
 0x11d   : > { %1318 = vrot.lane.b32.xlu0 %v1237_v18, %s6133_s0  ;;  %1245 = vst.msk [vmem:[#allocation3] sm:$0xff] %vm1228_vm0, %v1237_v18  ;;  %v5264_v19 = vpop.f32.mrb[4].mxu1 }
 0x11e   : > { %v1014_v20 = vadd.f32 %v5264_v19, %v6435_v9  ;;  %v1005_v21 = vpop.f32.mrb[5].mxu1  ;;  %v5228_v27 = vpop.f32.mrb[0].mxu0 }
 0x11f   : > { %v1006_v23 = vadd.f32 %v6435_v9, %v1005_v21  ;;  %v5265_v24 = vpop.f32.mrb[6].mxu1  ;;  %v830_v29 = vadd.f32 %v5228_v27, %v6448_v22  ;;  %v821_v30 = vpop.f32.mrb[1].mxu0 }
 0x120   : > { %v1017_v25 = vadd.f32 %v5265_v24, %v6435_v9  ;;  %v1008_v26 = vpop.f32.mrb[7].mxu1  ;;  %v822_v32 = vadd.f32 %v6448_v22, %v821_v30  ;;  %v5229_v33 = vpop.f32.mrb[2].mxu0 }
 0x121   : > { %v1009_v28 = vadd.f32 %v6435_v9, %v1008_v26  ;;  %1320 = vrot.lane.b32.xlu0 %v1238_v17, %s6133_s0  ;;  %v833_v35 = vadd.f32 %v5229_v33, %v6448_v22  ;;  %v824_v36 = vpop.f32.mrb[3].mxu0 }
 0x122   : > { %v1240_v31 = vpack.c.bf16 %v1017_v25, %v1014_v20  ;;  %v825_v38 = vadd.f32 %v6448_v22, %v824_v36 }
 0x123   : > { %v1239_v34 = vpack.c.bf16 %v1009_v28, %v1006_v23  ;;  %v6463_v41 = vpack.c.bf16 %v833_v35, %v830_v29  ;;  %v1409_v42 = vld [vmem:[#allocation3 + $0x8] sm:$0xff] }
 0x124   : > { %1248 = vst.msk [vmem:[#allocation3 + $0x18] sm:$0xff] %vm1228_vm0, %v1240_v31  ;;  %v1408_v37 = vld [vmem:[#allocation3] sm:$0xff]  ;;  %v6466_v45 = vpack.c.bf16 %v825_v38, %v822_v32  ;;  %v1468_v62 = vsel %vm1228_vm0, %v1409_v42, 0 }
 0x125   : > { %5530 = vmatprep.subr.msk.bf16.mxu1 %vm1228_vm0, %v1408_v37  ;;  %1322 = vrot.lane.b32.xlu1 %v1239_v34, %s6133_s0  ;;  %1247 = vst.msk [vmem:[#allocation3 + $0x10] sm:$0xff] %vm1228_vm0, %v1239_v34  ;;  %v1465_v39 = vsel %vm1228_vm0, %v1408_v37, 0  ;;  %v5268_v40 = vpop.f32.mrb[8].mxu1  ;;  %1230 = vst.msk [vmem:[#allocation2 + $0x8] sm:$0xff] %vm1228_vm0, %v6463_v41 }
 0x126   : > { %5307 = vmatpush3.bf16.xpose.msra.mxu1 %v1465_v39  ;;  %v1030_v43 = vadd.f32 %v5268_v40, %v6435_v9  ;;  %v1021_v44 = vpop.f32.mrb[9].mxu1  ;;  %1229 = vst.msk [vmem:[#allocation2] sm:$0xff] %vm1228_vm0, %v6466_v45  ;;  %v5232_v50 = vpop.f32.mrb[4].mxu0 }
 0x127   : > { %5531 = vmatprep.subr.msk.bf16.mxu1 %vm1228_vm0, %v1409_v42  ;;  %v1022_v46 = vadd.f32 %v6435_v9, %v1021_v44  ;;  %v5269_v47 = vpop.f32.mrb[10].mxu1  ;;  %v846_v52 = vadd.f32 %v5232_v50, %v6448_v22  ;;  %v837_v53 = vpop.f32.mrb[5].mxu0  ;;  %v6541_v50 = vld [vmem:[%s8629_s8] ss:$0 sm:$0xff] }
 0x128   : > { %v1033_v48 = vadd.f32 %v5269_v47, %v6435_v9  ;;  %v1024_v49 = vpop.f32.mrb[11].mxu1  ;;  %v838_v55 = vadd.f32 %v6448_v22, %v837_v53  ;;  %v5233_v56 = vpop.f32.mrb[6].mxu0 }
 0x129   : > { %1324 = vrot.lane.b32.xlu1 %v1240_v31, %s6133_s0  ;;  %v1025_v51 = vadd.f32 %v6435_v9, %v1024_v49  ;;  %v849_v58 = vadd.f32 %v5233_v56, %v6448_v22  ;;  %v840_v59 = vpop.f32.mrb[7].mxu0 }
 0x12a   : > { %v1242_v54 = vpack.c.bf16 %v1033_v48, %v1030_v43  ;;  %v841_v61 = vadd.f32 %v6448_v22, %v840_v59 }
 0x12b   : > { %v1241_v57 = vpack.c.bf16 %v1025_v51, %v1022_v46  ;;  %v1223_v0 = vpack.c.bf16 %v849_v58, %v846_v52  ;;  %v1411_v23 = vld [vmem:[#allocation3 + $0x18] sm:$0xff] }
 0x12c   : > { %v1410_v60 = vld [vmem:[#allocation3 + $0x10] sm:$0xff]  ;;  %1250 = vst.msk [vmem:[#allocation3 + $0x28] sm:$0xff] %vm1228_vm0, %v1242_v54  ;;  %v1222_v3 = vpack.c.bf16 %v841_v61, %v838_v55  ;;  %v1474_v34 = vsel %vm1228_vm0, %v1411_v23, 0  ;;  %v1393_v44 = vld [vmem:[#allocation2 + $0x8] sm:$0xff] }
 0x12d   : > { %1249 = vst.msk [vmem:[#allocation3 + $0x20] sm:$0xff] %vm1228_vm0, %v1241_v57  ;;  %1328 = vrot.lane.b32.xlu1 %v1242_v54, %s6133_s0  ;;  %1326 = vrot.lane.b32.xlu0 %v1241_v57, %s6133_s0  ;;  %v5272_v63 = vpop.f32.mrb[12].mxu1  ;;  %1232 = vst.msk [vmem:[#allocation2 + $0x18] sm:$0xff] %vm1228_vm0, %v1223_v0  ;;  %v1392_v6 = vld [vmem:[#allocation2] sm:$0xff]  ;;  %v1471_v21 = vsel %vm1228_vm0, %v1410_v60, 0 }
 0x12e   : > { %5309 = vmatpush3.bf16.xpose.msra.mxu1 %v1468_v62  ;;  %v1046_v1 = vadd.f32 %v5272_v63, %v6435_v9  ;;  %v1037_v2 = vpop.f32.mrb[13].mxu1  ;;  %1231 = vst.msk [vmem:[#allocation2 + $0x10] sm:$0xff] %vm1228_vm0, %v1222_v3  ;;  %5322 = vmatprep.mubr.msk.bf16.mxu1 %vm1228_vm0, %v1392_v6  ;;  %v5236_v10 = vpop.f32.mrb[8].mxu0 }
 0x12f   : > { %5532 = vmatprep.subr.msk.bf16.mxu1 %vm1228_vm0, %v1410_v60  ;;  %v1038_v4 = vadd.f32 %v6435_v9, %v1037_v2  ;;  %v5273_v5 = vpop.f32.mrb[14].mxu1  ;;  %v862_v12 = vadd.f32 %v5236_v10, %v6448_v22  ;;  %v853_v13 = vpop.f32.mrb[9].mxu0 }
 0x130   : > { %v1049_v7 = vadd.f32 %v5273_v5, %v6435_v9  ;;  %v1040_v8 = vpop.f32.mrb[15].mxu1  ;;  %v854_v15 = vadd.f32 %v6448_v22, %v853_v13  ;;  %v5237_v16 = vpop.f32.mrb[10].mxu0 }
 0x131   : > { %v1041_v11 = vadd.f32 %v6435_v9, %v1040_v8  ;;  %v865_v18 = vadd.f32 %v5237_v16, %v6448_v22  ;;  %v856_v19 = vpop.f32.mrb[11].mxu0 }
 0x132   : > { %v1244_v14 = vpack.c.bf16 %v1049_v7, %v1046_v1  ;;  %v857_v20 = vadd.f32 %v6448_v22, %v856_v19 }
 0x133   : > { %v1243_v17 = vpack.c.bf16 %v1041_v11, %v1038_v4  ;;  %v1225_v9 = vpack.c.bf16 %v865_v18, %v862_v12  ;;  %v1413_v37 = vld [vmem:[#allocation3 + $0x28] sm:$0xff] }
 0x134   : > { %1252 = vst.msk [vmem:[#allocation3 + $0x38] sm:$0xff] %vm1228_vm0, %v1244_v14  ;;  %1332 = vrot.lane.b32.xlu1 %v1244_v14, %s6133_s0  ;;  %v1224_v24 = vpack.c.bf16 %v857_v20, %v854_v15  ;;  %v1412_v32 = vld [vmem:[#allocation3 + $0x20] sm:$0xff]  ;;  %v1480_v39 = vsel %vm1228_vm0, %v1413_v37, 0 }
 0x135   : > { %1251 = vst.msk [vmem:[#allocation3 + $0x30] sm:$0xff] %vm1228_vm0, %v1243_v17  ;;  %1330 = vrot.lane.b32.xlu0 %v1243_v17, %s6133_s0  ;;  %1234 = vst.msk [vmem:[#allocation2 + $0x28] sm:$0xff] %vm1228_vm0, %v1225_v9  ;;  %v1394_v43 = vld [vmem:[#allocation2 + $0x10] sm:$0xff] }
 0x136   : > { %5311 = vmatpush3.bf16.xpose.msra.mxu1 %v1471_v21  ;;  %1233 = vst.msk [vmem:[#allocation2 + $0x20] sm:$0xff] %vm1228_vm0, %v1224_v24  ;;  %v5240_v25 = vpop.f32.mrb[12].mxu0 }
 0x137   : > { %5533 = vmatprep.subr.msk.bf16.mxu1 %vm1228_vm0, %v1411_v23  ;;  %v878_v26 = vadd.f32 %v5240_v25, %v6448_v22  ;;  %v869_v27 = vpop.f32.mrb[13].mxu0 }
 0x138   : > { %1279 = vrot.lane.b32.xlu1 %v6463_v41, %s6133_s0  ;;  %v870_v28 = vadd.f32 %v6448_v22, %v869_v27  ;;  %v5241_v29 = vpop.f32.mrb[14].mxu0 }
 0x139   : > { %1277 = vrot.lane.b32.xlu0 %v6466_v45, %s6133_s0  ;;  %v881_v30 = vadd.f32 %v5241_v29, %v6448_v22  ;;  %v872_v31 = vpop.f32.mrb[15].mxu0  ;;  %v1395_v45 = vld [vmem:[#allocation2 + $0x18] sm:$0xff] }
 0x13a   : > { %v873_v33 = vadd.f32 %v6448_v22, %v872_v31  ;;  %v1477_v22 = vsel %vm1228_vm0, %v1412_v32, 0 }
 0x13b   : > { %v1227_v35 = vpack.c.bf16 %v881_v30, %v878_v26  ;;  %v1415_v41 = vld [vmem:[#allocation3 + $0x38] sm:$0xff] }
 0x13c   : > { %1283 = vrot.lane.b32.xlu1 %v1223_v0, %s6133_s0  ;;  %v1226_v36 = vpack.c.bf16 %v873_v33, %v870_v28  ;;  %v1414_v38 = vld [vmem:[#allocation3 + $0x30] sm:$0xff]  ;;  %v1486_v42 = vsel %vm1228_vm0, %v1415_v41, 0  ;;  %v1397_v47 = vld [vmem:[#allocation2 + $0x28] sm:$0xff] }
 0x13d   : > { %1281 = vrot.lane.b32.xlu0 %v1222_v3, %s6133_s0  ;;  %1236 = vst.msk [vmem:[#allocation2 + $0x38] sm:$0xff] %vm1228_vm0, %v1227_v35  ;;  %v1483_v40 = vsel %vm1228_vm0, %v1414_v38, 0  ;;  %v1396_v46 = vld [vmem:[#allocation2 + $0x20] sm:$0xff] }
 0x13e   : > { %5313 = vmatpush3.bf16.xpose.msra.mxu1 %v1474_v34  ;;  %1235 = vst.msk [vmem:[#allocation2 + $0x30] sm:$0xff] %vm1228_vm0, %v1226_v36 }
 0x13f   : > { %5534 = vmatprep.subr.msk.bf16.mxu1 %vm1228_vm0, %v1412_v32 }
 0x140   : > { %1287 = vrot.lane.b32.xlu1 %v1225_v9, %s6133_s0  ;;  %v5292_v51 = vpop.f32.mrb[16].mxu0 }
 0x141   : > { %1285 = vrot.lane.b32.xlu0 %v1224_v24, %s6133_s0  ;;  %v1166_v52 = vadd.f32 %v5292_v51, %v6541_v50  ;;  %v1157_v53 = vpop.f32.mrb[17].mxu0 }
 0x142   : > { %v1158_v54 = vadd.f32 %v6541_v50, %v1157_v53  ;;  %v5293_v55 = vpop.f32.mrb[18].mxu0 }
 0x143   : > { %v1169_v56 = vadd.f32 %v5293_v55, %v6541_v50  ;;  %v1160_v57 = vpop.f32.mrb[19].mxu0 }
 0x144   : > { %1291 = vrot.lane.b32.xlu1 %v1227_v35, %s6133_s0  ;;  %v1399_v49 = vld [vmem:[#allocation2 + $0x38] sm:$0xff]  ;;  %v1161_v58 = vadd.f32 %v6541_v50, %v1160_v57 }
 0x145   : > { %1289 = vrot.lane.b32.xlu0 %v1226_v36, %s6133_s0  ;;  %v1398_v48 = vld [vmem:[#allocation2 + $0x30] sm:$0xff]  ;;  %v1254_v59 = vpack.c.bf16 %v1169_v56, %v1166_v52 }
 0x146   : > { %5315 = vmatpush3.bf16.xpose.msra.mxu1 %v1477_v22  ;;  %v1253_v60 = vpack.c.bf16 %v1161_v58, %v1158_v54 }
 0x147   : > { %5535 = vmatprep.subr.msk.bf16.mxu1 %vm1228_vm0, %v1413_v37  ;;  %1262 = vst.msk [vmem:[#allocation4 + $0x8] sm:$0xff] %vm1228_vm0, %v1254_v59 }
 0x148   : > { %1361 = vrot.lane.b32.xlu1 %v1254_v59, %s6133_s0  ;;  %1261 = vst.msk [vmem:[#allocation4] sm:$0xff] %vm1228_vm0, %v1253_v60  ;;  %v5296_v61 = vpop.f32.mrb[20].mxu0 }
 0x149   : > { %v1182_v62 = vadd.f32 %v5296_v61, %v6541_v50  ;;  %v1173_v63 = vpop.f32.mrb[21].mxu0 }
 0x14a   : > { %v1174_v1 = vadd.f32 %v6541_v50, %v1173_v63  ;;  %v5297_v2 = vpop.f32.mrb[22].mxu0 }
 0x14b   : > { %v1185_v3 = vadd.f32 %v5297_v2, %v6541_v50  ;;  %v1176_v4 = vpop.f32.mrb[23].mxu0 }
 0x14c   : > { %1359 = vrot.lane.b32.xlu1 %v1253_v60, %s6133_s0  ;;  %v1177_v5 = vadd.f32 %v6541_v50, %v1176_v4 }
 0x14d   : > { %v1256_v6 = vpack.c.bf16 %v1185_v3, %v1182_v62 }
 0x14e   : > { %5317 = vmatpush3.bf16.xpose.msra.mxu1 %v1480_v39  ;;  %v1255_v8 = vpack.c.bf16 %v1177_v5, %v1174_v1  ;;  %v1425_v55 = vld [vmem:[#allocation4 + $0x8] sm:$0xff] }
 0x14f   : > { %5536 = vmatprep.subr.msk.bf16.mxu1 %vm1228_vm0, %v1414_v38  ;;  %1264 = vst.msk [vmem:[#allocation4 + $0x18] sm:$0xff] %vm1228_vm0, %v1256_v6  ;;  %v1424_v54 = vld [vmem:[#allocation4] sm:$0xff] }
 0x150   : > { %1365 = vrot.lane.b32.xlu1 %v1256_v6, %s6133_s0  ;;  %1263 = vst.msk [vmem:[#allocation4 + $0x10] sm:$0xff] %vm1228_vm0, %v1255_v8  ;;  %v5300_v10 = vpop.f32.mrb[24].mxu0  ;;  %1363 = vrot.lane.b32.xlu0 %v1255_v8, %s6133_s0 }
 0x151   : > { %v1198_v11 = vadd.f32 %v5300_v10, %v6541_v50  ;;  %v1189_v12 = vpop.f32.mrb[25].mxu0 }
 0x152   : > { %v1190_v15 = vadd.f32 %v6541_v50, %v1189_v12  ;;  %v5301_v16 = vpop.f32.mrb[26].mxu0  ;;  %v6623_v12 = vld [vmem:[%s664_s25] ss:$0 sm:$0xff]  ;;  %s644_s25 = sand.u32 1, %s6115_s30  }
 0x153   : > { %v1201_v18 = vadd.f32 %v5301_v16, %v6541_v50  ;;  %v1192_v19 = vpop.f32.mrb[27].mxu0  ;;  %s4787_s2 = sshll.u32 %s644_s25, 7  ;;  %s8575_s21 = scalar_lea.sflag [#allocation6], %s644_s25 }
 0x154   : > { %v1193_v20 = vadd.f32 %v6541_v50, %v1192_v19  ;;  %s8503_s19 = scalar_lea.vmem [#allocation5], %s4787_s2 }
 0x155   : > { %v1258_v21 = vpack.c.bf16 %v1201_v18, %v1198_v11 }
 0x156   : > { %5319 = vmatpush3.bf16.xpose.msra.mxu1 %v1483_v40  ;;  %v1257_v24 = vpack.c.bf16 %v1193_v20, %v1190_v15  ;;  %v1427_v5 = vld [vmem:[#allocation4 + $0x18] sm:$0xff] }
 0x157   : > { %5537 = vmatprep.subr.msk.bf16.mxu1 %vm1228_vm0, %v1415_v41  ;;  %1266 = vst.msk [vmem:[#allocation4 + $0x28] sm:$0xff] %vm1228_vm0, %v1258_v21  ;;  %1369 = vrot.lane.b32.xlu1 %v1258_v21, %s6133_s0 }
 0x158   : > { %1265 = vst.msk [vmem:[#allocation4 + $0x20] sm:$0xff] %vm1228_vm0, %v1257_v24  ;;  %1367 = vrot.lane.b32.xlu0 %v1257_v24, %s6133_s0  ;;  %v5304_v56 = vpop.f32.mrb[28].mxu0 }
 0x159   : > { %v1214_v58 = vadd.f32 %v5304_v56, %v6541_v50  ;;  %v1205_v59 = vpop.f32.mrb[29].mxu0 }
 0x15a   : > { %v1206_v60 = vadd.f32 %v6541_v50, %v1205_v59  ;;  %v5305_v61 = vpop.f32.mrb[30].mxu0 }
 0x15b   : > { %v1217_v62 = vadd.f32 %v5305_v61, %v6541_v50  ;;  %v1208_v63 = vpop.f32.mrb[31].mxu0 }
 0x15c   : > { %v1209_v1 = vadd.f32 %v6541_v50, %v1208_v63 }
 0x15d   : > { %v6608_v2 = vpack.c.bf16 %v1217_v62, %v1214_v58 }
 0x15e   : > { %5321 = vmatpush3.bf16.xpose.msra.mxu1 %v1486_v42  ;;  %v6610_v3 = vpack.c.bf16 %v1209_v1, %v1206_v60  ;;  %v1429_v8 = vld [vmem:[#allocation4 + $0x28] sm:$0xff] }
 0x15f   : > { %5370 = vmatprep.subr.bf16.mxu1 %v1424_v54  ;;  %1268 = vst.msk [vmem:[#allocation4 + $0x38] sm:$0xff] %vm1228_vm0, %v6608_v2  ;;  %v1428_v50 = vld [vmem:[#allocation4 + $0x20] sm:$0xff] }
 0x160   : > { %1267 = vst.msk [vmem:[#allocation4 + $0x30] sm:$0xff] %vm1228_vm0, %v6610_v3 }
 0x165   : > { %5323 = vmatmul.mubr.msk.bf16.vlgmr.msra.gmra.mrb[16].mxu1 %vm1228_vm0, %v1393_v44 }
 0x166   : > { %5326 = vmatprep.mubr.msk.bf16.mxu1 %vm1228_vm0, %v1394_v43  ;;  %5371 = vmatpush3.bf16.msra.mxu1 %v1424_v54  ;;  %v1431_v11 = vld [vmem:[#allocation4 + $0x38] sm:$0xff] }
 0x167   : > { %5372 = vmatprep.subr.bf16.mxu1 %v1425_v55  ;;  %v1430_v10 = vld [vmem:[#allocation4 + $0x30] sm:$0xff] }
 0x16a   : > { %5373 = vmatpush3.bf16.msra.mxu1 %v1425_v55 }
 0x16d   : > { %5327 = vmatmul.mubr.msk.bf16.gmra.mrb[20].mxu1 %vm1228_vm0, %v1395_v45 }
 0x16e   : > { %5330 = vmatprep.mubr.msk.bf16.mxu1 %vm1228_vm0, %v1396_v46 }
 0x175   : > { %5331 = vmatmul.mubr.msk.bf16.gmra.mrb[24].mxu1 %vm1228_vm0, %v1397_v47 }
 0x176   : > { %5334 = vmatprep.mubr.msk.bf16.mxu1 %vm1228_vm0, %v1398_v48 }
 0x17d   : > { %5335 = vmatmul.mubr.msk.bf16.gmra.mrb[28].mxu1 %vm1228_vm0, %v1399_v49 }
 0x18f   : > { %v1319_v0 = vpop.permute.xlu0 %1318 }
 0x190   : > { %1343 = vst.msk [vmem:[#allocation3 + $0x40] sm:$0xff] %vm1228_vm0, %v1319_v0  ;;  %v1426_v0 = vld [vmem:[#allocation4 + $0x10] sm:$0xff] }
 0x191   : > { %5374 = vmatprep.subr.bf16.mxu1 %v1426_v0 }
 0x192   : > { %5375 = vmatpush3.bf16.msra.mxu1 %v1426_v0 }
 0x193   : > { %v1321_v7 = vpop.permute.xlu0 %1320  ;;  %5376 = vmatprep.subr.bf16.mxu1 %v1427_v5 }
 0x194   : > { %1344 = vst.msk [vmem:[#allocation3 + $0x48] sm:$0xff] %vm1228_vm0, %v1321_v7 }
 0x196   : > { %5377 = vmatpush3.bf16.msra.mxu1 %v1427_v5 }
 0x197   : > { %v1323_v13 = vpop.permute.xlu1 %1322  ;;  %v1416_v14 = vld [vmem:[#allocation3 + $0x40] sm:$0xff]  ;;  %5378 = vmatprep.subr.bf16.mxu1 %v1428_v50 }
 0x198   : > { %1345 = vst.msk [vmem:[#allocation3 + $0x50] sm:$0xff] %vm1228_vm0, %v1323_v13  ;;  %5538 = vmatprep.subr.msk.bf16.mxu0 %vm1228_vm0, %v1416_v14  ;;  %v1610_v17 = vsel %vm1228_vm0, %v1416_v14, 0 }
 0x199   : > { %5339 = vmatpush3.bf16.xpose.msra.mxu0 %v1610_v17 }
 0x19a   : > { %5379 = vmatpush3.bf16.msra.mxu1 %v1428_v50 }
 0x19b   : > { %v1325_v9 = vpop.permute.xlu1 %1324  ;;  %v1417_v23 = vld [vmem:[#allocation3 + $0x48] sm:$0xff]  ;;  %5380 = vmatprep.subr.bf16.mxu1 %v1429_v8 }
 0x19c   : > { %1346 = vst.msk [vmem:[#allocation3 + $0x58] sm:$0xff] %vm1228_vm0, %v1325_v9  ;;  %5539 = vmatprep.subr.msk.bf16.mxu0 %vm1228_vm0, %v1417_v23  ;;  %v1613_v28 = vsel %vm1228_vm0, %v1417_v23, 0 }
 0x19e   : > { %5381 = vmatpush3.bf16.msra.mxu1 %v1429_v8 }
 0x19f   : > { %v1418_v25 = vld [vmem:[#allocation3 + $0x50] sm:$0xff]  ;;  %v1329_v26 = vpop.permute.xlu1 %1328  ;;  %v1327_v27 = vpop.permute.xlu0 %1326  ;;  %5382 = vmatprep.subr.bf16.mxu1 %v1430_v10 }
 0x1a0   : > { %1348 = vst.msk [vmem:[#allocation3 + $0x68] sm:$0xff] %vm1228_vm0, %v1329_v26  ;;  %1347 = vst.msk [vmem:[#allocation3 + $0x60] sm:$0xff] %vm1228_vm0, %v1327_v27  ;;  %v1616_v31 = vsel %vm1228_vm0, %v1418_v25, 0 }
 0x1a1   : > { %5341 = vmatpush3.bf16.xpose.msra.mxu0 %v1613_v28 }
 0x1a2   : > { %5540 = vmatprep.subr.msk.bf16.mxu0 %vm1228_vm0, %v1418_v25  ;;  %5383 = vmatpush3.bf16.msra.mxu1 %v1430_v10 }
 0x1a3   : > { %v1419_v32 = vld [vmem:[#allocation3 + $0x58] sm:$0xff]  ;;  %5384 = vmatprep.subr.bf16.mxu1 %v1431_v11 }
 0x1a4   : > { %v1619_v37 = vsel %vm1228_vm0, %v1419_v32, 0 }
 0x1a6   : > { %v1333_v29 = vpop.permute.xlu1 %1332  ;;  %5385 = vmatpush3.bf16.msra.mxu1 %v1431_v11 }
 0x1a7   : > { %1350 = vst.msk [vmem:[#allocation3 + $0x78] sm:$0xff] %vm1228_vm0, %v1333_v29  ;;  %v1331_v30 = vpop.permute.xlu0 %1330  ;;  %v1420_v36 = vld [vmem:[#allocation3 + $0x60] sm:$0xff]  ;;  %v1421_v44 = vld [vmem:[#allocation3 + $0x68] sm:$0xff] }
 0x1a8   : > { %1349 = vst.msk [vmem:[#allocation3 + $0x70] sm:$0xff] %vm1228_vm0, %v1331_v30  ;;  %v1622_v43 = vsel %vm1228_vm0, %v1420_v36, 0  ;;  %v1625_v46 = vsel %vm1228_vm0, %v1421_v44, 0 }
 0x1a9   : > { %5343 = vmatpush3.bf16.xpose.msra.mxu0 %v1616_v31 }
 0x1aa   : > { %5541 = vmatprep.subr.msk.bf16.mxu0 %vm1228_vm0, %v1419_v32  ;;  %v1280_v33 = vpop.permute.xlu1 %1279 }
 0x1ab   : > { %1303 = vst.msk [vmem:[#allocation2 + $0x48] sm:$0xff] %vm1228_vm0, %v1280_v33  ;;  %v1278_v34 = vpop.permute.xlu0 %1277 }
 0x1ac   : > { %1302 = vst.msk [vmem:[#allocation2 + $0x40] sm:$0xff] %vm1228_vm0, %v1278_v34 }
 0x1ae   : > { %v1284_v35 = vpop.permute.xlu1 %1283  ;;  %v1423_v48 = vld [vmem:[#allocation3 + $0x78] sm:$0xff] }
 0x1af   : > { %v1282_v22 = vpop.permute.xlu0 %1281  ;;  %1305 = vst.msk [vmem:[#allocation2 + $0x58] sm:$0xff] %vm1228_vm0, %v1284_v35  ;;  %v1422_v45 = vld [vmem:[#allocation3 + $0x70] sm:$0xff]  ;;  %v1631_v49 = vsel %vm1228_vm0, %v1423_v48, 0 }
 0x1b0   : > { %1304 = vst.msk [vmem:[#allocation2 + $0x50] sm:$0xff] %vm1228_vm0, %v1282_v22  ;;  %v1628_v47 = vsel %vm1228_vm0, %v1422_v45, 0 }
 0x1b1   : > { %5345 = vmatpush3.bf16.xpose.msra.mxu0 %v1619_v37 }
 0x1b2   : > { %5542 = vmatprep.subr.msk.bf16.mxu0 %vm1228_vm0, %v1420_v36  ;;  %v1288_v38 = vpop.permute.xlu1 %1287  ;;  %v1401_v52 = vld [vmem:[#allocation2 + $0x48] sm:$0xff] }
 0x1b3   : > { %v1400_v39 = vld [vmem:[#allocation2 + $0x40] sm:$0xff]  ;;  %v1286_v40 = vpop.permute.xlu0 %1285  ;;  %1307 = vst.msk [vmem:[#allocation2 + $0x68] sm:$0xff] %vm1228_vm0, %v1288_v38 }
 0x1b4   : > { %5354 = vmatprep.mubr.msk.bf16.mxu0 %vm1228_vm0, %v1400_v39  ;;  %1306 = vst.msk [vmem:[#allocation2 + $0x60] sm:$0xff] %vm1228_vm0, %v1286_v40 }
 0x1b6   : > { %v1292_v41 = vpop.permute.xlu1 %1291  ;;  %v1403_v53 = vld [vmem:[#allocation2 + $0x58] sm:$0xff] }
 0x1b7   : > { %v1290_v42 = vpop.permute.xlu0 %1289  ;;  %1309 = vst.msk [vmem:[#allocation2 + $0x78] sm:$0xff] %vm1228_vm0, %v1292_v41  ;;  %v1402_v51 = vld [vmem:[#allocation2 + $0x50] sm:$0xff] }
 0x1b8   : > { %1308 = vst.msk [vmem:[#allocation2 + $0x70] sm:$0xff] %vm1228_vm0, %v1290_v42 }
 0x1b9   : > { %5347 = vmatpush3.bf16.xpose.msra.mxu0 %v1622_v43 }
 0x1ba   : > { %5543 = vmatprep.subr.msk.bf16.mxu0 %vm1228_vm0, %v1421_v44  ;;  %v1405_v4 = vld [vmem:[#allocation2 + $0x68] sm:$0xff]  ;;  %v1362_v21 = vpop.permute.xlu1 %1361 }
 0x1bb   : > { %v1404_v57 = vld [vmem:[#allocation2 + $0x60] sm:$0xff]  ;;  %1385 = vst.msk [vmem:[#allocation4 + $0x48] sm:$0xff] %vm1228_vm0, %v1362_v21 }
 0x1be   : > { %v1407_v7 = vld [vmem:[#allocation2 + $0x78] sm:$0xff]  ;;  %v1360_v29 = vpop.permute.xlu1 %1359 }
 0x1bf   : > { %v1406_v6 = vld [vmem:[#allocation2 + $0x70] sm:$0xff]  ;;  %1384 = vst.msk [vmem:[#allocation4 + $0x40] sm:$0xff] %vm1228_vm0, %v1360_v29 }
 0x1c1   : > { %5349 = vmatpush3.bf16.xpose.msra.mxu0 %v1625_v46 }
 0x1c2   : > { %5544 = vmatprep.subr.msk.bf16.mxu0 %vm1228_vm0, %v1422_v45  ;;  %v1364_v26 = vpop.permute.xlu0 %1363  ;;  %v1366_v38 = vpop.permute.xlu1 %1365  ;;  %v1433_v5 = vld [vmem:[#allocation4 + $0x48] sm:$0xff] }
 0x1c3   : > { %1386 = vst.msk [vmem:[#allocation4 + $0x50] sm:$0xff] %vm1228_vm0, %v1364_v26  ;;  %1387 = vst.msk [vmem:[#allocation4 + $0x58] sm:$0xff] %vm1228_vm0, %v1366_v38 }
 0x1c6   : > { %v1432_v63 = vld [vmem:[#allocation4 + $0x40] sm:$0xff] }
 0x1c9   : > { %5351 = vmatpush3.bf16.xpose.msra.mxu0 %v1628_v47  ;;  %v1370_v44 = vpop.permute.xlu1 %1369 }
 0x1ca   : > { %5545 = vmatprep.subr.msk.bf16.mxu0 %vm1228_vm0, %v1423_v48  ;;  %v1368_v39 = vpop.permute.xlu0 %1367  ;;  %1389 = vst.msk [vmem:[#allocation4 + $0x68] sm:$0xff] %vm1228_vm0, %v1370_v44  ;;  %v1434_v50 = vld [vmem:[#allocation4 + $0x50] sm:$0xff] }
 0x1cb   : > { %1388 = vst.msk [vmem:[#allocation4 + $0x60] sm:$0xff] %vm1228_vm0, %v1368_v39 }
 0x1d1   : > { %5353 = vmatpush3.bf16.xpose.msra.mxu0 %v1631_v49  ;;  %v1437_v10 = vld [vmem:[#allocation4 + $0x68] sm:$0xff] }
 0x1d2   : > { %5402 = vmatprep.subr.bf16.mxu0 %v1432_v63  ;;  %v1436_v8 = vld [vmem:[#allocation4 + $0x60] sm:$0xff] }
 0x1d8   : > { %5355 = vmatmul.mubr.msk.bf16.vlgmr.msra.gmra.mrb[32].mxu0 %vm1228_vm0, %v1401_v52 }
 0x1d9   : > { %5358 = vmatprep.mubr.msk.bf16.mxu0 %vm1228_vm0, %v1402_v51  ;;  %5403 = vmatpush3.bf16.msra.mxu0 %v1432_v63 }
 0x1da   : > { %5404 = vmatprep.subr.bf16.mxu0 %v1433_v5 }
 0x1dd   : > { %5405 = vmatpush3.bf16.msra.mxu0 %v1433_v5 }
 0x1de   : > { %5406 = vmatprep.subr.bf16.mxu0 %v1434_v50 }
 0x1e0   : > { %5359 = vmatmul.mubr.msk.bf16.gmra.mrb[36].mxu0 %vm1228_vm0, %v1403_v53 }
 0x1e1   : > { %5362 = vmatprep.mubr.msk.bf16.mxu0 %vm1228_vm0, %v1404_v57  ;;  %5407 = vmatpush3.bf16.msra.mxu0 %v1434_v50 }
 0x1e8   : > { %5363 = vmatmul.mubr.msk.bf16.gmra.mrb[40].mxu0 %vm1228_vm0, %v1405_v4 }
 0x1e9   : > { %5366 = vmatprep.mubr.msk.bf16.mxu0 %vm1228_vm0, %v1406_v6 }
 0x1f0   : > { %5367 = vmatmul.mubr.msk.bf16.gmra.mrb[44].mxu0 %vm1228_vm0, %v1407_v7  ;;  %v1435_v7 = vld [vmem:[#allocation4 + $0x58] sm:$0xff] }
 0x1f1   : > { %5408 = vmatprep.subr.bf16.mxu0 %v1435_v7 }
 0x1f2   : > { %5409 = vmatpush3.bf16.msra.mxu0 %v1435_v7 }
 0x1f3   : > { %5410 = vmatprep.subr.bf16.mxu0 %v1436_v8 }
 0x1f6   : > { %5411 = vmatpush3.bf16.msra.mxu0 %v1436_v8 }
 0x1f7   : > { %5412 = vmatprep.subr.bf16.mxu0 %v1437_v10 }
 0x1fa   : > { %5413 = vmatpush3.bf16.msra.mxu0 %v1437_v10 }
 0x238   : > { %v5324_v13 = vpop.f32.mrb[16].mxu1 }
 0x239   : > { %v1732_v14 = vmul.f32 0.125, %v5324_v13  ;;  %v1522_v15 = vpop.f32.mrb[17].mxu1 }
 0x23a   : > { %v5325_v16 = vpop.f32.mrb[18].mxu1  ;;  %v1730_v17 = vmul.f32 0.125, %v1522_v15 }
 0x23b   : > { %v1525_v18 = vpop.f32.mrb[19].mxu1  ;;  %v6626_v19 = vadd.f32 %v6623_v12, %v1732_v14  ;;  %v1733_v23 = vmul.f32 0.125, %v5325_v16 }
 0x23c   : > { %v1731_v20 = vmul.f32 0.125, %v1525_v18  ;;  %v6634_v24 = vadd.f32 %v6623_v12, %v1730_v17 }
 0x23d   : > { %1804 = vmax.xlane.f32.xlu0 %v6626_v19  ;;  %v6641_v33 = vadd.f32 %v6623_v12, %v1733_v23 }
 0x23e   : > { %v6630_v9 = vadd.f32 %v6623_v12, %v1731_v20 }
 0x240   : > { %1802 = vmax.xlane.f32.xlu1 %v6630_v9  ;;  %v5328_v25 = vpop.f32.mrb[20].mxu1 }
 0x241   : > { %v1736_v27 = vmul.f32 0.125, %v5328_v25  ;;  %1800 = vmax.xlane.f32.xlu0 %v6634_v24  ;;  %v1538_v28 = vpop.f32.mrb[21].mxu1 }
 0x242   : > { %v1734_v30 = vmul.f32 0.125, %v1538_v28  ;;  %v5329_v31 = vpop.f32.mrb[22].mxu1 }
 0x243   : > { %v1737_v32 = vmul.f32 0.125, %v5329_v31  ;;  %v6644_v34 = vadd.f32 %v6623_v12, %v1736_v27  ;;  %v1541_v35 = vpop.f32.mrb[23].mxu1 }
 0x244   : > { %v1735_v36 = vmul.f32 0.125, %v1541_v35  ;;  %v6649_v22 = vadd.f32 %v6623_v12, %v1734_v30 }
 0x245   : > { %1806 = vmax.xlane.f32.xlu0 %v6641_v33  ;;  %1812 = vmax.xlane.f32.xlu1 %v6644_v34  ;;  %v6652_v37 = vadd.f32 %v6623_v12, %v1737_v32 }
 0x246   : > { %v6659_v43 = vadd.f32 %v6623_v12, %v1735_v36 }
 0x248   : > { %v5332_v40 = vpop.f32.mrb[24].mxu1 }
 0x249   : > { %v1740_v41 = vmul.f32 0.125, %v5332_v40  ;;  %1808 = vmax.xlane.f32.xlu1 %v6649_v22  ;;  %1814 = vmax.xlane.f32.xlu0 %v6652_v37  ;;  %v1554_v42 = vpop.f32.mrb[25].mxu1 }
 0x24a   : > { %v1738_v45 = vmul.f32 0.125, %v1554_v42  ;;  %v5333_v46 = vpop.f32.mrb[26].mxu1 }
 0x24b   : > { %v1741_v47 = vmul.f32 0.125, %v5333_v46  ;;  %v6663_v48 = vadd.f32 %v6623_v12, %v1740_v41  ;;  %v1557_v49 = vpop.f32.mrb[27].mxu1 }
 0x24c   : > { %v1739_v51 = vmul.f32 0.125, %v1557_v49  ;;  %v6668_v52 = vadd.f32 %v6623_v12, %v1738_v45 }
 0x24d   : > { %1810 = vmax.xlane.f32.xlu0 %v6659_v43  ;;  %1820 = vmax.xlane.f32.xlu1 %v6663_v48  ;;  %v6671_v53 = vadd.f32 %v6623_v12, %v1741_v47 }
 0x24e   : > { %v6676_v57 = vadd.f32 %v6623_v12, %v1739_v51 }
 0x250   : > { %v5336_v54 = vpop.f32.mrb[28].mxu1 }
 0x251   : > { %v1744_v55 = vmul.f32 0.125, %v5336_v54  ;;  %1816 = vmax.xlane.f32.xlu1 %v6668_v52  ;;  %1822 = vmax.xlane.f32.xlu0 %v6671_v53  ;;  %v1570_v56 = vpop.f32.mrb[29].mxu1 }
 0x252   : > { %v1742_v58 = vmul.f32 0.125, %v1570_v56  ;;  %v5337_v59 = vpop.f32.mrb[30].mxu1 }
 0x253   : > { %v1745_v60 = vmul.f32 0.125, %v5337_v59  ;;  %v6679_v61 = vadd.f32 %v6623_v12, %v1744_v55  ;;  %v1573_v62 = vpop.f32.mrb[31].mxu1 }
 0x254   : > { %v1743_v0 = vmul.f32 0.125, %v1573_v62  ;;  %v6684_v1 = vadd.f32 %v6623_v12, %v1742_v58 }
 0x255   : > { %1818 = vmax.xlane.f32.xlu0 %v6676_v57  ;;  %1828 = vmax.xlane.f32.xlu1 %v6679_v61  ;;  %v6687_v4 = vadd.f32 %v6623_v12, %v1745_v60 }
 0x256   : > { %v6692_v6 = vadd.f32 %v6623_v12, %v1743_v0 }
 0x259   : > { %1824 = vmax.xlane.f32.xlu1 %v6684_v1  ;;  %1830 = vmax.xlane.f32.xlu0 %v6687_v4 }
 0x25d   : > { %1826 = vmax.xlane.f32.xlu0 %v6692_v6 }
 0x2ab   : > { %v5356_v11 = vpop.f32.mrb[32].mxu0 }
 0x2ac   : > { %v1748_v13 = vmul.f32 0.125, %v5356_v11  ;;  %v1667_v14 = vpop.f32.mrb[33].mxu0 }
 0x2ad   : > { %v5357_v15 = vpop.f32.mrb[34].mxu0  ;;  %v1746_v16 = vmul.f32 0.125, %v1667_v14 }
 0x2ae   : > { %v1749_v17 = vmul.f32 0.125, %v5357_v15  ;;  %v1670_v18 = vpop.f32.mrb[35].mxu0  ;;  %v6696_v20 = vadd.f32 %v6623_v12, %v1748_v13 }
 0x2af   : > { %v1747_v21 = vmul.f32 0.125, %v1670_v18  ;;  %v6704_v25 = vadd.f32 %v6623_v12, %v1746_v16 }
 0x2b0   : > { %1836 = vmax.xlane.f32.xlu1 %v6696_v20  ;;  %v6700_v23 = vadd.f32 %v6623_v12, %v1749_v17 }
 0x2b1   : > { %v6708_v29 = vadd.f32 %v6623_v12, %v1747_v21 }
 0x2b2   : > { %1838 = vmax.xlane.f32.xlu0 %v6700_v23 }
 0x2b3   : > { %v5360_v26 = vpop.f32.mrb[36].mxu0 }
 0x2b4   : > { %v1752_v27 = vmul.f32 0.125, %v5360_v26  ;;  %v1683_v28 = vpop.f32.mrb[37].mxu0  ;;  %1832 = vmax.xlane.f32.xlu1 %v6704_v25 }
 0x2b5   : > { %v1750_v30 = vmul.f32 0.125, %v1683_v28  ;;  %v5361_v31 = vpop.f32.mrb[38].mxu0 }
 0x2b6   : > { %v1753_v32 = vmul.f32 0.125, %v5361_v31  ;;  %1834 = vmax.xlane.f32.xlu0 %v6708_v29  ;;  %v6712_v35 = vadd.f32 %v6623_v12, %v1752_v27  ;;  %v1686_v36 = vpop.f32.mrb[39].mxu0 }
 0x2b7   : > { %v1751_v38 = vmul.f32 0.125, %v1686_v36  ;;  %v6719_v40 = vadd.f32 %v6623_v12, %v1750_v30 }
 0x2b8   : > { %1844 = vmax.xlane.f32.xlu1 %v6712_v35  ;;  %v6716_v39 = vadd.f32 %v6623_v12, %v1753_v32 }
 0x2b9   : > { %v6723_v41 = vadd.f32 %v6623_v12, %v1751_v38 }
 0x2ba   : > { %1846 = vmax.xlane.f32.xlu0 %v6716_v39 }
 0x2bb   : > { %v5364_v42 = vpop.f32.mrb[40].mxu0 }
 0x2bc   : > { %v1756_v44 = vmul.f32 0.125, %v5364_v42  ;;  %v1699_v45 = vpop.f32.mrb[41].mxu0  ;;  %1840 = vmax.xlane.f32.xlu1 %v6719_v40 }
 0x2bd   : > { %v1754_v46 = vmul.f32 0.125, %v1699_v45  ;;  %v5365_v47 = vpop.f32.mrb[42].mxu0 }
 0x2be   : > { %v1757_v49 = vmul.f32 0.125, %v5365_v47  ;;  %1842 = vmax.xlane.f32.xlu0 %v6723_v41  ;;  %v6728_v51 = vadd.f32 %v6623_v12, %v1756_v44  ;;  %v1702_v54 = vpop.f32.mrb[43].mxu0 }
 0x2bf   : > { %v1755_v55 = vmul.f32 0.125, %v1702_v54  ;;  %v6735_v58 = vadd.f32 %v6623_v12, %v1754_v46 }
 0x2c0   : > { %1852 = vmax.xlane.f32.xlu1 %v6728_v51  ;;  %v6732_v56 = vadd.f32 %v6623_v12, %v1757_v49 }
 0x2c1   : > { %v6739_v59 = vadd.f32 %v6623_v12, %v1755_v55 }
 0x2c2   : > { %1854 = vmax.xlane.f32.xlu0 %v6732_v56 }
 0x2c3   : > { %v5368_v60 = vpop.f32.mrb[44].mxu0 }
 0x2c4   : > { %v1760_v62 = vmul.f32 0.125, %v5368_v60  ;;  %v1715_v63 = vpop.f32.mrb[45].mxu0  ;;  %1848 = vmax.xlane.f32.xlu1 %v6735_v58 }
 0x2c5   : > { %v1758_v0 = vmul.f32 0.125, %v1715_v63  ;;  %v5369_v5 = vpop.f32.mrb[46].mxu0 }
 0x2c6   : > { %v1761_v50 = vmul.f32 0.125, %v5369_v5  ;;  %1850 = vmax.xlane.f32.xlu0 %v6739_v59  ;;  %v6744_v7 = vadd.f32 %v6623_v12, %v1760_v62  ;;  %v1718_v8 = vpop.f32.mrb[47].mxu0 }
 0x2c7   : > { %v1759_v10 = vmul.f32 0.125, %v1718_v8  ;;  %v6751_v13 = vadd.f32 %v6623_v12, %v1758_v0 }
 0x2c8   : > { %1860 = vmax.xlane.f32.xlu1 %v6744_v7  ;;  %v6748_v11 = vadd.f32 %v6623_v12, %v1761_v50 }
 0x2c9   : > { %v6755_v15 = vadd.f32 %v6623_v12, %v1759_v10 }
 0x2ca   : > { %v1805_v14 = vpop.xlane.xlu0 %1804  ;;  %1862 = vmax.xlane.f32.xlu0 %v6748_v11 }
 0x2cb   : > { %v1866_v16 = vsub.f32 %v6626_v19, %v1805_v14 }
 0x2cc   : > { %1856 = vmax.xlane.f32.xlu1 %v6751_v13 }
 0x2cd   : > { %v1900_v17 = vmul.f32 1.442695, %v1866_v16  ;;  %v1803_v18 = vpop.xlane.xlu1 %1802 }
 0x2ce   : > { %v1801_v21 = vpop.xlane.xlu0 %1800  ;;  %1858 = vmax.xlane.f32.xlu0 %v6755_v15  ;;  %v1865_v28 = vsub.f32 %v6630_v9, %v1803_v18 }
 0x2cf   : > { %5717 = vpow2.f32 %v1900_v17  ;;  %v1864_v26 = vsub.f32 %v6634_v24, %v1801_v21 }
 0x2d0   : > { %v1898_v38 = vmul.f32 1.442695, %v1865_v28 }
 0x2d1   : > { %v1896_v27 = vmul.f32 1.442695, %v1864_v26 }
 0x2d2   : > { %v1807_v30 = vpop.xlane.xlu0 %1806  ;;  %v1813_v31 = vpop.xlane.xlu1 %1812 }
 0x2d3   : > { %5719 = vpow2.f32 %v1896_v27  ;;  %v1867_v12 = vsub.f32 %v6641_v33, %v1807_v30  ;;  %v1870_v19 = vsub.f32 %v6644_v34, %v1813_v31 }
 0x2d5   : > { %v1902_v32 = vmul.f32 1.442695, %v1867_v12  ;;  %v1908_v36 = vmul.f32 1.442695, %v1870_v19 }
 0x2d6   : > { %v1809_v42 = vpop.xlane.xlu1 %1808  ;;  %v1815_v44 = vpop.xlane.xlu0 %1814 }
 0x2d7   : > { %5721 = vpow2.f32 %v1902_v32  ;;  %v1868_v45 = vsub.f32 %v6649_v22, %v1809_v42  ;;  %v1871_v24 = vsub.f32 %v6652_v37, %v1815_v44 }
 0x2d8   : > { %5723 = vpow2.f32 %v1908_v36 }
 0x2d9   : > { %v6766_v46 = vpop.eup %5717  ;;  %v1904_v9 = vmul.f32 1.442695, %v1868_v45  ;;  %5725 = vpow2.f32 %v1898_v38  ;;  %v1910_v33 = vmul.f32 1.442695, %v1871_v24 }
 0x2da   : > { %v1811_v47 = vpop.xlane.xlu0 %1810  ;;  %v1821_v49 = vpop.xlane.xlu1 %1820  ;;  %1964 = vadd.xlane.f32.xlu1 %v6766_v46 }
 0x2db   : > { %5727 = vpow2.f32 %v1904_v9  ;;  %v1869_v34 = vsub.f32 %v6659_v43, %v1811_v47  ;;  %v1874_v54 = vsub.f32 %v6663_v48, %v1821_v49 }
 0x2dc   : > { %5729 = vpow2.f32 %v1910_v33 }
 0x2dd   : > { %v6771_v55 = vpop.eup %5719  ;;  %v1916_v22 = vmul.f32 1.442695, %v1874_v54  ;;  %v1906_v60 = vmul.f32 1.442695, %v1869_v34 }
 0x2de   : > { %v1817_v37 = vpop.xlane.xlu1 %1816  ;;  %v1823_v62 = vpop.xlane.xlu0 %1822  ;;  %1960 = vadd.xlane.f32.xlu1 %v6771_v55 }
 0x2df   : > { %v1872_v63 = vsub.f32 %v6668_v52, %v1817_v37  ;;  %v1875_v0 = vsub.f32 %v6671_v53, %v1823_v62  ;;  %5731 = vpow2.f32 %v1916_v22 }
 0x2e0   : > { %5733 = vpow2.f32 %v1906_v60 }
 0x2e1   : > { %v6776_v5 = vpop.eup %5721  ;;  %v1912_v50 = vmul.f32 1.442695, %v1872_v63  ;;  %v1918_v10 = vmul.f32 1.442695, %v1875_v0 }
 0x2e2   : > { %v6778_v43 = vpop.eup %5723  ;;  %v1819_v48 = vpop.xlane.xlu0 %1818  ;;  %1966 = vadd.xlane.f32.xlu0 %v6776_v5 }
 0x2e3   : > { %v1829_v8 = vpop.xlane.xlu1 %1828  ;;  %5735 = vpow2.f32 %v1912_v50  ;;  %v1873_v14 = vsub.f32 %v6676_v57, %v1819_v48  ;;  %1972 = vadd.xlane.f32.xlu1 %v6778_v43  ;;  %v6783_v52 = vpop.eup %5725 }
 0x2e4   : > { %5737 = vpow2.f32 %v1918_v10  ;;  %v1878_v17 = vsub.f32 %v6679_v61, %v1829_v8 }
 0x2e5   : > { %v6785_v53 = vpop.eup %5727  ;;  %v1914_v16 = vmul.f32 1.442695, %v1873_v14 }
 0x2e6   : > { %1962 = vadd.xlane.f32.xlu0 %v6783_v52  ;;  %v6790_v21 = vpop.eup %5729  ;;  %v1831_v57 = vpop.xlane.xlu0 %1830  ;;  %v1924_v27 = vmul.f32 1.442695, %v1878_v17 }
 0x2e7   : > { %1968 = vadd.xlane.f32.xlu1 %v6785_v53  ;;  %v1825_v18 = vpop.xlane.xlu1 %1824  ;;  %5739 = vpow2.f32 %v1914_v16  ;;  %v1879_v12 = vsub.f32 %v6687_v4, %v1831_v57 }
 0x2e8   : > { %v1876_v28 = vsub.f32 %v6684_v1, %v1825_v18  ;;  %5741 = vpow2.f32 %v1924_v27 }
 0x2e9   : > { %v6792_v26 = vpop.eup %5731  ;;  %v1926_v1 = vmul.f32 1.442695, %v1879_v12 }
 0x2ea   : > { %1974 = vadd.xlane.f32.xlu0 %v6790_v21  ;;  %v6797_v30 = vpop.eup %5733  ;;  %v1920_v61 = vmul.f32 1.442695, %v1876_v28  ;;  %v1827_v19 = vpop.xlane.xlu0 %1826 }
 0x2eb   : > { %1980 = vadd.xlane.f32.xlu1 %v6792_v26  ;;  %v1877_v36 = vsub.f32 %v6692_v6, %v1827_v19 }
 0x2ec   : > { %5743 = vpow2.f32 %v1920_v61 }
 0x2ed   : > { %v6799_v31 = vpop.eup %5735  ;;  %5745 = vpow2.f32 %v1926_v1  ;;  %v1922_v42 = vmul.f32 1.442695, %v1877_v36 }
 0x2ee   : > { %1970 = vadd.xlane.f32.xlu0 %v6797_v30  ;;  %v6804_v32 = vpop.eup %5737 }
 0x2ef   : > { %1976 = vadd.xlane.f32.xlu1 %v6799_v31  ;;  %5747 = vpow2.f32 %v1922_v42 }
 0x2f1   : > { %v6808_v38 = vpop.eup %5739 }
 0x2f2   : > { %1982 = vadd.xlane.f32.xlu0 %v6804_v32  ;;  %v6811_v44 = vpop.eup %5741 }
 0x2f6   : > { %1978 = vadd.xlane.f32.xlu0 %v6808_v38  ;;  %v6814_v4 = vpop.eup %5743 }
 0x2f7   : > { %v6817_v45 = vpop.eup %5745 }
 0x2f9   : > { %v6820_v6 = vpop.eup %5747 }
 0x2fa   : > { %1988 = vadd.xlane.f32.xlu0 %v6811_v44 }
 0x2fe   : > { %1984 = vadd.xlane.f32.xlu0 %v6814_v4 }
 0x302   : > { %1990 = vadd.xlane.f32.xlu0 %v6817_v45 }
 0x306   : > { %1986 = vadd.xlane.f32.xlu0 %v6820_v6 }
 0x33d   : > { %v1837_v24 = vpop.xlane.xlu1 %1836 }
 0x33e   : > { %v1882_v9 = vsub.f32 %v6696_v20, %v1837_v24 }
 0x33f   : > { %v1839_v47 = vpop.xlane.xlu0 %1838 }
 0x340   : > { %v1932_v49 = vmul.f32 1.442695, %v1882_v9  ;;  %v1883_v34 = vsub.f32 %v6700_v23, %v1839_v47 }
 0x341   : > { %v1833_v33 = vpop.xlane.xlu1 %1832 }
 0x342   : > { %5749 = vpow2.f32 %v1932_v49  ;;  %v1880_v54 = vsub.f32 %v6704_v25, %v1833_v33  ;;  %v1934_v63 = vmul.f32 1.442695, %v1883_v34 }
 0x343   : > { %v1835_v22 = vpop.xlane.xlu0 %1834 }
 0x344   : > { %v1928_v60 = vmul.f32 1.442695, %v1880_v54  ;;  %v1881_v37 = vsub.f32 %v6708_v29, %v1835_v22 }
 0x345   : > { %v1845_v62 = vpop.xlane.xlu1 %1844 }
 0x346   : > { %5751 = vpow2.f32 %v1928_v60  ;;  %v1930_v0 = vmul.f32 1.442695, %v1881_v37  ;;  %v1886_v50 = vsub.f32 %v6712_v35, %v1845_v62 }
 0x347   : > { %v1847_v48 = vpop.xlane.xlu0 %1846 }
 0x348   : > { %5753 = vpow2.f32 %v1930_v0  ;;  %v1940_v20 = vmul.f32 1.442695, %v1886_v50 }
 0x349   : > { %5755 = vpow2.f32 %v1934_v63  ;;  %v1841_v8 = vpop.xlane.xlu1 %1840 }
 0x34a   : > { %5757 = vpow2.f32 %v1940_v20  ;;  %v1884_v33 = vsub.f32 %v6719_v40, %v1841_v8 }
 0x34b   : > { %v1843_v10 = vpop.xlane.xlu0 %1842 }
 0x34c   : > { %v6828_v14 = vpop.eup %5749  ;;  %v1885_v23 = vsub.f32 %v6723_v41, %v1843_v10  ;;  %v1936_v60 = vmul.f32 1.442695, %v1884_v33 }
 0x34d   : > { %1996 = vadd.xlane.f32.xlu1 %v6828_v14  ;;  %v1853_v16 = vpop.xlane.xlu1 %1852 }
 0x34e   : > { %v1938_v25 = vmul.f32 1.442695, %v1885_v23  ;;  %v1890_v20 = vsub.f32 %v6728_v51, %v1853_v16 }
 0x34f   : > { %v6846_v57 = vpop.xlane.xlu0 %1854 }
 0x350   : > { %v6832_v29 = vpop.eup %5751  ;;  %5759 = vpow2.f32 %v1938_v25 }
 0x351   : > { %1992 = vadd.xlane.f32.xlu1 %v6832_v29  ;;  %v6843_v41 = vpop.xlane.xlu1 %1848 }
 0x352   : > { %v6835_v35 = vpop.eup %5753  ;;  %v1888_v51 = vsub.f32 %v6735_v58, %v6843_v41  ;;  %v1891_v41 = vsub.f32 %v6732_v56, %v6846_v57 }
 0x353   : > { %1994 = vadd.xlane.f32.xlu0 %v6835_v35  ;;  %v6838_v17 = vpop.eup %5755  ;;  %v6851_v61 = vpop.xlane.xlu0 %1850 }
 0x354   : > { %v6841_v18 = vpop.eup %5757 }
 0x355   : > { %1998 = vadd.xlane.f32.xlu1 %v6838_v17  ;;  %v1861_v28 = vpop.xlane.xlu1 %1860 }
 0x356   : > { %v1894_v0 = vsub.f32 %v6744_v7, %v1861_v28 }
 0x357   : > { %2004 = vadd.xlane.f32.xlu0 %v6841_v18  ;;  %v6855_v19 = vpop.xlane.xlu0 %1862 }
 0x358   : > { %v1956_v25 = vmul.f32 1.442695, %v1894_v0 }
 0x359   : > { %v6853_v12 = vpop.xlane.xlu1 %1856 }
 0x35a   : > { %v6848_v27 = vpop.eup %5759 }
 0x35b   : > { %2002 = vadd.xlane.f32.xlu0 %v6848_v27  ;;  %v6859_v36 = vpop.xlane.xlu0 %1858 }
 0x366   : > { %1371 = vrot.lane.b32.xlu1 %v6610_v3, %s6133_s0  ;;  %v1887_v3 = vsub.f32 %v6716_v39, %v1847_v48 }
 0x367   : > { %v1965_v1 = vpop.xlane.xlu1 %1964 }
 0x368   : > { %v1942_v63 = vmul.f32 1.442695, %v1887_v3 }
 0x36b   : > { %v1961_v42 = vpop.xlane.xlu1 %1960 }
 0x36f   : > { %v1967_v24 = vpop.xlane.xlu0 %1966 }
 0x370   : > { %v1973_v9 = vpop.xlane.xlu1 %1972  ;;  %5761 = vrcp.f32 %v1967_v24  ;;  %v1944_v24 = vmul.f32 1.442695, %v1888_v51 }
 0x371   : > { %1373 = vrot.lane.b32.xlu0 %v6608_v2, %s6133_s0  ;;  %5763 = vrcp.f32 %v1961_v42  ;;  %v1948_v42 = vmul.f32 1.442695, %v1890_v20  ;;  %s6135_s0 = smov [#allocation5]  }
 0x372   : > { %5765 = vrcp.f32 %v1965_v1  ;;  %s6057_s22 = sshll.u32 %s6135_s0, 4  ;;  %s6058_s22 = int_to_ptr.vmem [resolvable:$false] %s6057_s22 }
 0x373   : > { %v1963_v47 = vpop.xlane.xlu0 %1962  ;;  %s6059_s28 = scalar_lea.vmem %s6058_s22, 4096 }
 0x374   : > { %v1969_v49 = vpop.xlane.xlu1 %1968  ;;  %5767 = vrcp.f32 %v1963_v47 }
 0x377   : > { %v1975_v34 = vpop.xlane.xlu0 %1974 }
 0x378   : > { %v1981_v54 = vpop.xlane.xlu1 %1980  ;;  %5769 = vrcp.f32 %v1975_v34 }
 0x379   : > { %5771 = vrcp.f32 %v1969_v49 }
 0x37a   : > { %v5762_v22 = vpop.eup %5761  ;;  %5773 = vrcp.f32 %v1973_v9  ;;  %v1889_v9 = vsub.f32 %v6739_v59, %v6851_v61 }
 0x37b   : > { %v1971_v37 = vpop.xlane.xlu0 %1970  ;;  %v5764_v62 = vpop.eup %5763  ;;  %v2059_v40 = vmul.f32 %v5762_v22, %v6776_v5 }
 0x37c   : > { %5775 = vrcp.f32 %v1971_v37  ;;  %v5766_v2 = vpop.eup %5765  ;;  %v1977_v39 = vpop.xlane.xlu1 %1976  ;;  %v2056_v8 = vmul.f32 %v5764_v62, %v6771_v55  ;;  %v1946_v59 = vmul.f32 1.442695, %v1889_v9  ;;  %v1892_v37 = vsub.f32 %v6751_v13, %v6853_v12 }
 0x37d   : > { %5777 = vpow2.f32 %v1936_v60  ;;  %v2058_v23 = vmul.f32 %v5766_v2, %v6766_v46  ;;  %v1893_v13 = vsub.f32 %v6755_v15, %v6859_v36 }
 0x37e   : > { %v5768_v50 = vpop.eup %5767  ;;  %5779 = vpow2.f32 %v1942_v63 }
 0x37f   : > { %v1983_v48 = vpop.xlane.xlu0 %1982  ;;  %v2057_v10 = vmul.f32 %v5768_v50, %v6783_v52  ;;  %v2089_v7 = vpack.c.bf16 %v2059_v40, %v2058_v23  ;;  %v1952_v40 = vmul.f32 1.442695, %v1892_v37  ;;  %v1954_v12 = vmul.f32 1.442695, %v1893_v13 }
 0x380   : > { %5781 = vrcp.f32 %v1983_v48 }
 0x381   : > { %v2088_v1 = vpack.c.bf16 %v2057_v10, %v2056_v8  ;;  %5783 = vrcp.f32 %v1977_v39 }
 0x382   : > { %v5770_v28 = vpop.eup %5769  ;;  %5785 = vrcp.f32 %v1981_v54 }
 0x383   : > { %5386 = vmatprep.mubr.bf16.mxu1 %v2088_v1  ;;  %v1979_v5 = vpop.xlane.xlu0 %1978  ;;  %v5772_v16 = vpop.eup %5771  ;;  %v2063_v46 = vmul.f32 %v5770_v28, %v6790_v21 }
 0x384   : > { %5787 = vrcp.f32 %v1979_v5  ;;  %5387 = vmatmul.mubr.bf16.vlgmr.msra.gmra.mrb[32].mxu1 %v2089_v7  ;;  %v5774_v55 = vpop.eup %5773  ;;  %v2060_v49 = vmul.f32 %v5772_v16, %v6785_v53  ;;  %v5632_v5 = vld [vmem:[%s8630_s9 + $0x18] sm:$0xff]  }
 0x385   : > { %5789 = vpow2.f32 %v1956_v25  ;;  %v2062_v33 = vmul.f32 %v5774_v55, %v6778_v43 }
 0x386   : > { %v5776_v52 = vpop.eup %5775  ;;  %5791 = vpow2.f32 %v1948_v42 }
 0x387   : > { %v1989_v47 = vpop.xlane.xlu0 %1988  ;;  %v2061_v58 = vmul.f32 %v5776_v52, %v6797_v30  ;;  %v6881_v34 = vpop.eup %5777  ;;  %v2091_v21 = vpack.c.bf16 %v2063_v46, %v2062_v33  ;;  %5793 = vpow2.f32 %v1944_v24  ;;  %v1950_v30 = vmul.f32 1.442695, %v1891_v41 }
 0x388   : > { %v6883_v54 = vpop.eup %5779  ;;  %5795 = vpow2.f32 %v1946_v59 }
 0x389   : > { %v2090_v3 = vpack.c.bf16 %v2061_v58, %v2060_v49  ;;  %5797 = vpow2.f32 %v1950_v30 }
 0x38a   : > { %2000 = vadd.xlane.f32.xlu1 %v6881_v34  ;;  %v5782_v22 = vpop.eup %5781 }
 0x38b   : > { %5390 = vmatprep.mubr.bf16.mxu1 %v2090_v3  ;;  %v1985_v53 = vpop.xlane.xlu0 %1984  ;;  %v5784_v61 = vpop.eup %5783  ;;  %v2067_v43 = vmul.f32 %v5782_v22, %v6804_v32 }
 0x38c   : > { %5391 = vmatmul.mubr.bf16.gmra.mrb[36].mxu1 %v2091_v21  ;;  %v5786_v60 = vpop.eup %5785  ;;  %v2064_v63 = vmul.f32 %v5784_v61, %v6799_v31 }
 0x38d   : > { %v2066_v50 = vmul.f32 %v5786_v60, %v6792_v26  ;;  %v1895_v26 = vsub.f32 %v6748_v11, %v6855_v19 }
 0x38e   : > { %v5788_v56 = vpop.eup %5787  ;;  %2006 = vadd.xlane.f32.xlu1 %v6883_v54 }
 0x38f   : > { %v6888_v57 = vpop.eup %5789  ;;  %v1991_v62 = vpop.xlane.xlu0 %1990  ;;  %v2065_v2 = vmul.f32 %v5788_v56, %v6808_v38  ;;  %v2093_v20 = vpack.c.bf16 %v2067_v43, %v2066_v50  ;;  %v1958_v36 = vmul.f32 1.442695, %v1895_v26 }
 0x390   : > { %v6894_v0 = vpop.eup %5791  ;;  %2020 = vadd.xlane.f32.xlu0 %v6888_v57  ;;  %5799 = vrcp.f32 %v1991_v62 }
 0x391   : > { %v2092_v32 = vpack.c.bf16 %v2065_v2, %v2064_v63  ;;  %5801 = vrcp.f32 %v1985_v53  ;;  %v6901_v38 = vpop.eup %5793 }
 0x392   : > { %2012 = vadd.xlane.f32.xlu1 %v6894_v0  ;;  %5803 = vrcp.f32 %v1989_v47  ;;  %v6906_v39 = vpop.eup %5795 }
 0x393   : > { %5394 = vmatprep.mubr.bf16.mxu1 %v2092_v32  ;;  %v1987_v31 = vpop.xlane.xlu0 %1986  ;;  %v6908_v48 = vpop.eup %5797 }
 0x394   : > { %5805 = vrcp.f32 %v1987_v31  ;;  %5395 = vmatmul.mubr.bf16.gmra.mrb[40].mxu1 %v2093_v20 }
 0x395   : > { %5807 = vpow2.f32 %v1952_v40 }
 0x396   : > { %2008 = vadd.xlane.f32.xlu1 %v6901_v38  ;;  %5809 = vpow2.f32 %v1954_v12 }
 0x397   : > { %5811 = vpow2.f32 %v1958_v36 }
 0x39a   : > { %2010 = vadd.xlane.f32.xlu1 %v6906_v39  ;;  %v5800_v15 = vpop.eup %5799 }
 0x39b   : > { %v5802_v8 = vpop.eup %5801  ;;  %v2071_v25 = vmul.f32 %v5800_v15, %v6817_v45 }
 0x39c   : > { %v5804_v10 = vpop.eup %5803  ;;  %v2068_v11 = vmul.f32 %v5802_v8, %v6814_v4  ;;  %v5630_v4 = vld [vmem:[%s8630_s9 + $0x8] sm:$0xff]  }
 0x39d   : > { %v2070_v1 = vmul.f32 %v5804_v10, %v6811_v44  ;;  %v5629_v44 = vld [vmem:[%s8630_s9] sm:$0xff]  }
 0x39e   : > { %v5806_v23 = vpop.eup %5805  ;;  %2014 = vadd.xlane.f32.xlu1 %v6908_v48  ;;  %5434 = vmatprep.subr.bf16.mxu1 %v5629_v44 }
 0x39f   : > { %v2069_v19 = vmul.f32 %v5806_v23, %v6820_v6  ;;  %v6916_v42 = vpop.eup %5807  ;;  %v2095_v28 = vpack.c.bf16 %v2071_v25, %v2070_v1  ;;  %5435 = vmatpush3.bf16.msra.mxu1 %v5629_v44  ;;  %v5631_v6 = vld [vmem:[%s8630_s9 + $0x10] sm:$0xff]  }
 0x3a0   : > { %v6919_v51 = vpop.eup %5809  ;;  %5436 = vmatprep.subr.bf16.mxu1 %v5630_v4 }
 0x3a1   : > { %v2094_v7 = vpack.c.bf16 %v2069_v19, %v2068_v11  ;;  %v6922_v45 = vpop.eup %5811 }
 0x3a2   : > { %2016 = vadd.xlane.f32.xlu1 %v6916_v42 }
 0x3a3   : > { %5398 = vmatprep.mubr.bf16.mxu1 %v2094_v7  ;;  %5437 = vmatpush3.bf16.msra.mxu1 %v5630_v4 }
 0x3a4   : > { %5399 = vmatmul.mubr.bf16.gmra.mrb[44].mxu1 %v2095_v28  ;;  %5438 = vmatprep.subr.bf16.mxu1 %v5631_v6 }
 0x3a6   : > { %2018 = vadd.xlane.f32.xlu1 %v6919_v51 }
 0x3a7   : > { %5439 = vmatpush3.bf16.msra.mxu1 %v5631_v6 }
 0x3a8   : > { %5440 = vmatprep.subr.bf16.mxu1 %v5632_v5 }
 0x3aa   : > { %2022 = vadd.xlane.f32.xlu1 %v6922_v45 }
 0x3ab   : > { %5441 = vmatpush3.bf16.msra.mxu1 %v5632_v5 }
 0x3da   : > { %v1997_v16 = vpop.xlane.xlu1 %1996 }
 0x3de   : > { %v1993_v55 = vpop.xlane.xlu1 %1992 }
 0x3df   : > { %5813 = vrcp.f32 %v1993_v55 }
 0x3e0   : > { %v1995_v52 = vpop.xlane.xlu0 %1994 }
 0x3e1   : > { %5815 = vrcp.f32 %v1995_v52 }
 0x3e2   : > { %v1999_v46 = vpop.xlane.xlu1 %1998 }
 0x3e3   : > { %5817 = vrcp.f32 %v1999_v46 }
 0x3e4   : > { %v2005_v24 = vpop.xlane.xlu0 %2004  ;;  %5819 = vrcp.f32 %v1997_v16 }
 0x3e6   : > { %v1372_v9 = vpop.permute.xlu1 %1371 }
 0x3e7   : > { %1390 = vst.msk [vmem:[#allocation4 + $0x70] sm:$0xff] %vm1228_vm0, %v1372_v9 }
 0x3e8   : > { %v2003_v47 = vpop.xlane.xlu0 %2002 }
 0x3e9   : > { %v5814_v49 = vpop.eup %5813  ;;  %5821 = vrcp.f32 %v2003_v47 }
 0x3ea   : > { %v2072_v33 = vmul.f32 %v5814_v49, %v6832_v29  ;;  %v6946_v29 = vld [vmem:[%s8630_s9 + $0x20] sm:$0xff]  }
 0x3eb   : > { %v5816_v58 = vpop.eup %5815  ;;  %5458 = vmatprep.subr.bf16.mxu1 %v6946_v29 }
 0x3ec   : > { %v1374_v41 = vpop.permute.xlu0 %1373  ;;  %v2073_v3 = vmul.f32 %v5816_v58, %v6835_v35 }
 0x3ed   : > { %1391 = vst.msk [vmem:[#allocation4 + $0x78] sm:$0xff] %vm1228_vm0, %v1374_v41  ;;  %v5818_v59 = vpop.eup %5817 }
 0x3ee   : > { %v1438_v21 = vld [vmem:[#allocation4 + $0x70] sm:$0xff]  ;;  %v2096_v22 = vpack.c.bf16 %v2073_v3, %v2072_v33  ;;  %v5820_v53 = vpop.eup %5819  ;;  %v2075_v61 = vmul.f32 %v5818_v59, %v6838_v17  ;;  %v5636_v3 = vld [vmem:[%s8630_s9 + $0x38] sm:$0xff]  }
 0x3ef   : > { %5414 = vmatprep.subr.bf16.mxu0 %v1438_v21  ;;  %v2074_v60 = vmul.f32 %v5820_v53, %v6828_v14 }
 0x3f0   : > { %5415 = vmatpush3.bf16.msra.mxu0 %v1438_v21  ;;  %5418 = vmatprep.mubr.bf16.mxu0 %v2096_v22 }
 0x3f1   : > { %v2097_v56 = vpack.c.bf16 %v2075_v61, %v2074_v60 }
 0x3f3   : > { %v5822_v37 = vpop.eup %5821 }
 0x3f4   : > { %v1439_v30 = vld [vmem:[#allocation4 + $0x78] sm:$0xff]  ;;  %v2077_v2 = vmul.f32 %v5822_v37, %v6848_v27 }
 0x3f5   : > { %5416 = vmatprep.subr.bf16.mxu0 %v1439_v30 }
 0x3f6   : > { %5417 = vmatpush3.bf16.msra.mxu0 %v1439_v30 }
 0x3f9   : > { %5419 = vmatmul.mubr.bf16.vlgmr.msra.gmra.mrb[48].mxu0 %v2097_v56 }
 0x417   : > { %v2001_v35 = vpop.xlane.xlu1 %2000 }
 0x418   : > { %5823 = vrcp.f32 %v2001_v35 }
 0x419   : > { %5825 = vrcp.f32 %v2005_v24 }
 0x41b   : > { %v2007_v43 = vpop.xlane.xlu1 %2006 }
 0x41c   : > { %5827 = vrcp.f32 %v2007_v43 }
 0x41d   : > { %v2021_v27 = vpop.xlane.xlu0 %2020 }
 0x41f   : > { %v2013_v17 = vpop.xlane.xlu1 %2012 }
 0x422   : > { %v5824_v14 = vpop.eup %5823 }
 0x423   : > { %v2009_v62 = vpop.xlane.xlu1 %2008  ;;  %v2076_v63 = vmul.f32 %v5824_v14, %v6881_v34  ;;  %v5826_v50 = vpop.eup %5825 }
 0x424   : > { %5829 = vrcp.f32 %v2009_v62  ;;  %v2078_v13 = vmul.f32 %v5826_v50, %v6841_v18 }
 0x425   : > { %v2098_v32 = vpack.c.bf16 %v2077_v2, %v2076_v63 }
 0x426   : > { %v5828_v20 = vpop.eup %5827 }
 0x427   : > { %v2011_v40 = vpop.xlane.xlu1 %2010  ;;  %5422 = vmatprep.mubr.bf16.mxu0 %v2098_v32  ;;  %v2079_v31 = vmul.f32 %v5828_v20, %v6883_v54 }
 0x428   : > { %5831 = vrcp.f32 %v2011_v40 }
 0x429   : > { %v2099_v26 = vpack.c.bf16 %v2079_v31, %v2078_v13  ;;  %5833 = vrcp.f32 %v2013_v17 }
 0x42b   : > { %v2015_v12 = vpop.xlane.xlu1 %2014  ;;  %5423 = vmatmul.mubr.bf16.gmra.mrb[52].mxu0 %v2099_v26 }
 0x42c   : > { %5835 = vrcp.f32 %v2015_v12 }
 0x42e   : > { %v5830_v34 = vpop.eup %5829 }
 0x42f   : > { %v2017_v15 = vpop.xlane.xlu1 %2016  ;;  %v2080_v10 = vmul.f32 %v5830_v34, %v6901_v38 }
 0x430   : > { %5837 = vrcp.f32 %v2017_v15 }
 0x432   : > { %v5832_v36 = vpop.eup %5831 }
 0x433   : > { %v2019_v8 = vpop.xlane.xlu1 %2018  ;;  %v2081_v23 = vmul.f32 %v5832_v36, %v6906_v39  ;;  %v5834_v25 = vpop.eup %5833 }
 0x434   : > { %5839 = vrcp.f32 %v2019_v8  ;;  %v2082_v19 = vmul.f32 %v5834_v25, %v6894_v0 }
 0x435   : > { %v2100_v18 = vpack.c.bf16 %v2081_v23, %v2080_v10  ;;  %5841 = vrcp.f32 %v2021_v27 }
 0x436   : > { %v5836_v54 = vpop.eup %5835 }
 0x437   : > { %v2023_v11 = vpop.xlane.xlu1 %2022  ;;  %5426 = vmatprep.mubr.bf16.mxu0 %v2100_v18  ;;  %v2083_v1 = vmul.f32 %v5836_v54, %v6908_v48 }
 0x438   : > { %5843 = vrcp.f32 %v2023_v11 }
 0x439   : > { %v2101_v7 = vpack.c.bf16 %v2083_v1, %v2082_v19  ;;  %v6990_v19 = vld [vmem:[%s8631_s10] ss:$0 sm:$0xff] }
 0x43a   : > { %v5838_v28 = vpop.eup %5837  ;;  %v6037_v1 = vld [vmem:[%s6338_s3] sm:$0xff] }
 0x43b   : > { %5427 = vmatmul.mubr.bf16.gmra.mrb[56].mxu0 %v2101_v7  ;;  %v2084_v38 = vmul.f32 %v5838_v28, %v6916_v42  ;;  %v5634_v42 = vld [vmem:[%s8630_s9 + $0x28] sm:$0xff]   ;;  %v2305_v7 = vadd.f32 %v6037_v1, %v6990_v19 }
 0x43c   : > { %v6038_v28 = vld [vmem:[%s6338_s3 + $0x8] sm:$0xff] }
 0x43e   : > { %v5840_v44 = vpop.eup %5839 }
 0x43f   : > { %v2085_v39 = vmul.f32 %v5840_v44, %v6919_v51  ;;  %v5842_v4 = vpop.eup %5841  ;;  %v2306_v44 = vadd.f32 %v6038_v28, %v6990_v19  ;;  %v5640_v28 = vld [vmem:[%s8634_s13 + $0x8] ss:$16 sps:$4 sm:$0xff]  }
 0x440   : > { %v2086_v16 = vmul.f32 %v5842_v4, %v6888_v57 }
 0x441   : > { %v2102_v6 = vpack.c.bf16 %v2085_v39, %v2084_v38 }
 0x442   : > { %v5844_v5 = vpop.eup %5843 }
 0x443   : > { %5430 = vmatprep.mubr.bf16.mxu0 %v2102_v6  ;;  %v2087_v55 = vmul.f32 %v5844_v5, %v6922_v45  ;;  %v5635_v45 = vld [vmem:[%s8630_s9 + $0x30] sm:$0xff]  }
 0x445   : > { %v2103_v0 = vpack.c.bf16 %v2087_v55, %v2086_v16  ;;  %v6039_v55 = vld [vmem:[%s6338_s3 + $0x10] sm:$0xff] }
 0x447   : > { %5431 = vmatmul.mubr.bf16.gmra.mrb[60].mxu0 %v2103_v0  ;;  %v2307_v0 = vadd.f32 %v6039_v55, %v6990_v19 }
 0x457   : > { %v5388_v48 = vpop.f32.mrb[32].mxu1 }
 0x458   : > { %v2138_v52 = vpop.f32.mrb[33].mxu1 }
 0x459   : > { %v5389_v46 = vpop.f32.mrb[34].mxu1 }
 0x45a   : > { %v2322_v24 = vpack.c.bf16 %v5389_v46, %v5388_v48  ;;  %v2141_v9 = vpop.f32.mrb[35].mxu1 }
 0x45b   : > { %v2321_v47 = vpack.c.bf16 %v2141_v9, %v2138_v52  ;;  %v6040_v52 = vld [vmem:[%s6338_s3 + $0x18] sm:$0xff]  ;;  %v6041_v9 = vld [vmem:[%s6338_s3 + $0x30] sm:$0xff] }
 0x45c   : > { %v2308_v46 = vadd.f32 %v6040_v52, %v6990_v19 }
 0x45d   : > { %5442 = vmatprep.mubr.msk.bf16.mxu1 %vm1228_vm0, %v2321_v47  ;;  %v2311_v47 = vadd.f32 %v6041_v9, %v6990_v19 }
 0x45e   : > { %5443 = vmatmul.mubr.msk.bf16.vlgmr.msra.gmra.mrb[48].mxu1 %vm1228_vm0, %v2322_v24 }
 0x45f   : > { %v5392_v51 = vpop.f32.mrb[36].mxu1  ;;  %5459 = vmatpush3.bf16.msra.mxu1 %v6946_v29 }
 0x460   : > { %v2154_v57 = vpop.f32.mrb[37].mxu1  ;;  %5460 = vmatprep.subr.bf16.mxu1 %v5634_v42 }
 0x461   : > { %v5393_v49 = vpop.f32.mrb[38].mxu1 }
 0x462   : > { %v2324_v58 = vpack.c.bf16 %v5393_v49, %v5392_v51  ;;  %v2157_v41 = vpop.f32.mrb[39].mxu1 }
 0x463   : > { %v2323_v33 = vpack.c.bf16 %v2157_v41, %v2154_v57  ;;  %5461 = vmatpush3.bf16.msra.mxu1 %v5634_v42  ;;  %v6042_v42 = vld [vmem:[%s6338_s3 + $0x20] sm:$0xff] }
 0x464   : > { %5462 = vmatprep.subr.bf16.mxu1 %v5635_v45  ;;  %v2309_v51 = vadd.f32 %v6042_v42, %v6990_v19 }
 0x465   : > { %5446 = vmatprep.mubr.msk.bf16.mxu1 %vm1228_vm0, %v2323_v33  ;;  %v6043_v33 = vld [vmem:[%s6338_s3 + $0x28] sm:$0xff] }
 0x466   : > { %5447 = vmatmul.mubr.msk.bf16.gmra.mrb[52].mxu1 %vm1228_vm0, %v2324_v58 }
 0x467   : > { %v5396_v21 = vpop.f32.mrb[40].mxu1  ;;  %5463 = vmatpush3.bf16.msra.mxu1 %v5635_v45 }
 0x468   : > { %v2170_v22 = vpop.f32.mrb[41].mxu1  ;;  %5464 = vmatprep.subr.bf16.mxu1 %v5636_v3 }
 0x469   : > { %v5397_v59 = vpop.f32.mrb[42].mxu1 }
 0x46a   : > { %v2326_v53 = vpack.c.bf16 %v5397_v59, %v5396_v21  ;;  %v2173_v61 = vpop.f32.mrb[43].mxu1 }
 0x46b   : > { %v2325_v30 = vpack.c.bf16 %v2173_v61, %v2170_v22  ;;  %5465 = vmatpush3.bf16.msra.mxu1 %v5636_v3  ;;  %v2310_v3 = vadd.f32 %v6043_v33, %v6990_v19  ;;  %v6044_v22 = vld [vmem:[%s6338_s3 + $0x38] sm:$0xff] }
 0x46c   : > { %v2312_v59 = vadd.f32 %v6044_v22, %v6990_v19  ;;  %v5651_v22 = vld [vmem:[%s8634_s13 + $0x44] ss:$16 sps:$4 sm:$0xff]  }
 0x46d   : > { %5450 = vmatprep.mubr.msk.bf16.mxu1 %vm1228_vm0, %v2325_v30  ;;  %v6045_v30 = vld [vmem:[%s6338_s3 + $0x40] sm:$0xff] }
 0x46e   : > { %5451 = vmatmul.mubr.msk.bf16.gmra.mrb[56].mxu1 %vm1228_vm0, %v2326_v53 }
 0x477   : > { %v5400_v60 = vpop.f32.mrb[44].mxu1 }
 0x478   : > { %v2186_v56 = vpop.f32.mrb[45].mxu1 }
 0x479   : > { %v5401_v29 = vpop.f32.mrb[46].mxu1 }
 0x47a   : > { %v2328_v35 = vpack.c.bf16 %v5401_v29, %v5400_v60  ;;  %v2189_v43 = vpop.f32.mrb[47].mxu1  ;;  %v2313_v60 = vadd.f32 %v6045_v30, %v6990_v19  ;;  %v6046_v29 = vld [vmem:[%s6338_s3 + $0x48] sm:$0xff]  ;;  %v5657_v30 = vld [vmem:[%s8634_s13 + $0x64] ss:$16 sps:$4 sm:$0xff]  }
 0x47b   : > { %v2327_v17 = vpack.c.bf16 %v2189_v43, %v2186_v56 }
 0x47d   : > { %5454 = vmatprep.mubr.msk.bf16.mxu1 %vm1228_vm0, %v2327_v17  ;;  %v6047_v17 = vld [vmem:[%s6338_s3 + $0x50] sm:$0xff] }
 0x47e   : > { %5455 = vmatmul.mubr.msk.bf16.gmra.mrb[60].mxu1 %vm1228_vm0, %v2328_v35  ;;  %v2314_v35 = vadd.f32 %v6046_v29, %v6990_v19  ;;  %v5658_v29 = vld [vmem:[%s8634_s13 + $0x68] ss:$16 sps:$4 sm:$0xff]  }
 0x4cc   : > { %v5420_v37 = vpop.f32.mrb[48].mxu0 }
 0x4cd   : > { %v2235_v14 = vpop.f32.mrb[49].mxu0 }
 0x4ce   : > { %v5421_v62 = vpop.f32.mrb[50].mxu0 }
 0x4cf   : > { %v2499_v63 = vpack.c.bf16 %v5421_v62, %v5420_v37  ;;  %v2238_v2 = vpop.f32.mrb[51].mxu0  ;;  %v2315_v37 = vadd.f32 %v6047_v17, %v6990_v19  ;;  %v5661_v17 = vld [vmem:[%s8634_s13 + $0x80] ss:$16 sps:$4 sm:$0xff]  }
 0x4d0   : > { %v2498_v50 = vpack.c.bf16 %v2238_v2, %v2235_v14  ;;  %v6048_v2 = vld [vmem:[%s6338_s3 + $0x58] sm:$0xff] }
 0x4d2   : > { %5466 = vmatprep.mubr.msk.bf16.mxu1 %vm1228_vm0, %v2498_v50  ;;  %v2316_v50 = vadd.f32 %v6048_v2, %v6990_v19  ;;  %v5667_v2 = vld [vmem:[%s8634_s13 + $0xa0] ss:$16 sps:$4 sm:$0xff]  }
 0x4d3   : > { %5467 = vmatmul.mubr.msk.bf16.vlgmr.msra.gmra.mrb[48].mxu1 %vm1228_vm0, %v2499_v63 }
 0x4fe   : > { %v5424_v32 = vpop.f32.mrb[52].mxu0 }
 0x4ff   : > { %v2251_v20 = vpop.f32.mrb[53].mxu0 }
 0x500   : > { %v5425_v40 = vpop.f32.mrb[54].mxu0 }
 0x501   : > { %v2501_v13 = vpack.c.bf16 %v5425_v40, %v5424_v32  ;;  %v2254_v31 = vpop.f32.mrb[55].mxu0 }
 0x502   : > { %v2500_v26 = vpack.c.bf16 %v2254_v31, %v2251_v20 }
 0x504   : > { %5470 = vmatprep.mubr.msk.bf16.mxu1 %vm1228_vm0, %v2500_v26 }
 0x505   : > { %5471 = vmatmul.mubr.msk.bf16.gmra.mrb[52].mxu1 %vm1228_vm0, %v2501_v13  ;;  %v6049_v13 = vld [vmem:[%s6338_s3 + $0x60] sm:$0xff] }
 0x506   : > { %v2317_v31 = vadd.f32 %v6049_v13, %v6990_v19  ;;  %v5675_v13 = vld [vmem:[%s8634_s13 + $0xc4] ss:$16 sps:$4 sm:$0xff]  }
 0x50e   : > { %v5428_v12 = vpop.f32.mrb[56].mxu0 }
 0x50f   : > { %v2267_v15 = vpop.f32.mrb[57].mxu0 }
 0x510   : > { %v5429_v34 = vpop.f32.mrb[58].mxu0 }
 0x511   : > { %v2503_v36 = vpack.c.bf16 %v5429_v34, %v5428_v12  ;;  %v2270_v27 = vpop.f32.mrb[59].mxu0  ;;  %v6050_v12 = vld [vmem:[%s6338_s3 + $0x68] sm:$0xff] }
 0x512   : > { %v2502_v8 = vpack.c.bf16 %v2270_v27, %v2267_v15  ;;  %v2318_v15 = vadd.f32 %v6050_v12, %v6990_v19  ;;  %v5676_v12 = vld [vmem:[%s8634_s13 + $0xc8] ss:$16 sps:$4 sm:$0xff]  }
 0x514   : > { %5474 = vmatprep.mubr.msk.bf16.mxu1 %vm1228_vm0, %v2502_v8 }
 0x515   : > { %5475 = vmatmul.mubr.msk.bf16.gmra.mrb[56].mxu1 %vm1228_vm0, %v2503_v36  ;;  %v6051_v36 = vld [vmem:[%s6338_s3 + $0x70] sm:$0xff] }
 0x516   : > { %v2319_v27 = vadd.f32 %v6051_v36, %v6990_v19  ;;  %v5682_v36 = vld [vmem:[%s8634_s13 + $0xe8] ss:$16 sps:$4 sm:$0xff]  }
 0x51a   : > { %v5432_v10 = vpop.f32.mrb[60].mxu0 }
 0x51b   : > { %v2283_v23 = vpop.f32.mrb[61].mxu0 }
 0x51c   : > { %v5433_v25 = vpop.f32.mrb[62].mxu0 }
 0x51d   : > { %v2505_v18 = vpack.c.bf16 %v5433_v25, %v5432_v10  ;;  %v2286_v54 = vpop.f32.mrb[63].mxu0  ;;  %v6052_v25 = vld [vmem:[%s6338_s3 + $0x78] sm:$0xff]  ;;  %s4682_s3 = sshll.u32 %s8503_s19, 4  ;;  %s8568_s3 = int_to_ptr.vmem [resolvable:$true] %s4682_s3 }
 0x51e   : > { %v2504_v11 = vpack.c.bf16 %v2286_v54, %v2283_v23  ;;  %s6053_s2 = scalar_lea.vmem %s8568_s3, 2048  ;;  %p6060_p1 = scmp.lt.s32.totalorder %s8568_s3, %s6058_s22 }
 0x51f   : > { %p6054_p12 = scmp.ne.s32.totalorder %s8568_s3, %s6053_s2  ;;  %p6061_p2 = scmp.lt.s32.totalorder %s6059_s28, %s6053_s2 }
 0x520   : > { %5478 = vmatprep.mubr.msk.bf16.mxu1 %vm1228_vm0, %v2504_v11 }
 0x521   : > { %5479 = vmatmul.mubr.msk.bf16.gmra.mrb[60].mxu1 %vm1228_vm0, %v2505_v18  ;;  %v2320_v18 = vadd.f32 %v6052_v25, %v6990_v19  ;;  %v5639_v19 = vld [vmem:[%s8634_s13 + $0x4] ss:$16 sps:$4 sm:$0xff]   ;;  %p6055_p13 = pnand %p6054_p12, %p6278_p4  ;;  %p6062_p3 = por %p6061_p2, %p6060_p1 }
 0x522   : > { %3121 = vmatprep.subr.bf16.mxu0 %v5639_v19 }
 0x523   : > { %p6056_p0 = pneg %p6055_p13 }
 0x525   : > { %p6063_p5 = pnand %p6062_p3, %p6056_p0 }
 0x5a6   : > { %v5468_v38 = vpop.f32.mrb[48].mxu1 }
 0x5a7   : > { %v2597_v39 = vpop.f32.mrb[49].mxu1  ;;  %v7004_v48 = vadd.f32 %v5468_v38, %v2307_v0  ;;  %v5645_v38 = vld [vmem:[%s8634_s13 + $0x24] ss:$16 sps:$4 sm:$0xff]  }
 0x5a8   : > { %v6996_v4 = vadd.f32 %v2597_v39, %v2305_v7  ;;  %v5469_v6 = vpop.f32.mrb[50].mxu1  ;;  %v5637_v7 = vld [vmem:[%s8634_s13] ss:$16 sps:$4 sm:$0xff]   ;;  %v5648_v39 = vld [vmem:[%s8634_s13 + $0x2c] ss:$16 sps:$4 sm:$0xff]  }
 0x5a9   : > { %v2600_v5 = vpop.f32.mrb[51].mxu1  ;;  %v7009_v24 = vadd.f32 %v5469_v6, %v2308_v46  ;;  %3122 = vmatpush1.bf16.msra.mxu0 %v5637_v7  ;;  %v5643_v6 = vld [vmem:[%s8634_s13 + $0x20] ss:$16 sps:$4 sm:$0xff]  }
 0x5aa   : > { %v6998_v16 = vadd.f32 %v2600_v5, %v2306_v44  ;;  %2678 = vadd.xlane.f32.xlu1 %v6996_v4  ;;  %v5642_v44 = vld [vmem:[%s8634_s13 + $0xc] ss:$16 sps:$4 sm:$0xff]   ;;  %3123 = vmatprep.subr.bf16.mxu0 %v5645_v38  ;;  %v5646_v5 = vld [vmem:[%s8634_s13 + $0x28] ss:$16 sps:$4 sm:$0xff]  }
 0x5ab   : > { %3234 = vmatprep.subr.bf16.mxu1 %v5642_v44 }
 0x5ac   : > { %3235 = vmatpush1.bf16.msra.mxu1 %v5640_v28 }
 0x5ad   : > { %3236 = vmatprep.subr.bf16.mxu1 %v5648_v39  ;;  %3124 = vmatpush1.bf16.msra.mxu0 %v5643_v6 }
 0x5ae   : > { %2680 = vadd.xlane.f32.xlu1 %v6998_v16  ;;  %3125 = vmatprep.subr.bf16.mxu0 %v5651_v22 }
 0x5b0   : > { %3237 = vmatpush1.bf16.msra.mxu1 %v5646_v5 }
 0x5b2   : > { %2682 = vadd.xlane.f32.xlu1 %v7004_v48 }
 0x5b6   : > { %2684 = vadd.xlane.f32.xlu1 %v7009_v24 }
 0x5d8   : > { %v5472_v57 = vpop.f32.mrb[52].mxu1 }
 0x5d9   : > { %v7016_v45 = vadd.f32 %v5472_v57, %v2311_v47  ;;  %v2613_v49 = vpop.f32.mrb[53].mxu1 }
 0x5da   : > { %v7018_v58 = vadd.f32 %v2613_v49, %v2309_v51  ;;  %v5473_v41 = vpop.f32.mrb[54].mxu1 }
 0x5db   : > { %2690 = vadd.xlane.f32.xlu0 %v7016_v45  ;;  %v2616_v21 = vpop.f32.mrb[55].mxu1  ;;  %v7029_v61 = vadd.f32 %v5473_v41, %v2312_v59  ;;  %v5649_v59 = vld [vmem:[%s8634_s13 + $0x40] ss:$16 sps:$4 sm:$0xff]  }
 0x5dc   : > { %2686 = vadd.xlane.f32.xlu1 %v7018_v58  ;;  %v7026_v53 = vadd.f32 %v2616_v21, %v2310_v3  ;;  %3126 = vmatpush1.bf16.msra.mxu0 %v5649_v59 }
 0x5dd   : > { %3127 = vmatprep.subr.bf16.mxu0 %v5657_v30 }
 0x5e0   : > { %2688 = vadd.xlane.f32.xlu1 %v7026_v53 }
 0x5e4   : > { %2692 = vadd.xlane.f32.xlu1 %v7029_v61 }
 0x5e8   : > { %v5476_v56 = vpop.f32.mrb[56].mxu1 }
 0x5e9   : > { %v2629_v43 = vpop.f32.mrb[57].mxu1  ;;  %v7045_v20 = vadd.f32 %v5476_v56, %v2315_v37  ;;  %v5655_v56 = vld [vmem:[%s8634_s13 + $0x60] ss:$16 sps:$4 sm:$0xff]   ;;  %v5664_v37 = vld [vmem:[%s8634_s13 + $0x88] ss:$16 sps:$4 sm:$0xff]  }
 0x5ea   : > { %v7038_v14 = vadd.f32 %v2629_v43, %v2313_v60  ;;  %v5477_v62 = vpop.f32.mrb[58].mxu1  ;;  %v5660_v60 = vld [vmem:[%s8634_s13 + $0x6c] ss:$16 sps:$4 sm:$0xff]   ;;  %3128 = vmatpush1.bf16.msra.mxu0 %v5655_v56 }
 0x5eb   : > { %v2632_v63 = vpop.f32.mrb[59].mxu1  ;;  %v7048_v40 = vadd.f32 %v5477_v62, %v2316_v50  ;;  %v5666_v43 = vld [vmem:[%s8634_s13 + $0x8c] ss:$16 sps:$4 sm:$0xff]   ;;  %v5669_v62 = vld [vmem:[%s8634_s13 + $0xa4] ss:$16 sps:$4 sm:$0xff]  }
 0x5ec   : > { %v7042_v32 = vadd.f32 %v2632_v63, %v2314_v35  ;;  %2694 = vadd.xlane.f32.xlu0 %v7038_v14  ;;  %v5663_v35 = vld [vmem:[%s8634_s13 + $0x84] ss:$16 sps:$4 sm:$0xff]   ;;  %v5672_v63 = vld [vmem:[%s8634_s13 + $0xac] ss:$16 sps:$4 sm:$0xff]   ;;  %v5670_v50 = vld [vmem:[%s8634_s13 + $0xa8] ss:$16 sps:$4 sm:$0xff]  }
 0x5ed   : > { %3129 = vmatprep.subr.bf16.mxu0 %v5663_v35 }
 0x5ee   : > { %2696 = vadd.xlane.f32.xlu1 %v7042_v32  ;;  %3130 = vmatpush1.bf16.msra.mxu0 %v5661_v17 }
 0x5ef   : > { %3131 = vmatprep.subr.bf16.mxu0 %v5669_v62 }
 0x5f0   : > { %2698 = vadd.xlane.f32.xlu0 %v7045_v20 }
 0x5f2   : > { %2700 = vadd.xlane.f32.xlu1 %v7048_v40  ;;  %3132 = vmatpush1.bf16.msra.mxu0 %v5667_v2 }
 0x5f3   : > { %3133 = vmatprep.subr.bf16.mxu0 %v5675_v13 }
 0x5f4   : > { %v5480_v26 = vpop.f32.mrb[60].mxu1 }
 0x5f5   : > { %v2645_v34 = vpop.f32.mrb[61].mxu1  ;;  %v7065_v11 = vadd.f32 %v5480_v26, %v2319_v27  ;;  %v5673_v26 = vld [vmem:[%s8634_s13 + $0xc0] ss:$16 sps:$4 sm:$0xff]   ;;  %v5684_v27 = vld [vmem:[%s8634_s13 + $0xec] ss:$16 sps:$4 sm:$0xff]  }
 0x5f6   : > { %v7058_v8 = vadd.f32 %v2645_v34, %v2317_v31  ;;  %v5481_v10 = vpop.f32.mrb[62].mxu1  ;;  %v5678_v31 = vld [vmem:[%s8634_s13 + $0xcc] ss:$16 sps:$4 sm:$0xff]   ;;  %3134 = vmatpush1.bf16.msra.mxu0 %v5673_v26  ;;  %v5681_v34 = vld [vmem:[%s8634_s13 + $0xe4] ss:$16 sps:$4 sm:$0xff]  }
 0x5f7   : > { %v2648_v23 = vpop.f32.mrb[63].mxu1  ;;  %v7068_v1 = vadd.f32 %v5481_v10, %v2320_v18  ;;  %3135 = vmatprep.subr.bf16.mxu0 %v5681_v34  ;;  %v6134_v10 = vmov 0  }
 0x5f8   : > { %v7062_v54 = vadd.f32 %v2648_v23, %v2318_v15  ;;  %2702 = vadd.xlane.f32.xlu0 %v7058_v8  ;;  %v5679_v15 = vld [vmem:[%s8634_s13 + $0xe0] ss:$16 sps:$4 sm:$0xff]   ;;  %3153 = vmatprep.mubr.bf16.mxu0 %v6134_v10 }
 0x5f9   : > { %3266 = vmatprep.mubr.bf16.mxu1 %v6134_v10 }
 0x5fa   : > { %2704 = vadd.xlane.f32.xlu1 %v7062_v54  ;;  %3136 = vmatpush1.bf16.msra.mxu0 %v5679_v15 }
 0x5fc   : > { %2706 = vadd.xlane.f32.xlu0 %v7065_v11 }
 0x5fe   : > { %2708 = vadd.xlane.f32.xlu1 %v7068_v1 }
 0x637   : > { %v2679_v55 = vpop.xlane.xlu1 %2678 }
 0x638   : > { %v2711_v0 = vmul.f32 0.0078125, %v2679_v55 }
 0x63a   : > { %v7097_v52 = vsub.f32 %v6996_v4, %v2711_v0 }
 0x63b   : > { %v2681_v46 = vpop.xlane.xlu1 %2680 }
 0x63c   : > { %v2712_v9 = vmul.f32 0.0078125, %v2681_v46  ;;  %v2743_v47 = vmul.f32 %v7097_v52, %v7097_v52 }
 0x63e   : > { %v7102_v42 = vsub.f32 %v6998_v16, %v2712_v9  ;;  %2759 = vadd.xlane.f32.xlu0 %v2743_v47 }
 0x63f   : > { %v2683_v51 = vpop.xlane.xlu1 %2682 }
 0x640   : > { %v2713_v57 = vmul.f32 0.0078125, %v2683_v51  ;;  %v2744_v49 = vmul.f32 %v7102_v42, %v7102_v42 }
 0x642   : > { %v7107_v41 = vsub.f32 %v7004_v48, %v2713_v57  ;;  %2761 = vadd.xlane.f32.xlu1 %v2744_v49  ;;  %v5654_v48 = vld [vmem:[%s8634_s13 + $0x4c] ss:$16 sps:$4 sm:$0xff]  }
 0x643   : > { %v2685_v4 = vpop.xlane.xlu1 %2684  ;;  %3238 = vmatprep.subr.bf16.mxu1 %v5654_v48 }
 0x644   : > { %v2714_v33 = vmul.f32 0.0078125, %v2685_v4  ;;  %v2745_v3 = vmul.f32 %v7107_v41, %v7107_v41 }
 0x646   : > { %v7112_v21 = vsub.f32 %v7009_v24, %v2714_v33  ;;  %2763 = vadd.xlane.f32.xlu0 %v2745_v3  ;;  %v5652_v24 = vld [vmem:[%s8634_s13 + $0x48] ss:$16 sps:$4 sm:$0xff]  }
 0x647   : > { %3239 = vmatpush1.bf16.msra.mxu1 %v5652_v24 }
 0x648   : > { %v2746_v16 = vmul.f32 %v7112_v21, %v7112_v21  ;;  %3240 = vmatprep.subr.bf16.mxu1 %v5660_v60 }
 0x64a   : > { %2765 = vadd.xlane.f32.xlu1 %v2746_v16 }
 0x64b   : > { %3241 = vmatpush1.bf16.msra.mxu1 %v5658_v29 }
 0x64c   : > { %3242 = vmatprep.subr.bf16.mxu1 %v5666_v43 }
 0x64f   : > { %3243 = vmatpush1.bf16.msra.mxu1 %v5664_v37 }
 0x650   : > { %3244 = vmatprep.subr.bf16.mxu1 %v5672_v63 }
 0x653   : > { %3245 = vmatpush1.bf16.msra.mxu1 %v5670_v50 }
 0x654   : > { %3246 = vmatprep.subr.bf16.mxu1 %v5678_v31 }
 0x657   : > { %3247 = vmatpush1.bf16.msra.mxu1 %v5676_v12 }
 0x658   : > { %3248 = vmatprep.subr.bf16.mxu1 %v5684_v27 }
 0x65b   : > { %3249 = vmatpush1.bf16.msra.mxu1 %v5682_v36 }
 0x668   : > { %v2691_v23 = vpop.xlane.xlu0 %2690 }
 0x669   : > { %v2687_v25 = vpop.xlane.xlu1 %2686  ;;  %v2717_v18 = vmul.f32 0.0078125, %v2691_v23 }
 0x66a   : > { %v2715_v7 = vmul.f32 0.0078125, %v2687_v25 }
 0x66b   : > { %v7194_v44 = vsub.f32 %v7016_v45, %v2717_v18 }
 0x66c   : > { %v7191_v19 = vsub.f32 %v7018_v58, %v2715_v7  ;;  %v7254_v7 = vld [vmem:[%s8632_s11] ss:$0 sm:$0xff] }
 0x66d   : > { %v2689_v28 = vpop.xlane.xlu1 %2688  ;;  %v2749_v58 = vmul.f32 %v7194_v44, %v7194_v44 }
 0x66e   : > { %v2716_v38 = vmul.f32 0.0078125, %v2689_v28  ;;  %v2747_v39 = vmul.f32 %v7191_v19, %v7191_v19 }
 0x670   : > { %v7199_v6 = vsub.f32 %v7026_v53, %v2716_v38  ;;  %2767 = vadd.xlane.f32.xlu0 %v2747_v39 }
 0x671   : > { %v2693_v5 = vpop.xlane.xlu1 %2692 }
 0x672   : > { %v2718_v55 = vmul.f32 0.0078125, %v2693_v5  ;;  %v2748_v0 = vmul.f32 %v7199_v6, %v7199_v6  ;;  %v7261_v5 = vld [vmem:[%s8633_s12] ss:$0 sm:$0xff] }
 0x674   : > { %v7206_v46 = vsub.f32 %v7029_v61, %v2718_v55  ;;  %2769 = vadd.xlane.f32.xlu1 %v2748_v0  ;;  %2771 = vadd.xlane.f32.xlu0 %v2749_v58 }
 0x676   : > { %v2750_v45 = vmul.f32 %v7206_v46, %v7206_v46 }
 0x678   : > { %2773 = vadd.xlane.f32.xlu1 %v2750_v45 }
 0x679   : > { %v2695_v53 = vpop.xlane.xlu0 %2694 }
 0x67a   : > { %v2719_v9 = vmul.f32 0.0078125, %v2695_v53 }
 0x67b   : > { %v2697_v47 = vpop.xlane.xlu1 %2696 }
 0x67c   : > { %v7211_v51 = vsub.f32 %v7038_v14, %v2719_v9  ;;  %v2720_v57 = vmul.f32 0.0078125, %v2697_v47 }
 0x67d   : > { %v2699_v49 = vpop.xlane.xlu0 %2698 }
 0x67e   : > { %v7214_v4 = vsub.f32 %v7042_v32, %v2720_v57  ;;  %v2721_v33 = vmul.f32 0.0078125, %v2699_v49  ;;  %v2751_v61 = vmul.f32 %v7211_v51, %v7211_v51 }
 0x67f   : > { %v2701_v3 = vpop.xlane.xlu1 %2700 }
 0x680   : > { %v7219_v16 = vsub.f32 %v7045_v20, %v2721_v33  ;;  %v2722_v22 = vmul.f32 0.0078125, %v2701_v3  ;;  %2775 = vadd.xlane.f32.xlu0 %v2751_v61  ;;  %v2752_v48 = vmul.f32 %v7214_v4, %v7214_v4 }
 0x682   : > { %v7224_v14 = vsub.f32 %v7048_v40, %v2722_v22  ;;  %2777 = vadd.xlane.f32.xlu1 %v2752_v48  ;;  %v2753_v32 = vmul.f32 %v7219_v16, %v7219_v16 }
 0x684   : > { %2779 = vadd.xlane.f32.xlu0 %v2753_v32  ;;  %v2754_v59 = vmul.f32 %v7224_v14, %v7224_v14 }
 0x685   : > { %v2703_v24 = vpop.xlane.xlu0 %2702 }
 0x686   : > { %v2723_v30 = vmul.f32 0.0078125, %v2703_v24  ;;  %2781 = vadd.xlane.f32.xlu1 %v2754_v59 }
 0x687   : > { %v2705_v20 = vpop.xlane.xlu1 %2704 }
 0x688   : > { %v7231_v60 = vsub.f32 %v7058_v8, %v2723_v30  ;;  %v2724_v56 = vmul.f32 0.0078125, %v2705_v20 }
 0x689   : > { %v2707_v29 = vpop.xlane.xlu0 %2706 }
 0x68a   : > { %v7234_v40 = vsub.f32 %v7062_v54, %v2724_v56  ;;  %v2725_v35 = vmul.f32 0.0078125, %v2707_v29  ;;  %v2755_v43 = vmul.f32 %v7231_v60, %v7231_v60 }
 0x68b   : > { %v2709_v17 = vpop.xlane.xlu1 %2708 }
 0x68c   : > { %v7239_v37 = vsub.f32 %v7065_v11, %v2725_v35  ;;  %v2726_v62 = vmul.f32 0.0078125, %v2709_v17  ;;  %2783 = vadd.xlane.f32.xlu0 %v2755_v43  ;;  %v2756_v63 = vmul.f32 %v7234_v40, %v7234_v40 }
 0x68e   : > { %v7244_v8 = vsub.f32 %v7068_v1, %v2726_v62  ;;  %2785 = vadd.xlane.f32.xlu1 %v2756_v63  ;;  %v2757_v54 = vmul.f32 %v7239_v37, %v7239_v37 }
 0x690   : > { %2787 = vadd.xlane.f32.xlu0 %v2757_v54  ;;  %v2758_v2 = vmul.f32 %v7244_v8, %v7244_v8 }
 0x692   : > { %2789 = vadd.xlane.f32.xlu1 %v2758_v2 }
 0x6cb   : > { %v2760_v50 = vpop.xlane.xlu0 %2759 }
 0x6cc   : > { %v2791_v11 = vmul.f32 0.0078125, %v2760_v50 }
 0x6ce   : > { %v2807_v13 = vadd.f32 1e-05, %v2791_v11 }
 0x6cf   : > { %v2762_v31 = vpop.xlane.xlu1 %2761 }
 0x6d0   : > { %5845 = vrsqrt.f32 %v2807_v13  ;;  %v2792_v26 = vmul.f32 0.0078125, %v2762_v31 }
 0x6d2   : > { %v2808_v12 = vadd.f32 1e-05, %v2792_v26 }
 0x6d3   : > { %v2764_v15 = vpop.xlane.xlu0 %2763 }
 0x6d4   : > { %5847 = vrsqrt.f32 %v2808_v12  ;;  %v2793_v1 = vmul.f32 0.0078125, %v2764_v15 }
 0x6d6   : > { %v2809_v34 = vadd.f32 1e-05, %v2793_v1 }
 0x6d7   : > { %v2766_v36 = vpop.xlane.xlu1 %2765 }
 0x6d8   : > { %5849 = vrsqrt.f32 %v2809_v34  ;;  %v2794_v27 = vmul.f32 0.0078125, %v2766_v36 }
 0x6da   : > { %v5846_v23 = vpop.eup %5845  ;;  %v2810_v25 = vadd.f32 1e-05, %v2794_v27 }
 0x6db   : > { %v2839_v18 = vmul.f32 %v5846_v23, %v7097_v52 }
 0x6dc   : > { %5851 = vrsqrt.f32 %v2810_v25 }
 0x6dd   : > { %v2861_v38 = vmul.f32 %v7254_v7, %v2839_v18 }
 0x6de   : > { %v5848_v28 = vpop.eup %5847 }
 0x6df   : > { %v2840_v39 = vmul.f32 %v5848_v28, %v7102_v42  ;;  %v7265_v52 = vadd.f32 %v7261_v5, %v2861_v38 }
 0x6e1   : > { %v2862_v55 = vmul.f32 %v7254_v7, %v2840_v39  ;;  %8711 = vst [vmem:[#allocation16_spill] sm:$0xff] %v7265_v52 }
 0x6e2   : > { %v5850_v0 = vpop.eup %5849 }
 0x6e3   : > { %v7268_v58 = vadd.f32 %v7261_v5, %v2862_v55  ;;  %v2841_v45 = vmul.f32 %v5850_v0, %v7107_v41 }
 0x6e5   : > { %8712 = vst [vmem:[#allocation17_spill] sm:$0xff] %v7268_v58  ;;  %v2899_v53 = vpack.c.bf16 %v7268_v58, %v7265_v52  ;;  %v2863_v47 = vmul.f32 %v7254_v7, %v2841_v45 }
 0x6e6   : > { %v5852_v42 = vpop.eup %5851 }
 0x6e7   : > { %3154 = vmatmul.mubr.bf16.vlgmr.msra.gmra.mrb[64].mxu0 %v2899_v53  ;;  %3267 = vmatmul.mubr.bf16.vlgmr.msra.gmra.mrb[64].mxu1 %v2899_v53  ;;  %v2842_v9 = vmul.f32 %v5852_v42, %v7112_v21  ;;  %v7279_v49 = vadd.f32 %v7261_v5, %v2863_v47 }
 0x6e8   : > { %3163 = vmatprep.mubr.bf16.mxu0 %v6134_v10  ;;  %3276 = vmatprep.mubr.bf16.mxu1 %v6134_v10 }
 0x6e9   : > { %v2864_v57 = vmul.f32 %v7254_v7, %v2842_v9  ;;  %8713 = vst [vmem:[#allocation18_spill] sm:$0xff] %v7279_v49 }
 0x6eb   : > { %v7282_v41 = vadd.f32 %v7261_v5, %v2864_v57 }
 0x6ed   : > { %8714 = vst [vmem:[#allocation19_spill] sm:$0xff] %v7282_v41  ;;  %v2900_v33 = vpack.c.bf16 %v7282_v41, %v7279_v49 }
 0x6ef   : > { %3164 = vmatmul.mubr.bf16.gmra.mrb[68].mxu0 %v2900_v33  ;;  %3277 = vmatmul.mubr.bf16.gmra.mrb[68].mxu1 %v2900_v33 }
 0x6f0   : > { %3173 = vmatprep.mubr.bf16.mxu0 %v6134_v10  ;;  %3286 = vmatprep.mubr.bf16.mxu1 %v6134_v10 }
 0x6fd   : > { %v2768_v21 = vpop.xlane.xlu0 %2767 }
 0x6fe   : > { %v2795_v61 = vmul.f32 0.0078125, %v2768_v21 }
 0x700   : > { %v2811_v3 = vadd.f32 1e-05, %v2795_v61 }
 0x701   : > { %v2770_v22 = vpop.xlane.xlu1 %2769  ;;  %v2772_v48 = vpop.xlane.xlu0 %2771 }
 0x702   : > { %5853 = vrsqrt.f32 %v2811_v3  ;;  %v2796_v32 = vmul.f32 0.0078125, %v2770_v22  ;;  %v2797_v59 = vmul.f32 0.0078125, %v2772_v48 }
 0x704   : > { %v2812_v24 = vadd.f32 1e-05, %v2796_v32  ;;  %v2813_v30 = vadd.f32 1e-05, %v2797_v59 }
 0x705   : > { %v2774_v20 = vpop.xlane.xlu1 %2773 }
 0x706   : > { %5855 = vrsqrt.f32 %v2812_v24  ;;  %v2798_v56 = vmul.f32 0.0078125, %v2774_v20 }
 0x707   : > { %5857 = vrsqrt.f32 %v2813_v30 }
 0x708   : > { %v2814_v29 = vadd.f32 1e-05, %v2798_v56 }
 0x70a   : > { %5859 = vrsqrt.f32 %v2814_v29 }
 0x70c   : > { %v5854_v35 = vpop.eup %5853 }
 0x70d   : > { %v2776_v43 = vpop.xlane.xlu0 %2775  ;;  %v2843_v17 = vmul.f32 %v5854_v35, %v7191_v19 }
 0x70e   : > { %v2799_v62 = vmul.f32 0.0078125, %v2776_v43 }
 0x70f   : > { %v2778_v63 = vpop.xlane.xlu1 %2777  ;;  %v2865_v31 = vmul.f32 %v7254_v7, %v2843_v17 }
 0x710   : > { %v5856_v54 = vpop.eup %5855  ;;  %v2815_v2 = vadd.f32 1e-05, %v2799_v62  ;;  %v2800_v50 = vmul.f32 0.0078125, %v2778_v63 }
 0x711   : > { %v2780_v11 = vpop.xlane.xlu0 %2779  ;;  %v2844_v13 = vmul.f32 %v5856_v54, %v7199_v6  ;;  %v5858_v26 = vpop.eup %5857  ;;  %v7293_v23 = vadd.f32 %v7261_v5, %v2865_v31 }
 0x712   : > { %5861 = vrsqrt.f32 %v2815_v2  ;;  %v2816_v12 = vadd.f32 1e-05, %v2800_v50  ;;  %v2801_v15 = vmul.f32 0.0078125, %v2780_v11  ;;  %v2845_v6 = vmul.f32 %v5858_v26, %v7194_v44 }
 0x713   : > { %v2782_v1 = vpop.xlane.xlu1 %2781  ;;  %v2866_v34 = vmul.f32 %v7254_v7, %v2844_v13  ;;  %8715 = vst [vmem:[#allocation20_spill] sm:$0xff] %v7293_v23 }
 0x714   : > { %v5860_v36 = vpop.eup %5859  ;;  %5863 = vrsqrt.f32 %v2816_v12  ;;  %v2817_v19 = vadd.f32 1e-05, %v2801_v15  ;;  %v2802_v27 = vmul.f32 0.0078125, %v2782_v1  ;;  %v2867_v0 = vmul.f32 %v7254_v7, %v2845_v6 }
 0x715   : > { %v7296_v25 = vadd.f32 %v7261_v5, %v2866_v34  ;;  %v2846_v18 = vmul.f32 %v5860_v36, %v7206_v46 }
 0x716   : > { %v2818_v28 = vadd.f32 1e-05, %v2802_v27  ;;  %5865 = vrsqrt.f32 %v2817_v19  ;;  %v7310_v57 = vadd.f32 %v7261_v5, %v2867_v0  ;;  %v5692_v0 = vld [vmem:[%s8636_s15 + $0x18] sm:$0xff]  }
 0x717   : > { %8716 = vst [vmem:[#allocation21_spill] sm:$0xff] %v7296_v25  ;;  %v2901_v38 = vpack.c.bf16 %v7296_v25, %v7293_v23  ;;  %v2868_v39 = vmul.f32 %v7254_v7, %v2846_v18 }
 0x718   : > { %5867 = vrsqrt.f32 %v2818_v28  ;;  %8718 = vst [vmem:[#allocation23_spill] sm:$0xff] %v7310_v57 }
 0x719   : > { %3174 = vmatmul.mubr.bf16.gmra.mrb[72].mxu0 %v2901_v38  ;;  %3287 = vmatmul.mubr.bf16.gmra.mrb[72].mxu1 %v2901_v38  ;;  %v2784_v55 = vpop.xlane.xlu0 %2783  ;;  %v7307_v46 = vadd.f32 %v7261_v5, %v2868_v39  ;;  %v5689_v38 = vld [vmem:[%s8636_s15 + $0x50] sm:$0xff]  }
 0x71a   : > { %v2803_v45 = vmul.f32 0.0078125, %v2784_v55  ;;  %3183 = vmatprep.mubr.bf16.mxu0 %v6134_v10  ;;  %3296 = vmatprep.mubr.bf16.mxu1 %v6134_v10  ;;  %v5690_v39 = vld [vmem:[%s8636_s15 + $0x10] sm:$0xff]   ;;  %v5691_v55 = vld [vmem:[%s8636_s15 + $0x58] sm:$0xff]  }
 0x71b   : > { %v2786_v44 = vpop.xlane.xlu1 %2785  ;;  %8717 = vst [vmem:[#allocation22_spill] sm:$0xff] %v7307_v46  ;;  %v2902_v22 = vpack.c.bf16 %v7307_v46, %v7310_v57 }
 0x71c   : > { %v5862_v53 = vpop.eup %5861  ;;  %v2819_v42 = vadd.f32 1e-05, %v2803_v45  ;;  %v2804_v9 = vmul.f32 0.0078125, %v2786_v44  ;;  %v5693_v45 = vld [vmem:[%s8636_s15 + $0x60] sm:$0xff]  }
 0x71d   : > { %v2788_v47 = vpop.xlane.xlu0 %2787  ;;  %v2847_v33 = vmul.f32 %v5862_v53, %v7211_v51  ;;  %v5694_v44 = vld [vmem:[%s8636_s15 + $0x20] sm:$0xff]   ;;  %v5695_v53 = vld [vmem:[%s8636_s15 + $0x68] sm:$0xff]  }
 0x71e   : > { %v5864_v21 = vpop.eup %5863  ;;  %v2820_v61 = vadd.f32 1e-05, %v2804_v9  ;;  %5869 = vrsqrt.f32 %v2819_v42  ;;  %v2805_v32 = vmul.f32 0.0078125, %v2788_v47  ;;  %v5696_v42 = vld [vmem:[%s8636_s15 + $0x28] sm:$0xff]   ;;  %v5697_v9 = vld [vmem:[%s8636_s15 + $0x70] sm:$0xff]  }
 0x71f   : > { %v2790_v3 = vpop.xlane.xlu1 %2789  ;;  %v2848_v48 = vmul.f32 %v5864_v21, %v7214_v4  ;;  %v2869_v30 = vmul.f32 %v7254_v7, %v2847_v33  ;;  %v5698_v47 = vld [vmem:[%s8636_s15 + $0x30] sm:$0xff]   ;;  %v5699_v33 = vld [vmem:[%s8636_s15 + $0x78] sm:$0xff]   ;;  %v5701_v21 = vld [vmem:[%s8636_s15 + $0xc0] sm:$0xff]  }
 0x720   : > { %5871 = vrsqrt.f32 %v2820_v61  ;;  %v2806_v59 = vmul.f32 0.0078125, %v2790_v3  ;;  %v5866_v24 = vpop.eup %5865  ;;  %v2821_v35 = vadd.f32 1e-05, %v2805_v32  ;;  %v7421_v61 = vld [vmem:[%s8636_s15 + $0x80] sm:$0xff]   ;;  %v5700_v3 = vld [vmem:[%s8636_s15 + $0x38] sm:$0xff]   ;;  %5482 = vmatprep.subr.bf16.mxu1 %v5701_v21  ;;  %v7442_v32 = vld [vmem:[%s8636_s15 + $0xd0] sm:$0xff]  }
 0x721   : > { %3184 = vmatmul.mubr.bf16.gmra.mrb[76].mxu0 %v2902_v22  ;;  %3297 = vmatmul.mubr.bf16.gmra.mrb[76].mxu1 %v2902_v22  ;;  %v2870_v20 = vmul.f32 %v7254_v7, %v2848_v48  ;;  %v7325_v43 = vadd.f32 %v7261_v5, %v2869_v30  ;;  %v2849_v17 = vmul.f32 %v5866_v24, %v7219_v16  ;;  %v7430_v22 = vld [vmem:[%s8636_s15 + $0xc8] sm:$0xff]   ;;  %v7453_v24 = vld [vmem:[%s8636_s15 + $0xd8] sm:$0xff]  }
 0x722   : > { %v5868_v51 = vpop.eup %5867  ;;  %v2822_v56 = vadd.f32 1e-05, %v2806_v59  ;;  %3193 = vmatprep.mubr.bf16.mxu0 %v6134_v10  ;;  %3306 = vmatprep.mubr.bf16.mxu1 %v6134_v10  ;;  %v7435_v48 = vld [vmem:[%s8636_s15 + $0x88] sm:$0xff]   ;;  %v7448_v59 = vld [vmem:[%s8636_s15 + $0x90] sm:$0xff]   ;;  %v7459_v30 = vld [vmem:[%s8636_s15 + $0x98] sm:$0xff]  }
 0x723   : > { %v7321_v29 = vadd.f32 %v7261_v5, %v2870_v20  ;;  %v2850_v4 = vmul.f32 %v5868_v51, %v7224_v14  ;;  %8720 = vst [vmem:[#allocation25_spill] sm:$0xff] %v7325_v43  ;;  %v2871_v2 = vmul.f32 %v7254_v7, %v2849_v17  ;;  %5490 = vmatpush3.bf16.msra.mxu1 %v7421_v61  ;;  %v7466_v20 = vld [vmem:[%s8636_s15 + $0xe0] sm:$0xff]   ;;  %v7495_v17 = vld [vmem:[%s8636_s15 + $0xb0] sm:$0xff]  }
 0x724   : > { %5873 = vrsqrt.f32 %v2822_v56  ;;  %5483 = vmatprep.subr.bf16.mxu1 %v7430_v22  ;;  %v7471_v51 = vld [vmem:[%s8636_s15 + $0xa0] sm:$0xff]   ;;  %v7478_v56 = vld [vmem:[%s8636_s15 + $0xe8] sm:$0xff]  }
 0x725   : > { %8719 = vst [vmem:[#allocation24_spill] sm:$0xff] %v7321_v29  ;;  %v2903_v62 = vpack.c.bf16 %v7321_v29, %v7325_v43  ;;  %v2872_v63 = vmul.f32 %v7254_v7, %v2850_v4  ;;  %5875 = vrsqrt.f32 %v2821_v35  ;;  %v7339_v11 = vadd.f32 %v7261_v5, %v2871_v2  ;;  %v7483_v4 = vld [vmem:[%s8636_s15 + $0xa8] sm:$0xff]   ;;  %v7490_v35 = vld [vmem:[%s8636_s15 + $0xf0] sm:$0xff]  }
 0x727   : > { %v7335_v14 = vadd.f32 %v7261_v5, %v2872_v63  ;;  %8722 = vst [vmem:[#allocation27_spill] sm:$0xff] %v7339_v11  ;;  %5491 = vmatpush3.bf16.msra.mxu1 %v7435_v48  ;;  %v7507_v63 = vld [vmem:[%s8636_s15 + $0xb8] sm:$0xff]  }
 0x728   : > { %v5870_v54 = vpop.eup %5869  ;;  %5484 = vmatprep.subr.bf16.mxu1 %v7442_v32 }
 0x729   : > { %3194 = vmatmul.mubr.bf16.gmra.mrb[80].mxu0 %v2903_v62  ;;  %3307 = vmatmul.mubr.bf16.gmra.mrb[80].mxu1 %v2903_v62  ;;  %8721 = vst [vmem:[#allocation26_spill] sm:$0xff] %v7335_v14  ;;  %v2851_v13 = vmul.f32 %v5870_v54, %v7231_v60  ;;  %v2904_v31 = vpack.c.bf16 %v7335_v14, %v7339_v11  ;;  %v7502_v62 = vld [vmem:[%s8636_s15 + $0xf8] sm:$0xff]   ;;  %v2941_v54 = vlaneseq }
 0x72a   : > { %v5872_v50 = vpop.eup %5871  ;;  %3203 = vmatprep.mubr.bf16.mxu0 %v6134_v10  ;;  %3316 = vmatprep.mubr.bf16.mxu1 %v6134_v10 }
 0x72b   : > { %v2852_v16 = vmul.f32 %v5872_v50, %v7234_v40  ;;  %v2873_v15 = vmul.f32 %v7254_v7, %v2851_v13  ;;  %5492 = vmatpush3.bf16.msra.mxu1 %v7448_v59  ;;  %v2942_v2 = vshrl.u32 %v2941_v54, 7  ;;  %v2939_v13 = vld [vmem:[%s8635_s14] sm:$0xf] }
 0x72c   : > { %5485 = vmatprep.subr.bf16.mxu1 %v7453_v24 }
 0x72d   : > { %v2874_v26 = vmul.f32 %v7254_v7, %v2852_v16  ;;  %v7353_v34 = vadd.f32 %v7261_v5, %v2873_v15  ;;  %v2943_v50 = vsub.s32 0, %v2942_v2  ;;  %v2951_v16 = vsub.s32 2, %v2942_v2 }
 0x72e   : > { %v5874_v12 = vpop.eup %5873 }
 0x72f   : > { %v5876_v1 = vpop.eup %5875  ;;  %v7349_v40 = vadd.f32 %v7261_v5, %v2874_v26  ;;  %v2854_v60 = vmul.f32 %v5874_v12, %v7244_v8  ;;  %8724 = vst [vmem:[#allocation29_spill] sm:$0xff] %v7353_v34  ;;  %5493 = vmatpush3.bf16.msra.mxu1 %v7459_v30  ;;  %v2955_v26 = vsub.s32 3, %v2942_v2  ;;  %v7514_v12 = vrot.slane %v2939_v13, %v2943_v50 }
 0x730   : > { %v2853_v36 = vmul.f32 %v5876_v1, %v7239_v37  ;;  %v5685_v37 = vld [vmem:[%s8636_s15 + $0x40] sm:$0xff]   ;;  %5486 = vmatprep.subr.bf16.mxu1 %v7466_v20  ;;  %v7516_v15 = vrot.slane %v2939_v13, %v2951_v16 }
 0x731   : > { %3204 = vmatmul.mubr.bf16.gmra.mrb[84].mxu0 %v2904_v31  ;;  %3317 = vmatmul.mubr.bf16.gmra.mrb[84].mxu1 %v2904_v31  ;;  %8723 = vst [vmem:[#allocation28_spill] sm:$0xff] %v7349_v40  ;;  %v2905_v19 = vpack.c.bf16 %v7349_v40, %v7353_v34  ;;  %v2876_v27 = vmul.f32 %v7254_v7, %v2854_v60  ;;  %v2947_v31 = vsub.s32 1, %v2942_v2 }
 0x732   : > { %3213 = vmatprep.mubr.bf16.mxu0 %v6134_v10  ;;  %3326 = vmatprep.mubr.bf16.mxu1 %v6134_v10  ;;  %v2875_v6 = vmul.f32 %v7254_v7, %v2853_v36  ;;  %v5686_v7 = vld [vmem:[%s8636_s15] sm:$0xff]   ;;  %v7520_v60 = vrot.slane %v2939_v13, %v2955_v26 }
 0x733   : > { %v7363_v8 = vadd.f32 %v7261_v5, %v2876_v27  ;;  %5082 = vmatprep.subr.bf16.mxu0 %v5685_v37  ;;  %5494 = vmatpush3.bf16.msra.mxu1 %v7471_v51  ;;  %v7518_v1 = vrot.slane %v2939_v13, %v2947_v31 }
 0x734   : > { %v7366_v18 = vadd.f32 %v7261_v5, %v2875_v6  ;;  %5083 = vmatpush3.bf16.msra.mxu0 %v5686_v7  ;;  %v5688_v5 = vld [vmem:[%s8636_s15 + $0x8] sm:$0xff]   ;;  %5487 = vmatprep.subr.bf16.mxu1 %v7478_v56 }
 0x735   : > { %8725 = vst [vmem:[#allocation30_spill] sm:$0xff] %v7363_v8 }
 0x736   : > { %8726 = vst [vmem:[#allocation31_spill] sm:$0xff] %v7366_v18  ;;  %v2906_v28 = vpack.c.bf16 %v7363_v8, %v7366_v18 }
 0x737   : > { %5495 = vmatpush3.bf16.msra.mxu1 %v7483_v4 }
 0x738   : > { %5488 = vmatprep.subr.bf16.mxu1 %v7490_v35 }
 0x739   : > { %3214 = vmatmul.mubr.bf16.gmra.mrb[88].mxu0 %v2905_v19  ;;  %3327 = vmatmul.mubr.bf16.gmra.mrb[88].mxu1 %v2905_v19 }
 0x73a   : > { %3223 = vmatprep.mubr.bf16.mxu0 %v6134_v10  ;;  %3336 = vmatprep.mubr.bf16.mxu1 %v6134_v10  ;;  %v5687_v10 = vld [vmem:[%s8636_s15 + $0x48] sm:$0xff]  }
 0x73b   : > { %5084 = vmatprep.subr.bf16.mxu0 %v5687_v10  ;;  %5496 = vmatpush3.bf16.msra.mxu1 %v7495_v17 }
 0x73c   : > { %5085 = vmatpush3.bf16.msra.mxu0 %v5688_v5  ;;  %5489 = vmatprep.subr.bf16.mxu1 %v7502_v62 }
 0x73d   : > { %5086 = vmatprep.subr.bf16.mxu0 %v5689_v38 }
 0x73f   : > { %5497 = vmatpush3.bf16.msra.mxu1 %v7507_v63 }
 0x740   : > { %5087 = vmatpush3.bf16.msra.mxu0 %v5690_v39 }
 0x741   : > { %3224 = vmatmul.mubr.bf16.gmra.mrb[92].mxu0 %v2906_v28  ;;  %3337 = vmatmul.mubr.bf16.gmra.mrb[92].mxu1 %v2906_v28 }
 0x742   : > { %5088 = vmatprep.subr.bf16.mxu0 %v5691_v55 }
 0x744   : > { %5089 = vmatpush3.bf16.msra.mxu0 %v5692_v0 }
 0x745   : > { %5090 = vmatprep.subr.bf16.mxu0 %v5693_v45 }
 0x748   : > { %5091 = vmatpush3.bf16.msra.mxu0 %v5694_v44 }
 0x749   : > { %5092 = vmatprep.subr.bf16.mxu0 %v5695_v53 }
 0x74c   : > { %5093 = vmatpush3.bf16.msra.mxu0 %v5696_v42 }
 0x74d   : > { %5094 = vmatprep.subr.bf16.mxu0 %v5697_v9 }
 0x750   : > { %5095 = vmatpush3.bf16.msra.mxu0 %v5698_v47 }
 0x751   : > { %5096 = vmatprep.subr.bf16.mxu0 %v5699_v33 }
 0x754   : > { %5097 = vmatpush3.bf16.msra.mxu0 %v5700_v3 }
 0x755   : > { %5146 = vmatprep.subr.bf16.mxu0 %v5701_v21 }
 0x7ba   : > { %v3155_v36 = vpop.f32.mrb[64].mxu0  ;;  %v3268_v19 = vpop.f32.mrb[64].mxu1 }
 0x7bb   : > { %v7523_v27 = vadd.f32 %v3155_v36, %v7514_v12  ;;  %v7526_v6 = vadd.f32 %v3268_v19, %v7516_v15  ;;  %v3157_v37 = vpop.f32.mrb[65].mxu0  ;;  %v3270_v28 = vpop.f32.mrb[65].mxu1 }
 0x7bc   : > { %v7529_v7 = vadd.f32 %v3157_v37, %v7518_v1  ;;  %v7532_v10 = vadd.f32 %v3270_v28, %v7520_v60  ;;  %v3159_v5 = vpop.f32.mrb[66].mxu0  ;;  %v3272_v38 = vpop.f32.mrb[66].mxu1 }
 0x7bd   : > { %v3411_v39 = vmul.f32 %v7523_v27, %v7523_v27  ;;  %v3413_v55 = vmul.f32 %v7526_v6, %v7526_v6  ;;  %v3161_v0 = vpop.f32.mrb[67].mxu0  ;;  %v3274_v45 = vpop.f32.mrb[67].mxu1  ;;  %v7543_v42 = vadd.f32 %v3159_v5, %v7514_v12  ;;  %v7546_v9 = vadd.f32 %v3272_v38, %v7516_v15 }
 0x7be   : > { %v3412_v44 = vmul.f32 %v7529_v7, %v7529_v7  ;;  %v3414_v53 = vmul.f32 %v7532_v10, %v7532_v10  ;;  %v7551_v21 = vadd.f32 %v3161_v0, %v7518_v1  ;;  %v7554_v3 = vadd.f32 %v3274_v45, %v7520_v60 }
 0x7bf   : > { %v3475_v47 = vmul.f32 %v3411_v39, %v7523_v27  ;;  %v3477_v33 = vmul.f32 %v3413_v55, %v7526_v6  ;;  %v3415_v50 = vmul.f32 %v7543_v42, %v7543_v42  ;;  %v3417_v31 = vmul.f32 %v7546_v9, %v7546_v9 }
 0x7c0   : > { %v3476_v54 = vmul.f32 %v3412_v44, %v7529_v7  ;;  %v3478_v2 = vmul.f32 %v3414_v53, %v7532_v10  ;;  %v3416_v37 = vmul.f32 %v7551_v21, %v7551_v21  ;;  %v3418_v0 = vmul.f32 %v7554_v3, %v7554_v3 }
 0x7c1   : > { %v3539_v16 = vmul.f32 0.044715, %v3475_v47  ;;  %v3541_v13 = vmul.f32 0.044715, %v3477_v33  ;;  %v3479_v19 = vmul.f32 %v3415_v50, %v7543_v42  ;;  %v3481_v55 = vmul.f32 %v3417_v31, %v7546_v9 }
 0x7c2   : > { %v3540_v26 = vmul.f32 0.044715, %v3476_v54  ;;  %v3542_v36 = vmul.f32 0.044715, %v3478_v2  ;;  %v3165_v28 = vpop.f32.mrb[68].mxu0  ;;  %v3278_v5 = vpop.f32.mrb[68].mxu1  ;;  %v3480_v54 = vmul.f32 %v3416_v37, %v7551_v21 }
 0x7c3   : > { %v3603_v38 = vadd.f32 %v3539_v16, %v7523_v27  ;;  %v3605_v39 = vadd.f32 %v3541_v13, %v7526_v6  ;;  %v3167_v45 = vpop.f32.mrb[69].mxu0  ;;  %v3280_v44 = vpop.f32.mrb[69].mxu1  ;;  %v3543_v33 = vmul.f32 0.044715, %v3479_v19  ;;  %v3545_v18 = vmul.f32 0.044715, %v3481_v55 }
 0x7c4   : > { %v3604_v53 = vadd.f32 %v3540_v26, %v7529_v7  ;;  %v3606_v47 = vadd.f32 %v3542_v36, %v7532_v10  ;;  %v3169_v2 = vpop.f32.mrb[70].mxu0  ;;  %v3282_v50 = vpop.f32.mrb[70].mxu1  ;;  %v3482_v13 = vmul.f32 %v3418_v0, %v7554_v3  ;;  %v3544_v58 = vmul.f32 0.044715, %v3480_v54 }
 0x7c5   : > { %v3667_v8 = vmul.f32 0.7978846, %v3603_v38  ;;  %v3669_v16 = vmul.f32 0.7978846, %v3605_v39  ;;  %v3607_v49 = vadd.f32 %v3543_v33, %v7543_v42  ;;  %v3609_v26 = vadd.f32 %v3545_v18, %v7546_v9  ;;  %v3171_v19 = vpop.f32.mrb[71].mxu0  ;;  %v3284_v37 = vpop.f32.mrb[71].mxu1 }
 0x7c6   : > { %v3668_v31 = vmul.f32 0.7978846, %v3604_v53  ;;  %v3670_v41 = vmul.f32 0.7978846, %v3606_v47  ;;  %v3546_v52 = vmul.f32 0.044715, %v3482_v13  ;;  %v7577_v36 = vadd.f32 %v3165_v28, %v7514_v12 }
 0x7c7   : > { %5877 = vtanh.f32 %v3667_v8  ;;  %v3671_v38 = vmul.f32 0.7978846, %v3607_v49  ;;  %v3608_v39 = vadd.f32 %v3544_v58, %v7551_v21  ;;  %v7581_v55 = vadd.f32 %v3278_v5, %v7516_v15 }
 0x7c8   : > { %5879 = vtanh.f32 %v3669_v16  ;;  %v3673_v0 = vmul.f32 0.7978846, %v3609_v26  ;;  %v3610_v53 = vadd.f32 %v3546_v52, %v7554_v3  ;;  %v3419_v8 = vmul.f32 %v7577_v36, %v7577_v36 }
 0x7c9   : > { %5881 = vtanh.f32 %v3668_v31  ;;  %v3672_v18 = vmul.f32 0.7978846, %v3608_v39  ;;  %v3421_v28 = vmul.f32 %v7581_v55, %v7581_v55  ;;  %v7589_v47 = vadd.f32 %v3167_v45, %v7518_v1 }
 0x7ca   : > { %5883 = vtanh.f32 %v3670_v41  ;;  %v3674_v58 = vmul.f32 0.7978846, %v3610_v53  ;;  %v3483_v49 = vmul.f32 %v3419_v8, %v7577_v36  ;;  %v7593_v5 = vadd.f32 %v3280_v44, %v7520_v60 }
 0x7cb   : > { %5885 = vtanh.f32 %v3671_v38  ;;  %v3485_v52 = vmul.f32 %v3421_v28, %v7581_v55  ;;  %v3420_v41 = vmul.f32 %v7589_v47, %v7589_v47  ;;  %v7599_v33 = vadd.f32 %v3169_v2, %v7514_v12 }
 0x7cc   : > { %5887 = vtanh.f32 %v3673_v0  ;;  %v3547_v54 = vmul.f32 0.044715, %v3483_v49  ;;  %v3422_v45 = vmul.f32 %v7593_v5, %v7593_v5  ;;  %v7604_v16 = vadd.f32 %v3282_v50, %v7516_v15 }
 0x7cd   : > { %5889 = vtanh.f32 %v3672_v18  ;;  %v3549_v44 = vmul.f32 0.044715, %v3485_v52  ;;  %v3484_v13 = vmul.f32 %v3420_v41, %v7589_v47  ;;  %v3423_v31 = vmul.f32 %v7599_v33, %v7599_v33 }
 0x7ce   : > { %5891 = vtanh.f32 %v3674_v58  ;;  %v3611_v26 = vadd.f32 %v3547_v54, %v7577_v36  ;;  %v3486_v2 = vmul.f32 %v3422_v45, %v7593_v5  ;;  %v3425_v38 = vmul.f32 %v7604_v16, %v7604_v16 }
 0x7cf   : > { %v7614_v39 = vadd.f32 %v3171_v19, %v7518_v1  ;;  %v3613_v50 = vadd.f32 %v3549_v44, %v7581_v55  ;;  %v3548_v0 = vmul.f32 0.044715, %v3484_v13  ;;  %v3487_v53 = vmul.f32 %v3423_v31, %v7599_v33 }
 0x7d0   : > { %v7619_v8 = vadd.f32 %v3284_v37, %v7520_v60  ;;  %v3675_v28 = vmul.f32 0.7978846, %v3611_v26  ;;  %v3550_v58 = vmul.f32 0.044715, %v3486_v2  ;;  %v3489_v49 = vmul.f32 %v3425_v38, %v7604_v16 }
 0x7d1   : > { %v5878_v18 = vpop.eup %5877  ;;  %v3424_v52 = vmul.f32 %v7614_v39, %v7614_v39  ;;  %v3677_v19 = vmul.f32 0.7978846, %v3613_v50  ;;  %v3612_v45 = vadd.f32 %v3548_v0, %v7589_v47  ;;  %v3551_v44 = vmul.f32 0.044715, %v3487_v53 }
 0x7d2   : > { %v5880_v41 = vpop.eup %5879  ;;  %v3795_v54 = vadd.f32 1.0, %v5878_v18  ;;  %v3347_v31 = vmul.f32 0.5, %v7523_v27  ;;  %v3351_v37 = vmul.f32 0.5, %v7543_v42  ;;  %v3353_v40 = vmul.f32 0.5, %v7546_v9 }
 0x7d3   : > { %v5882_v13 = vpop.eup %5881  ;;  %v3553_v26 = vmul.f32 0.044715, %v3489_v49  ;;  %5893 = vtanh.f32 %v3675_v28  ;;  %v3676_v38 = vmul.f32 0.7978846, %v3612_v45  ;;  %v3614_v34 = vadd.f32 %v3550_v58, %v7593_v5 }
 0x7d4   : > { %v5884_v2 = vpop.eup %5883  ;;  %v3615_v14 = vadd.f32 %v3551_v44, %v7599_v33  ;;  %v3859_v50 = vmul.f32 %v3795_v54, %v3347_v31  ;;  %v3797_v11 = vadd.f32 1.0, %v5880_v41  ;;  %v3488_v53 = vmul.f32 %v3424_v52, %v7614_v39 }
 0x7d5   : > { %v5886_v18 = vpop.eup %5885  ;;  %v3617_v0 = vadd.f32 %v3553_v26, %v7604_v16  ;;  %5895 = vtanh.f32 %v3677_v19  ;;  %v3426_v9 = vmul.f32 %v7619_v8, %v7619_v8  ;;  %v3678_v54 = vmul.f32 0.7978846, %v3614_v34 }
 0x7d6   : > { %v5888_v27 = vpop.eup %5887  ;;  %v3799_v29 = vadd.f32 1.0, %v5886_v18  ;;  %v3679_v42 = vmul.f32 0.7978846, %v3615_v14  ;;  %5897 = vtanh.f32 %v3676_v38  ;;  %v3552_v45 = vmul.f32 0.044715, %v3488_v53 }
 0x7d7   : > { %v5890_v28 = vpop.eup %5889  ;;  %v3801_v49 = vadd.f32 1.0, %v5888_v27  ;;  %v3681_v58 = vmul.f32 0.7978846, %v3617_v0  ;;  %v3490_v41 = vmul.f32 %v3426_v9, %v7619_v8  ;;  %v3348_v19 = vmul.f32 0.5, %v7529_v7 }
 0x7d8   : > { %v5892_v44 = vpop.eup %5891  ;;  %v3863_v43 = vmul.f32 %v3799_v29, %v3351_v37  ;;  %5899 = vtanh.f32 %v3679_v42  ;;  %v3616_v52 = vadd.f32 %v3552_v45, %v7614_v39  ;;  %v3352_v14 = vmul.f32 0.5, %v7551_v21 }
 0x7d9   : > { %5901 = vtanh.f32 %v3681_v58  ;;  %v3554_v31 = vmul.f32 0.044715, %v3490_v41  ;;  %v3796_v26 = vadd.f32 1.0, %v5882_v13  ;;  %v3800_v18 = vadd.f32 1.0, %v5890_v28 }
 0x7da   : > { %v3923_v27 = vpack.c.bf16 %v3863_v43, %v3859_v50  ;;  %v3349_v38 = vmul.f32 0.5, %v7526_v6  ;;  %v7639_v0 = vmul.f32 %v3801_v49, %v3353_v40  ;;  %v3680_v29 = vmul.f32 0.7978846, %v3616_v52 }
 0x7db   : > { %5903 = vtanh.f32 %v3678_v54  ;;  %v3618_v34 = vadd.f32 %v3554_v31, %v7619_v8  ;;  %v3860_v37 = vmul.f32 %v3796_v26, %v3348_v19  ;;  %v3864_v53 = vmul.f32 %v3800_v18, %v3352_v14 }
 0x7dc   : > { %8727 = vst [vmem:[#allocation32_spill] sm:$0xff] %v7639_v0  ;;  %v7642_v42 = vmul.f32 %v3797_v11, %v3349_v38  ;;  %5905 = vtanh.f32 %v3680_v29  ;;  %v3350_v7 = vmul.f32 0.5, %v7532_v10  ;;  %v3798_v21 = vadd.f32 1.0, %v5884_v2 }
 0x7dd   : > { %v5894_v9 = vpop.eup %5893  ;;  %v3682_v13 = vmul.f32 0.7978846, %v3618_v34  ;;  %v3924_v28 = vpack.c.bf16 %v3864_v53, %v3860_v37  ;;  %v3354_v43 = vmul.f32 0.5, %v7554_v3  ;;  %v3802_v6 = vadd.f32 1.0, %v5892_v44 }
 0x7de   : > { %8728 = vst [vmem:[#allocation33_spill] sm:$0xff] %v7642_v42  ;;  %v7648_v49 = vmul.f32 %v3798_v21, %v3350_v7  ;;  %v3803_v10 = vadd.f32 1.0, %v5894_v9  ;;  %v3355_v44 = vmul.f32 0.5, %v7577_v36  ;;  %v3359_v54 = vmul.f32 0.5, %v7599_v33 }
 0x7df   : > { %v5896_v50 = vpop.eup %5895  ;;  %5907 = vtanh.f32 %v3682_v13  ;;  %4250 = vmatprep.mubr.bf16.mxu0 %v3924_v28  ;;  %v7650_v11 = vmul.f32 %v3802_v6, %v3354_v43  ;;  %v3361_v18 = vmul.f32 0.5, %v7604_v16  ;;  %v3356_v36 = vmul.f32 0.5, %v7589_v47 }
 0x7e0   : > { %8729 = vst [vmem:[#allocation34_spill] sm:$0xff] %v7648_v49  ;;  %v5898_v58 = vpop.eup %5897  ;;  %4251 = vmatmul.mubr.bf16.vlgmr.msra.gmra.mrb[96].mxu0 %v3923_v27  ;;  %v3805_v52 = vadd.f32 1.0, %v5896_v50  ;;  %v3867_v19 = vmul.f32 %v3803_v10, %v3355_v44  ;;  %v3362_v13 = vmul.f32 0.5, %v7619_v8 }
 0x7e1   : > { %8730 = vst [vmem:[#allocation35_spill] sm:$0xff] %v7650_v11  ;;  %5147 = vmatpush3.bf16.msra.mxu0 %v7421_v61  ;;  %v3804_v26 = vadd.f32 1.0, %v5898_v58  ;;  %v3357_v61 = vmul.f32 0.5, %v7581_v55 }
 0x7e2   : > { %v5900_v2 = vpop.eup %5899  ;;  %5148 = vmatprep.subr.bf16.mxu0 %v7430_v22  ;;  %v3360_v22 = vmul.f32 0.5, %v7614_v39 }
 0x7e3   : > { %v5902_v45 = vpop.eup %5901  ;;  %v3807_v41 = vadd.f32 1.0, %v5900_v2  ;;  %v7664_v34 = vmul.f32 %v3805_v52, %v3357_v61  ;;  %v3868_v7 = vmul.f32 %v3804_v26, %v3356_v36 }
 0x7e4   : > { %v3809_v27 = vadd.f32 1.0, %v5902_v45 }
 0x7e5   : > { %v3871_v14 = vmul.f32 %v3807_v41, %v3359_v54  ;;  %v5904_v31 = vpop.eup %5903  ;;  %5149 = vmatpush3.bf16.msra.mxu0 %v7435_v48  ;;  %8731 = vst [vmem:[#allocation36_spill] sm:$0xff] %v7664_v34 }
 0x7e6   : > { %v5906_v38 = vpop.eup %5905  ;;  %5150 = vmatprep.subr.bf16.mxu0 %v7442_v32  ;;  %v7666_v37 = vmul.f32 %v3809_v27, %v3361_v18  ;;  %v3806_v53 = vadd.f32 1.0, %v5904_v31  ;;  %v3358_v32 = vmul.f32 0.5, %v7593_v5 }
 0x7e7   : > { %v3927_v29 = vpack.c.bf16 %v3871_v14, %v3867_v19  ;;  %v3808_v33 = vadd.f32 1.0, %v5906_v38 }
 0x7e8   : > { %8732 = vst [vmem:[#allocation37_spill] sm:$0xff] %v7666_v37  ;;  %v7678_v50 = vmul.f32 %v3806_v53, %v3358_v32 }
 0x7e9   : > { %v5908_v48 = vpop.eup %5907  ;;  %v3872_v55 = vmul.f32 %v3808_v33, %v3360_v22  ;;  %5151 = vmatpush3.bf16.msra.mxu0 %v7448_v59 }
 0x7ea   : > { %5152 = vmatprep.subr.bf16.mxu0 %v7453_v24  ;;  %v3810_v47 = vadd.f32 1.0, %v5908_v48  ;;  %8733 = vst [vmem:[#allocation38_spill] sm:$0xff] %v7678_v50 }
 0x7eb   : > { %v3928_v39 = vpack.c.bf16 %v3872_v55, %v3868_v7 }
 0x7ec   : > { %v3175_v21 = vpop.f32.mrb[72].mxu0  ;;  %v3288_v9 = vpop.f32.mrb[72].mxu1  ;;  %v7687_v8 = vmul.f32 %v3810_v47, %v3362_v13 }
 0x7ed   : > { %v7675_v28 = vadd.f32 %v3175_v21, %v7514_v12  ;;  %v3289_v43 = vadd.f32 %v3288_v9, %v7516_v15  ;;  %v3177_v6 = vpop.f32.mrb[73].mxu0  ;;  %v3290_v59 = vpop.f32.mrb[73].mxu1  ;;  %4258 = vmatprep.mubr.bf16.mxu0 %v3928_v39  ;;  %5153 = vmatpush3.bf16.msra.mxu0 %v7459_v30 }
 0x7ee   : > { %v7681_v24 = vadd.f32 %v3177_v6, %v7518_v1  ;;  %v7684_v5 = vadd.f32 %v3290_v59, %v7520_v60  ;;  %v3179_v58 = vpop.f32.mrb[74].mxu0  ;;  %v3292_v10 = vpop.f32.mrb[74].mxu1  ;;  %8734 = vst [vmem:[#allocation39_spill] sm:$0xff] %v7687_v8  ;;  %4259 = vmatmul.mubr.bf16.gmra.mrb[100].mxu0 %v3927_v29  ;;  %5154 = vmatprep.subr.bf16.mxu0 %v7466_v20 }
 0x7ef   : > { %v3427_v2 = vmul.f32 %v7675_v28, %v7675_v28  ;;  %v7691_v45 = vmul.f32 0.5, %v3289_v43  ;;  %v3429_v44 = vmul.f32 %v3289_v43, %v3289_v43  ;;  %v7694_v54 = vadd.f32 %v3179_v58, %v7514_v12  ;;  %v3181_v41 = vpop.f32.mrb[75].mxu0  ;;  %v3294_v52 = vpop.f32.mrb[75].mxu1 }
 0x7f0   : > { %v3428_v19 = vmul.f32 %v7681_v24, %v7681_v24  ;;  %v3430_v30 = vmul.f32 %v7684_v5, %v7684_v5  ;;  %v3293_v14 = vadd.f32 %v3292_v10, %v7516_v15  ;;  %v7703_v31 = vadd.f32 %v3181_v41, %v7518_v1 }
 0x7f1   : > { %v3491_v26 = vmul.f32 %v3427_v2, %v7675_v28  ;;  %v3493_v61 = vmul.f32 %v3429_v44, %v3289_v43  ;;  %v3431_v18 = vmul.f32 %v7694_v54, %v7694_v54  ;;  %v7709_v27 = vadd.f32 %v3294_v52, %v7520_v60  ;;  %5155 = vmatpush3.bf16.msra.mxu0 %v7471_v51 }
 0x7f2   : > { %v3492_v20 = vmul.f32 %v3428_v19, %v7681_v24  ;;  %v3494_v38 = vmul.f32 %v3430_v30, %v7684_v5  ;;  %v7713_v36 = vmul.f32 0.5, %v3293_v14  ;;  %v3433_v29 = vmul.f32 %v3293_v14, %v3293_v14  ;;  %5156 = vmatprep.subr.bf16.mxu0 %v7478_v56 }
 0x7f3   : > { %v3555_v22 = vmul.f32 0.044715, %v3491_v26  ;;  %v3557_v33 = vmul.f32 0.044715, %v3493_v61  ;;  %v3495_v53 = vmul.f32 %v3431_v18, %v7694_v54  ;;  %v3432_v48 = vmul.f32 %v7703_v31, %v7703_v31 }
 0x7f4   : > { %v3556_v7 = vmul.f32 0.044715, %v3492_v20  ;;  %v3558_v55 = vmul.f32 0.044715, %v3494_v38  ;;  %v3497_v32 = vmul.f32 %v3433_v29, %v3293_v14  ;;  %v3434_v47 = vmul.f32 %v7709_v27, %v7709_v27  ;;  %v3185_v39 = vpop.f32.mrb[76].mxu0  ;;  %v3298_v21 = vpop.f32.mrb[76].mxu1 }
 0x7f5   : > { %v3619_v9 = vadd.f32 %v3555_v22, %v7675_v28  ;;  %v3621_v51 = vadd.f32 %v3557_v33, %v3289_v43  ;;  %v3559_v13 = vmul.f32 0.044715, %v3495_v53  ;;  %v3496_v6 = vmul.f32 %v3432_v48, %v7703_v31  ;;  %v3187_v59 = vpop.f32.mrb[77].mxu0  ;;  %v3300_v58 = vpop.f32.mrb[77].mxu1  ;;  %5157 = vmatpush3.bf16.msra.mxu0 %v7483_v4 }
 0x7f6   : > { %v3620_v10 = vadd.f32 %v3556_v7, %v7681_v24  ;;  %v3622_v56 = vadd.f32 %v3558_v55, %v7684_v5  ;;  %v3561_v2 = vmul.f32 0.044715, %v3497_v32  ;;  %v3498_v44 = vmul.f32 %v3434_v47, %v7709_v27  ;;  %v3189_v41 = vpop.f32.mrb[78].mxu0  ;;  %v3302_v52 = vpop.f32.mrb[78].mxu1  ;;  %5158 = vmatprep.subr.bf16.mxu0 %v7490_v35 }
 0x7f7   : > { %v3683_v19 = vmul.f32 0.7978846, %v3619_v9  ;;  %v3685_v30 = vmul.f32 0.7978846, %v3621_v51  ;;  %v3623_v43 = vadd.f32 %v3559_v13, %v7694_v54  ;;  %v3560_v26 = vmul.f32 0.044715, %v3496_v6 }
 0x7f8   : > { %v3684_v61 = vmul.f32 0.7978846, %v3620_v10  ;;  %v3686_v18 = vmul.f32 0.7978846, %v3622_v56  ;;  %v3625_v20 = vadd.f32 %v3561_v2, %v3293_v14  ;;  %v3562_v38 = vmul.f32 0.044715, %v3498_v44 }
 0x7f9   : > { %5909 = vtanh.f32 %v3683_v19  ;;  %v3687_v29 = vmul.f32 0.7978846, %v3623_v43  ;;  %v3624_v22 = vadd.f32 %v3560_v26, %v7703_v31  ;;  %v7732_v33 = vadd.f32 %v3185_v39, %v7514_v12  ;;  %v3191_v53 = vpop.f32.mrb[79].mxu0  ;;  %v3304_v4 = vpop.f32.mrb[79].mxu1  ;;  %5159 = vmatpush3.bf16.msra.mxu0 %v7495_v17 }
 0x7fa   : > { %5911 = vtanh.f32 %v3685_v30  ;;  %v3689_v48 = vmul.f32 0.7978846, %v3625_v20  ;;  %v3626_v7 = vadd.f32 %v3562_v38, %v7709_v27  ;;  %v7736_v55 = vadd.f32 %v3298_v21, %v7516_v15  ;;  %5160 = vmatprep.subr.bf16.mxu0 %v7502_v62 }
 0x7fb   : > { %8735 = vst [vmem:[#allocation40_spill] sm:$0xff] %v7732_v33  ;;  %5913 = vtanh.f32 %v3684_v61  ;;  %v3688_v35 = vmul.f32 0.7978846, %v3624_v22  ;;  %v3435_v14 = vmul.f32 %v7732_v33, %v7732_v33  ;;  %v7742_v32 = vadd.f32 %v3187_v59, %v7518_v1 }
 0x7fc   : > { %8736 = vst [vmem:[#allocation41_spill] sm:$0xff] %v7736_v55  ;;  %5915 = vtanh.f32 %v3686_v18  ;;  %v3690_v47 = vmul.f32 0.7978846, %v3626_v7  ;;  %v3437_v39 = vmul.f32 %v7736_v55, %v7736_v55  ;;  %v7748_v21 = vadd.f32 %v3300_v58, %v7520_v60  ;;  %v7750_v9 = vpop.f32.mrb[80].mxu0  ;;  %v7752_v17 = vpop.f32.mrb[80].mxu1 }
 0x7fd   : > { %5917 = vtanh.f32 %v3687_v29  ;;  %v3499_v51 = vmul.f32 %v3435_v14, %v7732_v33  ;;  %v3436_v13 = vmul.f32 %v7742_v32, %v7742_v32  ;;  %v7758_v62 = vadd.f32 %v3189_v41, %v7514_v12  ;;  %v7760_v6 = vpop.f32.mrb[81].mxu0  ;;  %v7762_v59 = vpop.f32.mrb[81].mxu1  ;;  %5161 = vmatpush3.bf16.msra.mxu0 %v7507_v63 }
 0x7fe   : > { %5919 = vtanh.f32 %v3689_v48  ;;  %v3501_v58 = vmul.f32 %v3437_v39, %v7736_v55  ;;  %v3438_v10 = vmul.f32 %v7748_v21, %v7748_v21  ;;  %v7768_v56 = vadd.f32 %v3302_v52, %v7516_v15  ;;  %v7770_v2 = vpop.f32.mrb[82].mxu0  ;;  %v7772_v44 = vpop.f32.mrb[82].mxu1 }
 0x7ff   : > { %8737 = vst [vmem:[#allocation42_spill] sm:$0xff] %v7758_v62  ;;  %5921 = vtanh.f32 %v3688_v35  ;;  %v3563_v41 = vmul.f32 0.044715, %v3499_v51  ;;  %v3500_v19 = vmul.f32 %v3436_v13, %v7742_v32  ;;  %v3439_v30 = vmul.f32 %v7758_v62, %v7758_v62  ;;  %v7778_v43 = vpop.f32.mrb[83].mxu0  ;;  %v7780_v26 = vpop.f32.mrb[83].mxu1 }
 0x800   : > { %8738 = vst [vmem:[#allocation43_spill] sm:$0xff] %v7768_v56  ;;  %5923 = vtanh.f32 %v3690_v47  ;;  %v3565_v52 = vmul.f32 0.044715, %v3501_v58  ;;  %v3502_v61 = vmul.f32 %v3438_v10, %v7748_v21  ;;  %v3441_v18 = vmul.f32 %v7768_v56, %v7768_v56 }
 0x801   : > { %v3627_v63 = vadd.f32 %v3563_v41, %v7732_v33  ;;  %v3564_v20 = vmul.f32 0.044715, %v3500_v19  ;;  %v3503_v38 = vmul.f32 %v3439_v30, %v7758_v62  ;;  %v7788_v29 = vadd.f32 %v3191_v53, %v7518_v1 }
 0x802   : > { %v3629_v22 = vadd.f32 %v3565_v52, %v7736_v55  ;;  %v3566_v48 = vmul.f32 0.044715, %v3502_v61  ;;  %v3505_v7 = vmul.f32 %v3441_v18, %v7768_v56  ;;  %v7793_v35 = vadd.f32 %v3304_v4, %v7520_v60 }
 0x803   : > { %v7795_v14 = vpop.eup %5909  ;;  %v3691_v47 = vmul.f32 0.7978846, %v3627_v63  ;;  %v3628_v39 = vadd.f32 %v3564_v20, %v7742_v32  ;;  %v3567_v51 = vmul.f32 0.044715, %v3503_v38  ;;  %v3440_v13 = vmul.f32 %v7788_v29, %v7788_v29 }
 0x804   : > { %v5912_v58 = vpop.eup %5911  ;;  %v3693_v53 = vmul.f32 0.7978846, %v3629_v22  ;;  %v3630_v10 = vadd.f32 %v3566_v48, %v7748_v21  ;;  %v3569_v41 = vmul.f32 0.044715, %v3505_v7  ;;  %v3442_v19 = vmul.f32 %v7793_v35, %v7793_v35  ;;  %v7803_v30 = vpop.f32.mrb[84].mxu0 }
 0x805   : > { %v7805_v4 = vpop.f32.mrb[84].mxu1  ;;  %v7807_v52 = vpop.eup %5913  ;;  %v3813_v61 = vadd.f32 1.0, %v5912_v58  ;;  %5925 = vtanh.f32 %v3691_v47  ;;  %v3692_v18 = vmul.f32 0.7978846, %v3628_v39  ;;  %v3631_v63 = vadd.f32 %v3567_v51, %v7758_v62 }
 0x806   : > { %v7810_v20 = vpop.f32.mrb[85].mxu0  ;;  %v7812_v38 = vpop.f32.mrb[85].mxu1  ;;  %5927 = vtanh.f32 %v3693_v53  ;;  %v3694_v48 = vmul.f32 0.7978846, %v3630_v10  ;;  %v3633_v7 = vadd.f32 %v3569_v41, %v7768_v56  ;;  %v3504_v16 = vmul.f32 %v3440_v13, %v7788_v29 }
 0x807   : > { %v7814_v22 = vpop.eup %5915  ;;  %v7818_v40 = vpop.f32.mrb[86].mxu0  ;;  %v7825_v39 = vmul.f32 %v3813_v61, %v7691_v45  ;;  %5929 = vtanh.f32 %v3692_v18  ;;  %v3695_v51 = vmul.f32 0.7978846, %v3631_v63  ;;  %v3506_v58 = vmul.f32 %v3442_v19, %v7793_v35 }
 0x808   : > { %v7820_v3 = vpop.f32.mrb[86].mxu1  ;;  %v7822_v47 = vpop.eup %5917  ;;  %5931 = vtanh.f32 %v3694_v48  ;;  %v3697_v13 = vmul.f32 0.7978846, %v3633_v7  ;;  %v3568_v41 = vmul.f32 0.044715, %v3504_v16  ;;  %v7834_v57 = vadd.f32 %v7750_v9, %v7514_v12 }
 0x809   : > { %v7828_v46 = vpop.f32.mrb[87].mxu0  ;;  %v7830_v53 = vpop.f32.mrb[87].mxu1  ;;  %5933 = vtanh.f32 %v3695_v51  ;;  %v3570_v61 = vmul.f32 0.044715, %v3506_v58  ;;  %v7840_v19 = vadd.f32 %v7752_v17, %v7516_v15  ;;  %v7849_v9 = vadd.f32 %v7760_v6, %v7518_v1 }
 0x80a   : > { %v5920_v10 = vpop.eup %5919  ;;  %8739 = vst [vmem:[#allocation44_spill] sm:$0xff] %v7834_v57  ;;  %5935 = vtanh.f32 %v3697_v13  ;;  %v3632_v63 = vadd.f32 %v3568_v41, %v7788_v29  ;;  %v3443_v16 = vmul.f32 %v7834_v57, %v7834_v57  ;;  %v7859_v51 = vadd.f32 %v7762_v59, %v7520_v60 }
 0x80b   : > { %v7836_v25 = vpop.eup %5921  ;;  %v3817_v45 = vadd.f32 1.0, %v5920_v10  ;;  %8740 = vst [vmem:[#allocation45_spill] sm:$0xff] %v7840_v19  ;;  %8741 = vst [vmem:[#allocation46_spill] sm:$0xff] %v7849_v9  ;;  %v3634_v7 = vadd.f32 %v3570_v61, %v7793_v35  ;;  %v3445_v17 = vmul.f32 %v7840_v19, %v7840_v19  ;;  %v3444_v13 = vmul.f32 %v7849_v9, %v7849_v9 }
 0x80c   : > { %v7842_v18 = vpop.eup %5923  ;;  %8742 = vst [vmem:[#allocation47_spill] sm:$0xff] %v7859_v51  ;;  %v3696_v58 = vmul.f32 0.7978846, %v3632_v63  ;;  %v3507_v10 = vmul.f32 %v3443_v16, %v7834_v57  ;;  %v7866_v6 = vadd.f32 %v7770_v2, %v7514_v12  ;;  %v7870_v41 = vpop.f32.mrb[88].mxu1  ;;  %v3446_v59 = vmul.f32 %v7859_v51, %v7859_v51 }
 0x80d   : > { %v7852_v48 = vmul.f32 %v3817_v45, %v7713_v36  ;;  %v7868_v36 = vpop.f32.mrb[88].mxu0  ;;  %v3698_v45 = vmul.f32 0.7978846, %v3634_v7  ;;  %v3509_v61 = vmul.f32 %v3445_v17, %v7840_v19  ;;  %v7877_v63 = vadd.f32 %v7772_v44, %v7516_v15  ;;  %v7881_v23 = vpop.f32.mrb[89].mxu1 }
 0x80e   : > { %8743 = vst [vmem:[#allocation48_spill] sm:$0xff] %v7866_v6  ;;  %v7879_v16 = vpop.f32.mrb[89].mxu0  ;;  %5937 = vtanh.f32 %v3696_v58  ;;  %v3571_v2 = vmul.f32 0.044715, %v3507_v10  ;;  %v3508_v34 = vmul.f32 %v3444_v13, %v7849_v9  ;;  %v3447_v7 = vmul.f32 %v7866_v6, %v7866_v6  ;;  %v7888_v17 = vpop.f32.mrb[90].mxu1 }
 0x80f   : > { %8744 = vst [vmem:[#allocation49_spill] sm:$0xff] %v7877_v63  ;;  %v7886_v37 = vpop.f32.mrb[90].mxu0  ;;  %v7890_v42 = vpop.eup %5925  ;;  %5939 = vtanh.f32 %v3698_v45  ;;  %v3573_v44 = vmul.f32 0.044715, %v3509_v61  ;;  %v3510_v0 = vmul.f32 %v3446_v59, %v7859_v51  ;;  %v3449_v49 = vmul.f32 %v7877_v63, %v7877_v63 }
 0x810   : > { %8745 = vst [vmem:[#allocation50_spill] sm:$0xff] %v7890_v42  ;;  %v7895_v58 = vpop.f32.mrb[91].mxu0  ;;  %v7897_v10 = vpop.f32.mrb[91].mxu1  ;;  %v3635_v11 = vadd.f32 %v3571_v2, %v7834_v57  ;;  %v3572_v8 = vmul.f32 0.044715, %v3508_v34  ;;  %v3511_v50 = vmul.f32 %v3447_v7, %v7866_v6  ;;  %v7905_v45 = vadd.f32 %v7778_v43, %v7518_v1 }
 0x811   : > { %v7899_v13 = vpop.eup %5927  ;;  %v3637_v59 = vadd.f32 %v3573_v44, %v7840_v19  ;;  %v3574_v56 = vmul.f32 0.044715, %v3510_v0  ;;  %v3513_v55 = vmul.f32 %v3449_v49, %v7877_v63  ;;  %v7913_v42 = vadd.f32 %v7780_v26, %v7520_v60 }
 0x812   : > { %8746 = vst [vmem:[#allocation51_spill] sm:$0xff] %v7899_v13  ;;  %8747 = vst [vmem:[#allocation52_spill] sm:$0xff] %v7905_v45  ;;  %v7907_v61 = vpop.eup %5929  ;;  %v3699_v34 = vmul.f32 0.7978846, %v3635_v11  ;;  %v3636_v2 = vadd.f32 %v3572_v8, %v7849_v9  ;;  %v3575_v7 = vmul.f32 0.044715, %v3511_v50  ;;  %v3448_v43 = vmul.f32 %v7905_v45, %v7905_v45 }
 0x813   : > { %8748 = vst [vmem:[#allocation53_spill] sm:$0xff] %v7913_v42  ;;  %v7915_v13 = vpop.eup %5931  ;;  %v3701_v62 = vmul.f32 0.7978846, %v3637_v59  ;;  %v3638_v0 = vadd.f32 %v3574_v56, %v7859_v51  ;;  %v3577_v44 = vmul.f32 0.044715, %v3513_v55  ;;  %v3450_v49 = vmul.f32 %v7913_v42, %v7913_v42 }
 0x814   : > { %v7920_v57 = vpop.eup %5933  ;;  %5941 = vtanh.f32 %v3699_v34  ;;  %v3700_v19 = vmul.f32 0.7978846, %v3636_v2  ;;  %v3639_v11 = vadd.f32 %v3575_v7, %v7866_v6  ;;  %v3512_v50 = vmul.f32 %v3448_v43, %v7905_v45  ;;  %v7929_v8 = vpop.f32.mrb[92].mxu0 }
 0x815   : > { %8749 = vst [vmem:[#allocation54_spill] sm:$0xff] %v7920_v57  ;;  %v7925_v26 = vpop.eup %5935  ;;  %v7931_v9 = vpop.f32.mrb[92].mxu1  ;;  %5943 = vtanh.f32 %v3701_v62  ;;  %v3702_v59 = vmul.f32 0.7978846, %v3638_v0  ;;  %v3641_v56 = vadd.f32 %v3577_v44, %v7877_v63  ;;  %v3514_v55 = vmul.f32 %v3450_v49, %v7913_v42 }
 0x816   : > { %8750 = vst [vmem:[#allocation55_spill] sm:$0xff] %v7925_v26  ;;  %v7935_v51 = vpop.f32.mrb[93].mxu0  ;;  %v7937_v57 = vpop.f32.mrb[93].mxu1  ;;  %5945 = vtanh.f32 %v3700_v19  ;;  %v3703_v34 = vmul.f32 0.7978846, %v3639_v11  ;;  %v7941_v7 = vadd.f32 %v7803_v30, %v7514_v12  ;;  %v7949_v44 = vadd.f32 %v7805_v4, %v7516_v15 }
 0x817   : > { %v3576_v2 = vmul.f32 0.044715, %v3512_v50  ;;  %v7943_v43 = vpop.f32.mrb[94].mxu0  ;;  %v7945_v6 = vpop.f32.mrb[94].mxu1  ;;  %5947 = vtanh.f32 %v3702_v59  ;;  %v3705_v62 = vmul.f32 0.7978846, %v3641_v56  ;;  %v7962_v59 = vadd.f32 %v7810_v20, %v7518_v1 }
 0x818   : > { %8751 = vst [vmem:[#allocation56_spill] sm:$0xff] %v7941_v7  ;;  %v3578_v0 = vmul.f32 0.044715, %v3514_v55  ;;  %8752 = vst [vmem:[#allocation57_spill] sm:$0xff] %v7949_v44  ;;  %v7951_v49 = vpop.f32.mrb[95].mxu0  ;;  %v7953_v19 = vpop.f32.mrb[95].mxu1  ;;  %5949 = vtanh.f32 %v3703_v34  ;;  %v3451_v50 = vmul.f32 %v7941_v7, %v7941_v7  ;;  %v3453_v55 = vmul.f32 %v7949_v44, %v7949_v44 }
 0x819   : > { %8753 = vst [vmem:[#allocation58_spill] sm:$0xff] %v7951_v49  ;;  %8754 = vst [vmem:[#allocation59_spill] sm:$0xff] %v7953_v19  ;;  %v7955_v11 = vpop.eup %5937  ;;  %v3640_v30 = vadd.f32 %v3576_v2, %v7905_v45  ;;  %5951 = vtanh.f32 %v3705_v62  ;;  %v7971_v34 = vadd.f32 %v7812_v38, %v7520_v60  ;;  %v3452_v45 = vmul.f32 %v7962_v59, %v7962_v59 }
 0x81a   : > { %8755 = vst [vmem:[#allocation60_spill] sm:$0xff] %v7962_v59  ;;  %v7964_v56 = vpop.eup %5939  ;;  %v3642_v4 = vadd.f32 %v3578_v0, %v7913_v42  ;;  %v3515_v63 = vmul.f32 %v3451_v50, %v7941_v7  ;;  %v7978_v20 = vadd.f32 %v7818_v40, %v7514_v12  ;;  %v3517_v0 = vmul.f32 %v3453_v55, %v7949_v44 }
 0x81b   : > { %8756 = vst [vmem:[#allocation61_spill] sm:$0xff] %v7971_v34  ;;  %v3704_v2 = vmul.f32 0.7978846, %v3640_v30  ;;  %v3454_v42 = vmul.f32 %v7971_v34, %v7971_v34  ;;  %v7985_v38 = vadd.f32 %v7820_v3, %v7516_v15  ;;  %v3516_v50 = vmul.f32 %v3452_v45, %v7962_v59 }
 0x81c   : > { %8757 = vst [vmem:[#allocation62_spill] sm:$0xff] %v7978_v20  ;;  %v3706_v62 = vmul.f32 0.7978846, %v3642_v4  ;;  %v3579_v30 = vmul.f32 0.044715, %v3515_v63  ;;  %v3455_v19 = vmul.f32 %v7978_v20, %v7978_v20  ;;  %v7999_v63 = vadd.f32 %v7828_v46, %v7518_v1 }
 0x81d   : > { %8758 = vst [vmem:[#allocation63_spill] sm:$0xff] %v7985_v38  ;;  %5953 = vtanh.f32 %v3704_v2  ;;  %v3581_v40 = vmul.f32 0.044715, %v3517_v0  ;;  %v3518_v4 = vmul.f32 %v3454_v42, %v7971_v34  ;;  %v3457_v55 = vmul.f32 %v7985_v38, %v7985_v38 }
 0x81e   : > { %5955 = vtanh.f32 %v3706_v62  ;;  %v7993_v49 = vpop.eup %5941  ;;  %v3643_v26 = vadd.f32 %v3579_v30, %v7941_v7  ;;  %v3580_v3 = vmul.f32 0.044715, %v3516_v50  ;;  %v3519_v2 = vmul.f32 %v3455_v19, %v7978_v20 }
 0x81f   : > { %8759 = vst [vmem:[#allocation64_spill] sm:$0xff] %v7993_v49  ;;  %v8001_v45 = vpop.eup %5943  ;;  %v3645_v62 = vadd.f32 %v3581_v40, %v7949_v44  ;;  %v3582_v0 = vmul.f32 0.044715, %v3518_v4  ;;  %v3521_v42 = vmul.f32 %v3457_v55, %v7985_v38  ;;  %v8007_v33 = vadd.f32 %v7830_v53, %v7520_v60 }
 0x820   : > { %8760 = vst [vmem:[#allocation65_spill] sm:$0xff] %v8001_v45  ;;  %v8009_v49 = vpop.eup %5945  ;;  %v3707_v30 = vmul.f32 0.7978846, %v3643_v26  ;;  %v3644_v19 = vadd.f32 %v3580_v3, %v7962_v59  ;;  %v3583_v50 = vmul.f32 0.044715, %v3519_v2  ;;  %v3456_v46 = vmul.f32 %v7999_v63, %v7999_v63 }
 0x821   : > { %v8014_v7 = vpop.eup %5947  ;;  %v3709_v45 = vmul.f32 0.7978846, %v3645_v62  ;;  %v3646_v40 = vadd.f32 %v3582_v0, %v7971_v34  ;;  %v3585_v4 = vmul.f32 0.044715, %v3521_v42  ;;  %v3458_v55 = vmul.f32 %v8007_v33, %v8007_v33 }
 0x822   : > { %v8019_v53 = vpop.eup %5949  ;;  %5957 = vtanh.f32 %v3707_v30  ;;  %v3708_v44 = vmul.f32 0.7978846, %v3644_v19  ;;  %v3647_v26 = vadd.f32 %v3583_v50, %v7978_v20  ;;  %v3520_v3 = vmul.f32 %v3456_v46, %v7999_v63 }
 0x823   : > { %8761 = vst [vmem:[#allocation66_spill] sm:$0xff] %v8019_v53  ;;  %v8023_v2 = vpop.eup %5951  ;;  %5959 = vtanh.f32 %v3709_v45  ;;  %v3710_v59 = vmul.f32 0.7978846, %v3646_v40  ;;  %v3649_v62 = vadd.f32 %v3585_v4, %v7985_v38  ;;  %v3522_v0 = vmul.f32 %v3458_v55, %v8007_v33 }
 0x824   : > { %5961 = vtanh.f32 %v3708_v44  ;;  %v3711_v42 = vmul.f32 0.7978846, %v3647_v26  ;;  %v3584_v34 = vmul.f32 0.044715, %v3520_v3  ;;  %v8029_v53 = vadd.f32 %v7868_v36, %v7514_v12 }
 0x825   : > { %5963 = vtanh.f32 %v3710_v59  ;;  %v3713_v30 = vmul.f32 0.7978846, %v3649_v62  ;;  %v3586_v19 = vmul.f32 0.044715, %v3522_v0  ;;  %v8033_v50 = vadd.f32 %v7870_v41, %v7516_v15 }
 0x826   : > { %5965 = vtanh.f32 %v3711_v42  ;;  %v3648_v46 = vadd.f32 %v3584_v34, %v7999_v63  ;;  %v3459_v44 = vmul.f32 %v8029_v53, %v8029_v53  ;;  %v8042_v40 = vadd.f32 %v7879_v16, %v7518_v1 }
 0x827   : > { %v8035_v45 = vpop.eup %5953  ;;  %5967 = vtanh.f32 %v3713_v30  ;;  %v3650_v59 = vadd.f32 %v3586_v19, %v8007_v33  ;;  %v3461_v41 = vmul.f32 %v8033_v50, %v8033_v50  ;;  %v8051_v4 = vadd.f32 %v7881_v23, %v7520_v60 }
 0x828   : > { %v8044_v36 = vpop.eup %5955  ;;  %v3712_v34 = vmul.f32 0.7978846, %v3648_v46  ;;  %v3523_v55 = vmul.f32 %v3459_v44, %v8029_v53  ;;  %v3460_v26 = vmul.f32 %v8042_v40, %v8042_v40  ;;  %v3364_v16 = vmul.f32 0.5, %v7681_v24 }
 0x829   : > { %v3714_v3 = vmul.f32 0.7978846, %v3650_v59  ;;  %v3525_v62 = vmul.f32 %v3461_v41, %v8033_v50  ;;  %v3462_v0 = vmul.f32 %v8051_v4, %v8051_v4  ;;  %v3368_v42 = vmul.f32 0.5, %v7703_v31 }
 0x82a   : > { %5969 = vtanh.f32 %v3712_v34  ;;  %v3587_v30 = vmul.f32 0.044715, %v3523_v55  ;;  %v3524_v23 = vmul.f32 %v3460_v26, %v8042_v40  ;;  %v3812_v19 = vadd.f32 1.0, %v7807_v52 }
 0x82b   : > { %5971 = vtanh.f32 %v3714_v3  ;;  %v3589_v46 = vmul.f32 0.044715, %v3525_v62  ;;  %v3526_v44 = vmul.f32 %v3462_v0, %v8051_v4  ;;  %v3816_v24 = vadd.f32 1.0, %v7836_v25 }
 0x82c   : > { %v8065_v59 = vpop.eup %5957  ;;  %v3651_v41 = vadd.f32 %v3587_v30, %v8029_v53  ;;  %v3588_v38 = vmul.f32 0.044715, %v3524_v23  ;;  %v3876_v20 = vmul.f32 %v3812_v19, %v3364_v16  ;;  %v3366_v31 = vmul.f32 0.5, %v7684_v5 }
 0x82d   : > { %8762 = vst [vmem:[#allocation67_spill] sm:$0xff] %v8065_v59  ;;  %v8069_v34 = vpop.eup %5959  ;;  %v3653_v55 = vadd.f32 %v3589_v46, %v8033_v50  ;;  %v3590_v26 = vmul.f32 0.044715, %v3526_v44  ;;  %v3880_v52 = vmul.f32 %v3816_v24, %v3368_v42  ;;  %v3370_v3 = vmul.f32 0.5, %v7709_v27 }
 0x82e   : > { %v8073_v62 = vpop.eup %5961  ;;  %v3715_v0 = vmul.f32 0.7978846, %v3651_v41  ;;  %v3652_v25 = vadd.f32 %v3588_v38, %v8042_v40  ;;  %v3814_v59 = vadd.f32 1.0, %v7814_v22  ;;  %v3818_v30 = vadd.f32 1.0, %v7842_v18 }
 0x82f   : > { %v8078_v16 = vpop.eup %5963  ;;  %v3717_v5 = vmul.f32 0.7978846, %v3653_v55  ;;  %v3654_v23 = vadd.f32 %v3590_v26, %v8051_v4  ;;  %v3932_v19 = vpack.c.bf16 %v3880_v52, %v3876_v20  ;;  %v8083_v42 = vadd.f32 %v7886_v37, %v7514_v12 }
 0x830   : > { %v8085_v27 = vpop.eup %5965  ;;  %5973 = vtanh.f32 %v3715_v0  ;;  %v3716_v46 = vmul.f32 0.7978846, %v3652_v25  ;;  %v3878_v44 = vmul.f32 %v3814_v59, %v3366_v31  ;;  %v3882_v38 = vmul.f32 %v3818_v30, %v3370_v3 }
 0x831   : > { %v8087_v24 = vpop.eup %5967  ;;  %5975 = vtanh.f32 %v3717_v5  ;;  %v3718_v22 = vmul.f32 0.7978846, %v3654_v23  ;;  %4266 = vmatprep.mubr.bf16.mxu0 %v3932_v19  ;;  %v3463_v18 = vmul.f32 %v8083_v42, %v8083_v42  ;;  %v8093_v20 = vadd.f32 %v7888_v17, %v7516_v15 }
 0x832   : > { %5977 = vtanh.f32 %v3716_v46  ;;  %v3934_v37 = vpack.c.bf16 %v3882_v38, %v3878_v44  ;;  %v3363_v41 = vmul.f32 0.5, %v7675_v28  ;;  %v3367_v55 = vmul.f32 0.5, %v7694_v54 }
 0x833   : > { %5979 = vtanh.f32 %v3718_v22  ;;  %v3527_v59 = vmul.f32 %v3463_v18, %v8083_v42  ;;  %v3465_v31 = vmul.f32 %v8093_v20, %v8093_v20  ;;  %v3811_v26 = vadd.f32 1.0, %v7795_v14 }
 0x834   : > { %v8101_v52 = vpop.eup %5969  ;;  %4363 = vmatprep.mubr.bf16.mxu1 %v3934_v37  ;;  %v3815_v17 = vadd.f32 1.0, %v7822_v47  ;;  %v3933_v3 = vpack.c.bf16 %v7852_v48, %v7825_v39  ;;  %v8108_v28 = vadd.f32 %v7895_v58, %v7518_v1  ;;  %v8112_v54 = vadd.f32 %v7897_v10, %v7520_v60 }
 0x835   : > { %v8114_v0 = vpop.eup %5971  ;;  %v3591_v25 = vmul.f32 0.044715, %v3527_v59  ;;  %v3529_v14 = vmul.f32 %v3465_v31, %v8093_v20  ;;  %v3875_v30 = vmul.f32 %v3811_v26, %v3363_v41  ;;  %v8119_v47 = vadd.f32 %v7929_v8, %v7514_v12 }
 0x836   : > { %v3879_v5 = vmul.f32 %v3815_v17, %v3367_v55  ;;  %4364 = vmatmul.mubr.bf16.vlgmr.msra.gmra.mrb[96].mxu1 %v3933_v3  ;;  %v3464_v39 = vmul.f32 %v8108_v28, %v8108_v28  ;;  %v3466_v48 = vmul.f32 %v8112_v54, %v8112_v54  ;;  %v8127_v58 = vadd.f32 %v7931_v9, %v7516_v15 }
 0x837   : > { %v3655_v10 = vadd.f32 %v3591_v25, %v8083_v42  ;;  %v3593_v23 = vmul.f32 0.044715, %v3529_v14  ;;  %v3467_v19 = vmul.f32 %v8119_v47, %v8119_v47  ;;  %v8134_v8 = vadd.f32 %v7935_v51, %v7518_v1 }
 0x838   : > { %v3931_v46 = vpack.c.bf16 %v3879_v5, %v3875_v30  ;;  %v3528_v44 = vmul.f32 %v3464_v39, %v8108_v28  ;;  %v3530_v38 = vmul.f32 %v3466_v48, %v8112_v54  ;;  %v3469_v22 = vmul.f32 %v8127_v58, %v8127_v58 }
 0x839   : > { %v3719_v9 = vmul.f32 0.7978846, %v3655_v10  ;;  %v3657_v18 = vadd.f32 %v3593_v23, %v8093_v20  ;;  %v3531_v37 = vmul.f32 %v3467_v19, %v8119_v47  ;;  %v3468_v41 = vmul.f32 %v8134_v8, %v8134_v8 }
 0x83a   : > { %v8144_v55 = vpop.eup %5973  ;;  %4267 = vmatmul.mubr.bf16.gmra.mrb[104].mxu0 %v3931_v46  ;;  %v3592_v51 = vmul.f32 0.044715, %v3528_v44  ;;  %v3594_v59 = vmul.f32 0.044715, %v3530_v38  ;;  %v3533_v31 = vmul.f32 %v3469_v22, %v8127_v58  ;;  %v8149_v26 = vadd.f32 %v7937_v57, %v7520_v60 }
 0x83b   : > { %v8151_v17 = vpop.eup %5975  ;;  %5981 = vtanh.f32 %v3719_v9  ;;  %v3721_v3 = vmul.f32 0.7978846, %v3657_v18  ;;  %v3595_v25 = vmul.f32 0.044715, %v3531_v37  ;;  %v3532_v14 = vmul.f32 %v3468_v41, %v8134_v8 }
 0x83c   : > { %v8154_v30 = vpop.eup %5977  ;;  %v3656_v5 = vadd.f32 %v3592_v51, %v8108_v28  ;;  %v3658_v39 = vadd.f32 %v3594_v59, %v8112_v54  ;;  %v3597_v48 = vmul.f32 0.044715, %v3533_v31  ;;  %v3470_v10 = vmul.f32 %v8149_v26, %v8149_v26 }
 0x83d   : > { %v8160_v23 = vpop.eup %5979  ;;  %5983 = vtanh.f32 %v3721_v3  ;;  %v3659_v57 = vadd.f32 %v3595_v25, %v8119_v47  ;;  %v3596_v19 = vmul.f32 0.044715, %v3532_v14  ;;  %v3372_v46 = vmul.f32 0.5, %v7742_v32 }
 0x83e   : > { %v3720_v44 = vmul.f32 0.7978846, %v3656_v5  ;;  %v3722_v38 = vmul.f32 0.7978846, %v3658_v39  ;;  %v3661_v22 = vadd.f32 %v3597_v48, %v8127_v58  ;;  %v3534_v9 = vmul.f32 %v3470_v10, %v8149_v26 }
 0x83f   : > { %v3723_v18 = vmul.f32 0.7978846, %v3659_v57  ;;  %v3660_v37 = vadd.f32 %v3596_v19, %v8134_v8  ;;  %v3376_v41 = vmul.f32 0.5, %v7788_v29  ;;  %v3820_v51 = vadd.f32 1.0, %v7907_v61 }
 0x840   : > { %5985 = vtanh.f32 %v3720_v44  ;;  %v3725_v59 = vmul.f32 0.7978846, %v3661_v22  ;;  %v3598_v31 = vmul.f32 0.044715, %v3534_v9  ;;  %v3824_v3 = vadd.f32 1.0, %v7955_v11  ;;  %v8763_v44 = vld [vmem:[#allocation40_spill] sm:$0xff] }
 0x841   : > { %5987 = vtanh.f32 %v3722_v38  ;;  %v3724_v32 = vmul.f32 0.7978846, %v3660_v37  ;;  %v3884_v25 = vmul.f32 %v3820_v51, %v3372_v46  ;;  %v3374_v14 = vmul.f32 0.5, %v7748_v21  ;;  %v8765_v22 = vld [vmem:[#allocation50_spill] sm:$0xff]  ;;  %v8767_v51 = vld [vmem:[#allocation41_spill] sm:$0xff] }
 0x842   : > { %5989 = vtanh.f32 %v3723_v18  ;;  %v3662_v5 = vadd.f32 %v3598_v31, %v8149_v26  ;;  %v3888_v39 = vmul.f32 %v3824_v3, %v3376_v41  ;;  %v3378_v48 = vmul.f32 0.5, %v7793_v35  ;;  %v8766_v37 = vld [vmem:[#allocation54_spill] sm:$0xff] }
 0x843   : > { %5991 = vtanh.f32 %v3725_v59  ;;  %v3822_v29 = vadd.f32 1.0, %v7915_v13  ;;  %v3826_v61 = vadd.f32 1.0, %v7964_v56  ;;  %v8177_v10 = vadd.f32 %v7943_v43, %v7514_v12  ;;  %v8764_v43 = vld [vmem:[#allocation42_spill] sm:$0xff] }
 0x844   : > { %5993 = vtanh.f32 %v3724_v32  ;;  %v3726_v11 = vmul.f32 0.7978846, %v3662_v5  ;;  %v3936_v57 = vpack.c.bf16 %v3888_v39, %v3884_v25  ;;  %v8181_v21 = vadd.f32 %v7945_v6, %v7516_v15  ;;  %v8768_v32 = vld [vmem:[#allocation43_spill] sm:$0xff] }
 0x845   : > { %v8183_v19 = vpop.eup %5981  ;;  %v3886_v46 = vmul.f32 %v3822_v29, %v3374_v14  ;;  %v3890_v35 = vmul.f32 %v3826_v61, %v3378_v48  ;;  %v3471_v13 = vmul.f32 %v8177_v10, %v8177_v10  ;;  %v3371_v56 = vmul.f32 0.5, %v8763_v44  ;;  %v8769_v14 = vld [vmem:[#allocation51_spill] sm:$0xff] }
 0x846   : > { %5995 = vtanh.f32 %v3726_v11  ;;  %4274 = vmatprep.mubr.bf16.mxu0 %v3936_v57  ;;  %v3473_v12 = vmul.f32 %v8181_v21, %v8181_v21  ;;  %v3375_v38 = vmul.f32 0.5, %v8764_v43  ;;  %v3819_v9 = vadd.f32 1.0, %v8765_v22  ;;  %v8770_v29 = vld [vmem:[#allocation55_spill] sm:$0xff]  ;;  %v8771_v11 = vld [vmem:[#allocation58_spill] sm:$0xff] }
 0x847   : > { %v8192_v15 = vpop.eup %5983  ;;  %v3938_v6 = vpack.c.bf16 %v3890_v35, %v3886_v46  ;;  %v3535_v18 = vmul.f32 %v3471_v13, %v8177_v10  ;;  %v3823_v41 = vadd.f32 1.0, %v8766_v37  ;;  %v3373_v59 = vmul.f32 0.5, %v8767_v51  ;;  %v8772_v44 = vld [vmem:[#allocation59_spill] sm:$0xff] }
 0x848   : > { %v3537_v31 = vmul.f32 %v3473_v12, %v8181_v21  ;;  %v3883_v3 = vmul.f32 %v3819_v9, %v3371_v56  ;;  %v3377_v25 = vmul.f32 0.5, %v8768_v32  ;;  %v3821_v5 = vadd.f32 1.0, %v8769_v14  ;;  %v8773_v12 = vld [vmem:[#allocation46_spill] sm:$0xff] }
 0x849   : > { %4371 = vmatprep.mubr.bf16.mxu1 %v3938_v6  ;;  %v3599_v39 = vmul.f32 0.044715, %v3535_v18  ;;  %v3887_v48 = vmul.f32 %v3823_v41, %v3375_v38  ;;  %v3825_v61 = vadd.f32 1.0, %v8770_v29  ;;  %v8203_v57 = vadd.f32 %v8771_v11, %v7518_v1 }
 0x84a   : > { %v8205_v46 = vpop.eup %5985  ;;  %v3601_v35 = vmul.f32 0.044715, %v3537_v31  ;;  %v3885_v13 = vmul.f32 %v3821_v5, %v3373_v59  ;;  %v8209_v56 = vadd.f32 %v8772_v44, %v7520_v60  ;;  %v3380_v43 = vmul.f32 0.5, %v8773_v12  ;;  %v8774_v60 = vld [vmem:[#allocation52_spill] sm:$0xff]  ;;  %v8777_v44 = vld [vmem:[#allocation53_spill] sm:$0xff] }
 0x84b   : > { %v8212_v22 = vpop.eup %5987  ;;  %v3663_v38 = vadd.f32 %v3599_v39, %v8177_v10  ;;  %v3935_v9 = vpack.c.bf16 %v3887_v48, %v3883_v3  ;;  %v3889_v6 = vmul.f32 %v3825_v61, %v3377_v25  ;;  %v3472_v1 = vmul.f32 %v8203_v57, %v8203_v57  ;;  %v8776_v61 = vld [vmem:[#allocation47_spill] sm:$0xff] }
 0x84c   : > { %v8217_v18 = vpop.eup %5989  ;;  %v3665_v37 = vadd.f32 %v3601_v35, %v8181_v21  ;;  %v3474_v41 = vmul.f32 %v8209_v56, %v8209_v56  ;;  %v3384_v51 = vmul.f32 0.5, %v8774_v60  ;;  %v3828_v59 = vadd.f32 1.0, %v8009_v49 }
 0x84d   : > { %v8224_v31 = vpop.eup %5991  ;;  %v3727_v32 = vmul.f32 0.7978846, %v3663_v38  ;;  %4275 = vmatmul.mubr.bf16.gmra.mrb[108].mxu0 %v3935_v9  ;;  %v3937_v3 = vpack.c.bf16 %v3889_v6, %v3885_v13  ;;  %v3536_v25 = vmul.f32 %v3472_v1, %v8203_v57  ;;  %v3832_v14 = vadd.f32 1.0, %v8035_v45 }
 0x84e   : > { %8775 = vst [vmem:[#allocation40_spill] sm:$0xff] %v8224_v31  ;;  %v8228_v5 = vpop.eup %5993  ;;  %v3729_v39 = vmul.f32 0.7978846, %v3665_v37  ;;  %v3538_v48 = vmul.f32 %v3474_v41, %v8209_v56  ;;  %v3892_v29 = vmul.f32 %v3828_v59, %v3380_v43  ;;  %v3382_v11 = vmul.f32 0.5, %v8776_v61  ;;  %v8778_v43 = vld [vmem:[#allocation44_spill] sm:$0xff] }
 0x84f   : > { %5997 = vtanh.f32 %v3727_v32  ;;  %4372 = vmatmul.mubr.bf16.gmra.mrb[100].mxu1 %v3937_v3  ;;  %v3600_v49 = vmul.f32 0.044715, %v3536_v25  ;;  %v3896_v35 = vmul.f32 %v3832_v14, %v3384_v51  ;;  %v3386_v12 = vmul.f32 0.5, %v8777_v44  ;;  %v8779_v41 = vld [vmem:[#allocation48_spill] sm:$0xff] }
 0x850   : > { %v8233_v38 = vpop.eup %5995  ;;  %5999 = vtanh.f32 %v3729_v39  ;;  %v3602_v13 = vmul.f32 0.044715, %v3538_v48  ;;  %v3830_v45 = vadd.f32 1.0, %v8014_v7  ;;  %v3834_v9 = vadd.f32 1.0, %v8044_v36  ;;  %v8780_v3 = vld [vmem:[#allocation64_spill] sm:$0xff]  ;;  %v8781_v39 = vld [vmem:[#allocation66_spill] sm:$0xff] }
 0x851   : > { %v3664_v6 = vadd.f32 %v3600_v49, %v8203_v57  ;;  %v3940_v1 = vpack.c.bf16 %v3896_v35, %v3892_v29  ;;  %v3379_v37 = vmul.f32 0.5, %v8778_v43  ;;  %v3383_v60 = vmul.f32 0.5, %v8779_v41  ;;  %v8782_v7 = vld [vmem:[#allocation45_spill] sm:$0xff] }
 0x852   : > { %v3666_v59 = vadd.f32 %v3602_v13, %v8209_v56  ;;  %v3894_v51 = vmul.f32 %v3830_v45, %v3382_v11  ;;  %v3898_v32 = vmul.f32 %v3834_v9, %v3386_v12  ;;  %v3827_v25 = vadd.f32 1.0, %v8780_v3  ;;  %v8783_v36 = vld [vmem:[#allocation49_spill] sm:$0xff]  ;;  %v8785_v12 = vld [vmem:[#allocation60_spill] sm:$0xff] }
 0x853   : > { %v3728_v14 = vmul.f32 0.7978846, %v3664_v6  ;;  %4282 = vmatprep.mubr.bf16.mxu0 %v3940_v1  ;;  %v3831_v48 = vadd.f32 1.0, %v8781_v39  ;;  %v3381_v61 = vmul.f32 0.5, %v8782_v7  ;;  %v3385_v44 = vmul.f32 0.5, %v8783_v36  ;;  %v8784_v43 = vld [vmem:[#allocation65_spill] sm:$0xff] }
 0x854   : > { %v3730_v49 = vmul.f32 0.7978846, %v3666_v59  ;;  %v3942_v29 = vpack.c.bf16 %v3898_v32, %v3894_v51  ;;  %v3891_v35 = vmul.f32 %v3827_v25, %v3379_v37  ;;  %v3829_v31 = vadd.f32 1.0, %v8784_v43  ;;  %v8786_v37 = vld [vmem:[#allocation61_spill] sm:$0xff]  ;;  %v8787_v39 = vld [vmem:[#allocation56_spill] sm:$0xff] }
 0x855   : > { %6001 = vtanh.f32 %v3728_v14  ;;  %v3895_v41 = vmul.f32 %v3831_v48, %v3383_v60  ;;  %v3833_v11 = vadd.f32 1.0, %v8023_v2  ;;  %v3388_v13 = vmul.f32 0.5, %v8785_v12  ;;  %v8788_v48 = vld [vmem:[#allocation62_spill] sm:$0xff] }
 0x856   : > { %6003 = vtanh.f32 %v3730_v49  ;;  %4379 = vmatprep.mubr.bf16.mxu1 %v3942_v29  ;;  %v3893_v45 = vmul.f32 %v3829_v31, %v3381_v61  ;;  %v3392_v9 = vmul.f32 0.5, %v7999_v63  ;;  %v3836_v6 = vadd.f32 1.0, %v8073_v62 }
 0x857   : > { %v3939_v1 = vpack.c.bf16 %v3895_v41, %v3891_v35  ;;  %v3897_v3 = vmul.f32 %v3833_v11, %v3385_v44  ;;  %v3840_v59 = vadd.f32 1.0, %v8101_v52  ;;  %v3390_v51 = vmul.f32 0.5, %v8786_v37  ;;  %v8789_v44 = vld [vmem:[#allocation67_spill] sm:$0xff] }
 0x858   : > { %v3900_v32 = vmul.f32 %v3836_v6, %v3388_v13  ;;  %v3394_v60 = vmul.f32 0.5, %v8007_v33  ;;  %v3838_v2 = vadd.f32 1.0, %v8078_v16  ;;  %v3842_v25 = vadd.f32 1.0, %v8114_v0  ;;  %v8790_v0 = vld [vmem:[#allocation57_spill] sm:$0xff]  ;;  %v8791_v35 = vld [vmem:[#allocation63_spill] sm:$0xff] }
 0x859   : > { %v8255_v14 = vpop.eup %5997  ;;  %4283 = vmatmul.mubr.bf16.gmra.mrb[112].mxu0 %v3939_v1  ;;  %v3941_v31 = vpack.c.bf16 %v3897_v3, %v3893_v45  ;;  %v3904_v63 = vmul.f32 %v3840_v59, %v3392_v9  ;;  %v3387_v62 = vmul.f32 0.5, %v8787_v39  ;;  %v3391_v7 = vmul.f32 0.5, %v8788_v48 }
 0x85a   : > { %v8259_v61 = vpop.eup %5999  ;;  %v3902_v52 = vmul.f32 %v3838_v2, %v3390_v51  ;;  %v3906_v36 = vmul.f32 %v3842_v25, %v3394_v60  ;;  %v3835_v49 = vadd.f32 1.0, %v8789_v44  ;;  %v3839_v33 = vadd.f32 1.0, %v8085_v27 }
 0x85b   : > { %4380 = vmatmul.mubr.bf16.gmra.mrb[104].mxu1 %v3941_v31  ;;  %v3944_v16 = vpack.c.bf16 %v3904_v63, %v3900_v32  ;;  %v3389_v29 = vmul.f32 0.5, %v8790_v0  ;;  %v3393_v43 = vmul.f32 0.5, %v8791_v35  ;;  %v3837_v41 = vadd.f32 1.0, %v8069_v34 }
 0x85c   : > { %v3946_v11 = vpack.c.bf16 %v3906_v36, %v3902_v52  ;;  %v3899_v12 = vmul.f32 %v3835_v49, %v3387_v62  ;;  %v3903_v13 = vmul.f32 %v3839_v33, %v3391_v7  ;;  %v3841_v45 = vadd.f32 1.0, %v8087_v24 }
 0x85d   : > { %4290 = vmatprep.mubr.bf16.mxu0 %v3944_v16  ;;  %v3901_v9 = vmul.f32 %v3837_v41, %v3389_v29  ;;  %v3396_v6 = vmul.f32 0.5, %v8042_v40  ;;  %v3400_v1 = vmul.f32 0.5, %v8108_v28  ;;  %v3844_v27 = vadd.f32 1.0, %v8154_v30 }
 0x85e   : > { %4387 = vmatprep.mubr.bf16.mxu1 %v3946_v11  ;;  %v3943_v3 = vpack.c.bf16 %v3903_v13, %v3899_v12  ;;  %v3905_v59 = vmul.f32 %v3841_v45, %v3393_v43  ;;  %v3848_v37 = vadd.f32 1.0, %v8205_v46  ;;  %v3398_v34 = vmul.f32 0.5, %v8051_v4 }
 0x85f   : > { %v6002_v51 = vpop.eup %6001  ;;  %v3908_v32 = vmul.f32 %v3844_v27, %v3396_v6  ;;  %v3402_v60 = vmul.f32 0.5, %v8112_v54  ;;  %v3846_v24 = vadd.f32 1.0, %v8160_v23  ;;  %v3850_v2 = vadd.f32 1.0, %v8212_v22  ;;  %v8794_v6 = vld [vmem:[#allocation39_spill] sm:$0xff] }
 0x860   : > { %v6004_v40 = vpop.eup %6003  ;;  %v3945_v25 = vpack.c.bf16 %v3905_v59, %v3901_v9  ;;  %v3912_v28 = vmul.f32 %v3848_v37, %v3400_v1  ;;  %v3395_v30 = vmul.f32 0.5, %v8029_v53  ;;  %v3399_v31 = vmul.f32 0.5, %v8083_v42  ;;  %v8798_v37 = vld [vmem:[#allocation32_spill] sm:$0xff] }
 0x861   : > { %4291 = vmatmul.mubr.bf16.gmra.mrb[116].mxu0 %v3943_v3  ;;  %v3910_v63 = vmul.f32 %v3846_v24, %v3398_v34  ;;  %v3914_v46 = vmul.f32 %v3850_v2, %v3402_v60  ;;  %v3843_v4 = vadd.f32 1.0, %v8144_v55  ;;  %v3847_v39 = vadd.f32 1.0, %v8183_v19  ;;  %v8799_v34 = vld [vmem:[#allocation33_spill] sm:$0xff] }
 0x862   : > { %v3948_v62 = vpack.c.bf16 %v3912_v28, %v3908_v32  ;;  %v3397_v54 = vmul.f32 0.5, %v8033_v50  ;;  %v3401_v23 = vmul.f32 0.5, %v8093_v20  ;;  %v3845_v22 = vadd.f32 1.0, %v8151_v17  ;;  %v8802_v32 = vld [vmem:[#allocation36_spill] sm:$0xff] }
 0x863   : > { %4388 = vmatmul.mubr.bf16.gmra.mrb[108].mxu1 %v3945_v25  ;;  %v3950_v48 = vpack.c.bf16 %v3914_v46, %v3910_v63  ;;  %v3907_v7 = vmul.f32 %v3843_v4, %v3395_v30  ;;  %v3911_v53 = vmul.f32 %v3847_v39, %v3399_v31  ;;  %v3849_v42 = vadd.f32 1.0, %v8192_v15 }
 0x864   : > { %4298 = vmatprep.mubr.bf16.mxu0 %v3948_v62  ;;  %v3909_v52 = vmul.f32 %v3845_v22, %v3397_v54  ;;  %v3404_v36 = vmul.f32 0.5, %v8134_v8  ;;  %v3408_v55 = vmul.f32 0.5, %v8203_v57  ;;  %v3852_v19 = vadd.f32 1.0, %v8228_v5 }
 0x865   : > { %4395 = vmatprep.mubr.bf16.mxu1 %v3950_v48  ;;  %v3947_v50 = vpack.c.bf16 %v3911_v53, %v3907_v7  ;;  %v3913_v44 = vmul.f32 %v3849_v42, %v3401_v23  ;;  %v3856_v20 = vadd.f32 1.0, %v6002_v51  ;;  %v3406_v17 = vmul.f32 0.5, %v8149_v26 }
 0x866   : > { %v3916_v49 = vmul.f32 %v3852_v19, %v3404_v36  ;;  %v3410_v33 = vmul.f32 0.5, %v8209_v56  ;;  %v3854_v16 = vadd.f32 1.0, %v8233_v38  ;;  %v3858_v15 = vadd.f32 1.0, %v6004_v40  ;;  %v8792_v38 = vld [vmem:[#allocation40_spill] sm:$0xff] }
 0x867   : > { %v3949_v0 = vpack.c.bf16 %v3913_v44, %v3909_v52  ;;  %v3920_v29 = vmul.f32 %v3856_v20, %v3408_v55  ;;  %v3403_v8 = vmul.f32 0.5, %v8119_v47  ;;  %v3407_v57 = vmul.f32 0.5, %v8177_v10  ;;  %v8793_v10 = vld [vmem:[#allocation38_spill] sm:$0xff]  ;;  %v8319_v19 = vld [vmem:[%s8637_s16] ss:$0 sm:$0xff] }
 0x868   : > { %v3918_v35 = vmul.f32 %v3854_v16, %v3406_v17  ;;  %v3922_v5 = vmul.f32 %v3858_v15, %v3410_v33  ;;  %v3851_v43 = vadd.f32 1.0, %v8217_v18  ;;  %v3855_v41 = vadd.f32 1.0, %v8255_v14  ;;  %v8804_v16 = vld [vmem:[#allocation20_spill] sm:$0xff] }
 0x869   : > { %4299 = vmatmul.mubr.bf16.gmra.mrb[120].mxu0 %v3947_v50  ;;  %v3952_v26 = vpack.c.bf16 %v3920_v29, %v3916_v49  ;;  %v3405_v11 = vmul.f32 0.5, %v8127_v58  ;;  %v3409_v56 = vmul.f32 0.5, %v8181_v21  ;;  %v3853_v12 = vadd.f32 1.0, %v8792_v38  ;;  %v8795_v58 = vld [vmem:[#allocation35_spill] sm:$0xff]  ;;  %v8796_v21 = vld [vmem:[#allocation34_spill] sm:$0xff] }
 0x86a   : > { %v3954_v13 = vpack.c.bf16 %v3922_v5, %v3918_v35  ;;  %v3915_v45 = vmul.f32 %v3851_v43, %v3403_v8  ;;  %v3919_v9 = vmul.f32 %v3855_v41, %v3407_v57  ;;  %v3857_v47 = vadd.f32 1.0, %v8259_v61  ;;  %v8801_v61 = vld [vmem:[#allocation37_spill] sm:$0xff] }
 0x86b   : > { %4396 = vmatmul.mubr.bf16.gmra.mrb[112].mxu1 %v3949_v0  ;;  %4306 = vmatprep.mubr.bf16.mxu0 %v3952_v26  ;;  %v3930_v18 = vpack.c.bf16 %v8794_v6, %v8793_v10  ;;  %v3917_v1 = vmul.f32 %v3853_v12, %v3405_v11  ;;  %v8797_v59 = vpack.c.bf16 %v8795_v58, %v8796_v21  ;;  %v8805_v0 = vld [vmem:[#allocation21_spill] sm:$0xff]  ;;  %v8806_v6 = vld [vmem:[#allocation23_spill] sm:$0xff] }
 0x86c   : > { %4403 = vmatprep.mubr.bf16.mxu1 %v3954_v13  ;;  %v3951_v14 = vpack.c.bf16 %v3919_v9, %v3915_v45  ;;  %v3921_v27 = vmul.f32 %v3857_v47, %v3409_v56  ;;  %v8800_v51 = vpack.c.bf16 %v8798_v37, %v8799_v34  ;;  %v8803_v60 = vpack.c.bf16 %v8801_v61, %v8802_v32 }
 0x86e   : > { %v3953_v3 = vpack.c.bf16 %v3921_v27, %v3917_v1 }
 0x871   : > { %4307 = vmatmul.mubr.bf16.gmra.mrb[124].mxu0 %v3951_v14  ;;  %v8807_v14 = vld [vmem:[#allocation22_spill] sm:$0xff] }
 0x872   : > { %4347 = vmatprep.mubr.bf16.mxu0 %v8797_v59 }
 0x873   : > { %4404 = vmatmul.mubr.bf16.gmra.mrb[116].mxu1 %v3953_v3 }
 0x879   : > { %4348 = vmatmul.mubr.bf16.vlgmr.msra.gmra.mrb[128].mxu0 %v8800_v51 }
 0x87a   : > { %4355 = vmatprep.mubr.bf16.mxu0 %v3930_v18 }
 0x881   : > { %4356 = vmatmul.mubr.bf16.gmra.mrb[132].mxu0 %v8803_v60 }
 0x8b3   : > { %v5098_v24 = vpop.f32.mrb[96].mxu0 }
 0x8b4   : > { %v5099_v2 = vpop.f32.mrb[97].mxu0 }
 0x8b5   : > { %v8308_v40 = vadd.f32 %v5099_v2, %v5098_v24  ;;  %v5101_v25 = vpop.f32.mrb[98].mxu0 }
 0x8b6   : > { %v5102_v28 = vpop.f32.mrb[99].mxu0 }
 0x8b7   : > { %v8310_v30 = vadd.f32 %v5102_v28, %v5101_v25 }
 0x8c1   : > { %v5104_v31 = vpop.f32.mrb[100].mxu0 }
 0x8c2   : > { %v5105_v63 = vpop.f32.mrb[101].mxu0 }
 0x8c3   : > { %v8312_v46 = vadd.f32 %v5105_v63, %v5104_v31  ;;  %v5107_v4 = vpop.f32.mrb[102].mxu0 }
 0x8c4   : > { %v5108_v39 = vpop.f32.mrb[103].mxu0 }
 0x8c5   : > { %v8314_v62 = vadd.f32 %v5108_v39, %v5107_v4  ;;  %v8808_v4 = vld [vmem:[#allocation25_spill] sm:$0xff] }
 0x909   : > { %v5174_v54 = vpop.f32.mrb[96].mxu1 }
 0x90a   : > { %v5175_v23 = vpop.f32.mrb[97].mxu1 }
 0x90b   : > { %v5176_v22 = vadd.f32 %v5175_v23, %v5174_v54  ;;  %v5177_v48 = vpop.f32.mrb[98].mxu1 }
 0x90c   : > { %v5178_v7 = vpop.f32.mrb[99].mxu1 }
 0x90d   : > { %v5110_v53 = vpop.f32.mrb[104].mxu0  ;;  %v5179_v42 = vadd.f32 %v5178_v7, %v5177_v48  ;;  %v8809_v7 = vld [vmem:[#allocation24_spill] sm:$0xff] }
 0x90e   : > { %v5111_v52 = vpop.f32.mrb[105].mxu0 }
 0x90f   : > { %v5112_v36 = vadd.f32 %v5111_v52, %v5110_v53  ;;  %v5113_v55 = vpop.f32.mrb[106].mxu0 }
 0x910   : > { %v5114_v50 = vpop.f32.mrb[107].mxu0 }
 0x911   : > { %v4269_v44 = vadd.f32 %v5112_v36, %v8319_v19  ;;  %v5115_v20 = vadd.f32 %v5114_v50, %v5113_v55 }
 0x913   : > { %v4366_v17 = vadd.f32 %v5176_v22, %v4269_v44  ;;  %v4272_v49 = vadd.f32 %v5115_v20, %v8319_v19 }
 0x915   : > { %v4369_v33 = vadd.f32 %v5179_v42, %v4272_v49  ;;  %v8324_v15 = vadd.f32 %v4366_v17, %v8804_v16 }
 0x917   : > { %4438 = vadd.xlane.f32.xlu0 %v8324_v15  ;;  %v8328_v29 = vadd.f32 %v4369_v33, %v8805_v0 }
 0x919   : > { %4440 = vadd.xlane.f32.xlu1 %v8328_v29 }
 0x920   : > { %v5116_v8 = vpop.f32.mrb[108].mxu0 }
 0x921   : > { %v5117_v57 = vpop.f32.mrb[109].mxu0 }
 0x922   : > { %v5180_v35 = vpop.f32.mrb[100].mxu1  ;;  %v5118_v5 = vadd.f32 %v5117_v57, %v5116_v8  ;;  %v5119_v43 = vpop.f32.mrb[110].mxu0  ;;  %v8810_v8 = vld [vmem:[#allocation27_spill] sm:$0xff] }
 0x923   : > { %v5181_v41 = vpop.f32.mrb[101].mxu1  ;;  %v5120_v26 = vpop.f32.mrb[111].mxu0 }
 0x924   : > { %v4277_v11 = vadd.f32 %v5118_v5, %v8319_v19  ;;  %v5182_v56 = vadd.f32 %v5181_v41, %v5180_v35  ;;  %v5183_v38 = vpop.f32.mrb[102].mxu1  ;;  %v5121_v12 = vadd.f32 %v5120_v26, %v5119_v43  ;;  %v8811_v26 = vld [vmem:[#allocation26_spill] sm:$0xff] }
 0x925   : > { %v5184_v13 = vpop.f32.mrb[103].mxu1 }
 0x926   : > { %v4374_v45 = vadd.f32 %v5182_v56, %v4277_v11  ;;  %v4280_v9 = vadd.f32 %v5121_v12, %v8319_v19  ;;  %v5185_v47 = vadd.f32 %v5184_v13, %v5183_v38 }
 0x928   : > { %v4377_v10 = vadd.f32 %v5185_v47, %v4280_v9  ;;  %v8334_v18 = vadd.f32 %v4374_v45, %v8806_v6 }
 0x92a   : > { %4442 = vadd.xlane.f32.xlu0 %v8334_v18  ;;  %v8338_v1 = vadd.f32 %v4377_v10, %v8807_v14 }
 0x92c   : > { %v5122_v27 = vpop.f32.mrb[112].mxu0  ;;  %4444 = vadd.xlane.f32.xlu1 %v8338_v1 }
 0x92d   : > { %v5123_v3 = vpop.f32.mrb[113].mxu0 }
 0x92e   : > { %v5186_v58 = vpop.f32.mrb[104].mxu1  ;;  %v5124_v21 = vadd.f32 %v5123_v3, %v5122_v27  ;;  %v5125_v59 = vpop.f32.mrb[114].mxu0 }
 0x92f   : > { %v5187_v37 = vpop.f32.mrb[105].mxu1  ;;  %v5126_v34 = vpop.f32.mrb[115].mxu0 }
 0x930   : > { %v4285_v51 = vadd.f32 %v5124_v21, %v8319_v19  ;;  %v5188_v61 = vadd.f32 %v5187_v37, %v5186_v58  ;;  %v5189_v32 = vpop.f32.mrb[106].mxu1  ;;  %v5127_v60 = vadd.f32 %v5126_v34, %v5125_v59  ;;  %v8812_v58 = vld [vmem:[#allocation29_spill] sm:$0xff] }
 0x931   : > { %v5190_v24 = vpop.f32.mrb[107].mxu1 }
 0x932   : > { %v4382_v2 = vadd.f32 %v5188_v61, %v4285_v51  ;;  %v4288_v25 = vadd.f32 %v5127_v60, %v8319_v19  ;;  %v5191_v28 = vadd.f32 %v5190_v24, %v5189_v32  ;;  %v8813_v61 = vld [vmem:[#allocation28_spill] sm:$0xff] }
 0x934   : > { %v4385_v31 = vadd.f32 %v5191_v28, %v4288_v25  ;;  %v5128_v63 = vpop.f32.mrb[116].mxu0  ;;  %v8344_v39 = vadd.f32 %v4382_v2, %v8808_v4 }
 0x935   : > { %v5129_v54 = vpop.f32.mrb[117].mxu0 }
 0x936   : > { %v5192_v23 = vpop.f32.mrb[108].mxu1  ;;  %v5130_v22 = vadd.f32 %v5129_v54, %v5128_v63  ;;  %v5131_v48 = vpop.f32.mrb[118].mxu0  ;;  %4446 = vadd.xlane.f32.xlu0 %v8344_v39  ;;  %v8348_v53 = vadd.f32 %v4385_v31, %v8809_v7 }
 0x937   : > { %v5193_v42 = vpop.f32.mrb[109].mxu1  ;;  %v5132_v52 = vpop.f32.mrb[119].mxu0 }
 0x938   : > { %v4293_v36 = vadd.f32 %v5130_v22, %v8319_v19  ;;  %v5194_v55 = vadd.f32 %v5193_v42, %v5192_v23  ;;  %v5195_v50 = vpop.f32.mrb[110].mxu1  ;;  %v5133_v44 = vadd.f32 %v5132_v52, %v5131_v48  ;;  %4448 = vadd.xlane.f32.xlu1 %v8348_v53  ;;  %v4253_v42 = vadd.f32 %v8308_v40, %v8319_v19 }
 0x939   : > { %v5196_v20 = vpop.f32.mrb[111].mxu1  ;;  %v4261_v40 = vadd.f32 %v8312_v46, %v8319_v19  ;;  %v8818_v46 = vld [vmem:[#allocation31_spill] sm:$0xff] }
 0x93a   : > { %v4390_v17 = vadd.f32 %v5194_v55, %v4293_v36  ;;  %v4296_v49 = vadd.f32 %v5133_v44, %v8319_v19  ;;  %v5197_v33 = vadd.f32 %v5196_v20, %v5195_v50  ;;  %v4256_v50 = vadd.f32 %v8310_v30, %v8319_v19 }
 0x93c   : > { %v4393_v16 = vadd.f32 %v5197_v33, %v4296_v49  ;;  %v5134_v0 = vpop.f32.mrb[120].mxu0  ;;  %v8354_v57 = vadd.f32 %v4390_v17, %v8810_v8  ;;  %v8814_v49 = vld [vmem:[#allocation16_spill] sm:$0xff] }
 0x93d   : > { %v5135_v35 = vpop.f32.mrb[121].mxu0 }
 0x93e   : > { %v5198_v5 = vpop.f32.mrb[112].mxu1  ;;  %v5136_v43 = vadd.f32 %v5135_v35, %v5134_v0  ;;  %v5137_v41 = vpop.f32.mrb[122].mxu0  ;;  %4450 = vadd.xlane.f32.xlu0 %v8354_v57  ;;  %v8358_v11 = vadd.f32 %v4393_v16, %v8811_v26  ;;  %v8815_v0 = vld [vmem:[#allocation17_spill] sm:$0xff] }
 0x93f   : > { %v5199_v56 = vpop.f32.mrb[113].mxu1  ;;  %v5138_v38 = vpop.f32.mrb[123].mxu0 }
 0x940   : > { %v4301_v12 = vadd.f32 %v5136_v43, %v8319_v19  ;;  %v5200_v13 = vadd.f32 %v5199_v56, %v5198_v5  ;;  %v5201_v45 = vpop.f32.mrb[114].mxu1  ;;  %v5139_v9 = vadd.f32 %v5138_v38, %v5137_v41  ;;  %4452 = vadd.xlane.f32.xlu1 %v8358_v11  ;;  %v4264_v41 = vadd.f32 %v8314_v62, %v8319_v19 }
 0x941   : > { %v5202_v47 = vpop.f32.mrb[115].mxu1 }
 0x942   : > { %v4398_v10 = vadd.f32 %v5200_v13, %v4301_v12  ;;  %v4304_v6 = vadd.f32 %v5139_v9, %v8319_v19  ;;  %v5203_v14 = vadd.f32 %v5202_v47, %v5201_v45  ;;  %v8816_v12 = vld [vmem:[#allocation18_spill] sm:$0xff]  ;;  %v8817_v45 = vld [vmem:[#allocation19_spill] sm:$0xff] }
 0x944   : > { %v4401_v27 = vadd.f32 %v5203_v14, %v4304_v6  ;;  %v5140_v3 = vpop.f32.mrb[124].mxu0  ;;  %v8364_v21 = vadd.f32 %v4398_v10, %v8812_v58  ;;  %v8819_v10 = vld [vmem:[#allocation30_spill] sm:$0xff] }
 0x945   : > { %v5141_v59 = vpop.f32.mrb[125].mxu0 }
 0x946   : > { %v5204_v37 = vpop.f32.mrb[116].mxu1  ;;  %v5142_v34 = vadd.f32 %v5141_v59, %v5140_v3  ;;  %4454 = vadd.xlane.f32.xlu0 %v8364_v21  ;;  %v5143_v51 = vpop.f32.mrb[126].mxu0  ;;  %v8368_v32 = vadd.f32 %v4401_v27, %v8813_v61 }
 0x947   : > { %v5205_v60 = vpop.f32.mrb[117].mxu1  ;;  %v5144_v24 = vpop.f32.mrb[127].mxu0 }
 0x948   : > { %v4309_v2 = vadd.f32 %v5142_v34, %v8319_v19  ;;  %v5206_v25 = vadd.f32 %v5205_v60, %v5204_v37  ;;  %v5207_v28 = vpop.f32.mrb[118].mxu1  ;;  %v5145_v31 = vadd.f32 %v5144_v24, %v5143_v51  ;;  %4456 = vadd.xlane.f32.xlu1 %v8368_v32 }
 0x949   : > { %v5208_v63 = vpop.f32.mrb[119].mxu1 }
 0x94a   : > { %v4406_v4 = vadd.f32 %v5206_v25, %v4309_v2  ;;  %v4312_v54 = vadd.f32 %v5145_v31, %v8319_v19  ;;  %v5209_v23 = vadd.f32 %v5208_v63, %v5207_v28 }
 0x94c   : > { %v4409_v22 = vadd.f32 %v5209_v23, %v4312_v54  ;;  %v5162_v48 = vpop.f32.mrb[128].mxu0  ;;  %v8398_v47 = vadd.f32 %v4406_v4, %v8818_v46 }
 0x94d   : > { %v5163_v7 = vpop.f32.mrb[129].mxu0 }
 0x94e   : > { %v5164_v52 = vadd.f32 %v5163_v7, %v5162_v48  ;;  %v5165_v36 = vpop.f32.mrb[130].mxu0  ;;  %v8402_v62 = vadd.f32 %v4409_v22, %v8819_v10 }
 0x94f   : > { %v5166_v55 = vpop.f32.mrb[131].mxu0 }
 0x950   : > { %v4350_v44 = vadd.f32 %v5164_v52, %v4253_v42  ;;  %v5167_v20 = vadd.f32 %v5166_v55, %v5165_v36 }
 0x952   : > { %v4353_v17 = vadd.f32 %v5167_v20, %v4256_v50  ;;  %v8378_v33 = vadd.f32 %v4350_v44, %v8814_v49 }
 0x954   : > { %v5168_v16 = vpop.f32.mrb[132].mxu0  ;;  %4430 = vadd.xlane.f32.xlu0 %v8378_v33  ;;  %v8382_v8 = vadd.f32 %v4353_v17, %v8815_v0 }
 0x955   : > { %v5169_v35 = vpop.f32.mrb[133].mxu0 }
 0x956   : > { %v5170_v5 = vadd.f32 %v5169_v35, %v5168_v16  ;;  %v5171_v43 = vpop.f32.mrb[134].mxu0  ;;  %4432 = vadd.xlane.f32.xlu1 %v8382_v8 }
 0x957   : > { %v5172_v30 = vpop.f32.mrb[135].mxu0 }
 0x958   : > { %v4358_v26 = vadd.f32 %v5170_v5, %v4261_v40  ;;  %v5173_v56 = vadd.f32 %v5172_v30, %v5171_v43 }
 0x95a   : > { %v4361_v38 = vadd.f32 %v5173_v56, %v4264_v41  ;;  %v8390_v13 = vadd.f32 %v4358_v26, %v8816_v12 }
 0x95c   : > { %4434 = vadd.xlane.f32.xlu0 %v8390_v13  ;;  %v8394_v9 = vadd.f32 %v4361_v38, %v8817_v45 }
 0x95e   : > { %4436 = vadd.xlane.f32.xlu1 %v8394_v9 }
 0x960   : > { %4458 = vadd.xlane.f32.xlu0 %v8398_v47 }
 0x962   : > { %4460 = vadd.xlane.f32.xlu1 %v8402_v62 }
 0x9a4   : > { %v4439_v19 = vpop.xlane.xlu0 %4438 }
 0x9a5   : > { %v4466_v6 = vmul.f32 0.0078125, %v4439_v19 }
 0x9a6   : > { %v4441_v14 = vpop.xlane.xlu1 %4440 }
 0x9a7   : > { %v8406_v27 = vsub.f32 %v8324_v15, %v4466_v6  ;;  %v4467_v3 = vmul.f32 0.0078125, %v4441_v14 }
 0x9a9   : > { %v8409_v58 = vsub.f32 %v8328_v29, %v4467_v3  ;;  %v4498_v59 = vmul.f32 %v8406_v27, %v8406_v27 }
 0x9ab   : > { %4518 = vadd.xlane.f32.xlu0 %v4498_v59  ;;  %v4499_v37 = vmul.f32 %v8409_v58, %v8409_v58 }
 0x9ad   : > { %4520 = vadd.xlane.f32.xlu1 %v4499_v37 }
 0x9b7   : > { %v4443_v34 = vpop.xlane.xlu0 %4442 }
 0x9b8   : > { %v4468_v51 = vmul.f32 0.0078125, %v4443_v34 }
 0x9b9   : > { %v4445_v61 = vpop.xlane.xlu1 %4444 }
 0x9ba   : > { %v8416_v60 = vsub.f32 %v8334_v18, %v4468_v51  ;;  %v4469_v15 = vmul.f32 0.0078125, %v4445_v61  ;;  %v8489_v51 = vld [vmem:[%s8638_s17] ss:$0 sm:$0xff] }
 0x9bc   : > { %v8419_v24 = vsub.f32 %v8338_v1, %v4469_v15  ;;  %v4500_v29 = vmul.f32 %v8416_v60, %v8416_v60 }
 0x9be   : > { %4522 = vadd.xlane.f32.xlu0 %v4500_v29  ;;  %v4501_v2 = vmul.f32 %v8419_v24, %v8419_v24  ;;  %v8497_v29 = vld [vmem:[%s8639_s18] ss:$0 sm:$0xff] }
 0x9c0   : > { %4524 = vadd.xlane.f32.xlu1 %v4501_v2 }
 0x9c3   : > { %v4447_v25 = vpop.xlane.xlu0 %4446 }
 0x9c4   : > { %v4470_v28 = vmul.f32 0.0078125, %v4447_v25 }
 0x9c5   : > { %v4449_v31 = vpop.xlane.xlu1 %4448 }
 0x9c6   : > { %v8426_v63 = vsub.f32 %v8344_v39, %v4470_v28  ;;  %v4471_v18 = vmul.f32 0.0078125, %v4449_v31 }
 0x9c8   : > { %v8429_v4 = vsub.f32 %v8348_v53, %v4471_v18  ;;  %v4502_v1 = vmul.f32 %v8426_v63, %v8426_v63 }
 0x9ca   : > { %4526 = vadd.xlane.f32.xlu0 %v4502_v1  ;;  %v4503_v54 = vmul.f32 %v8429_v4, %v8429_v4 }
 0x9cb   : > { %v4451_v23 = vpop.xlane.xlu0 %4450 }
 0x9cc   : > { %v4472_v22 = vmul.f32 0.0078125, %v4451_v23  ;;  %4528 = vadd.xlane.f32.xlu1 %v4503_v54 }
 0x9cd   : > { %v4453_v48 = vpop.xlane.xlu1 %4452 }
 0x9ce   : > { %v8436_v7 = vsub.f32 %v8354_v57, %v4472_v22  ;;  %v4473_v39 = vmul.f32 0.0078125, %v4453_v48 }
 0x9d0   : > { %v8439_v42 = vsub.f32 %v8358_v11, %v4473_v39  ;;  %v4504_v53 = vmul.f32 %v8436_v7, %v8436_v7 }
 0x9d2   : > { %4530 = vadd.xlane.f32.xlu0 %v4504_v53  ;;  %v4505_v52 = vmul.f32 %v8439_v42, %v8439_v42 }
 0x9d3   : > { %v4455_v36 = vpop.xlane.xlu0 %4454 }
 0x9d4   : > { %v4474_v55 = vmul.f32 0.0078125, %v4455_v36  ;;  %4532 = vadd.xlane.f32.xlu1 %v4505_v52 }
 0x9d5   : > { %v4457_v50 = vpop.xlane.xlu1 %4456 }
 0x9d6   : > { %v8446_v44 = vsub.f32 %v8364_v21, %v4474_v55  ;;  %v4475_v57 = vmul.f32 0.0078125, %v4457_v50 }
 0x9d8   : > { %v8449_v20 = vsub.f32 %v8368_v32, %v4475_v57  ;;  %v4506_v11 = vmul.f32 %v8446_v44, %v8446_v44 }
 0x9da   : > { %4534 = vadd.xlane.f32.xlu0 %v4506_v11  ;;  %v4507_v17 = vmul.f32 %v8449_v20, %v8449_v20 }
 0x9dc   : > { %4536 = vadd.xlane.f32.xlu1 %v4507_v17 }
 0x9e1   : > { %v4431_v49 = vpop.xlane.xlu0 %4430 }
 0x9e2   : > { %v4462_v16 = vmul.f32 0.0078125, %v4431_v49 }
 0x9e3   : > { %v4433_v0 = vpop.xlane.xlu1 %4432 }
 0x9e4   : > { %v8456_v35 = vsub.f32 %v8378_v33, %v4462_v16  ;;  %v4463_v21 = vmul.f32 0.0078125, %v4433_v0 }
 0x9e6   : > { %v8459_v40 = vsub.f32 %v8382_v8, %v4463_v21  ;;  %v4494_v32 = vmul.f32 %v8456_v35, %v8456_v35 }
 0x9e8   : > { %4510 = vadd.xlane.f32.xlu0 %v4494_v32  ;;  %v4495_v5 = vmul.f32 %v8459_v40, %v8459_v40 }
 0x9e9   : > { %v4435_v43 = vpop.xlane.xlu0 %4434 }
 0x9ea   : > { %v4464_v30 = vmul.f32 0.0078125, %v4435_v43  ;;  %4512 = vadd.xlane.f32.xlu1 %v4495_v5 }
 0x9eb   : > { %v4437_v41 = vpop.xlane.xlu1 %4436 }
 0x9ec   : > { %v8466_v26 = vsub.f32 %v8390_v13, %v4464_v30  ;;  %v4465_v33 = vmul.f32 0.0078125, %v4437_v41 }
 0x9ed   : > { %v4459_v56 = vpop.xlane.xlu0 %4458 }
 0x9ee   : > { %v8469_v38 = vsub.f32 %v8394_v9, %v4465_v33  ;;  %v4476_v8 = vmul.f32 0.0078125, %v4459_v56  ;;  %v4496_v12 = vmul.f32 %v8466_v26, %v8466_v26 }
 0x9ef   : > { %v4461_v45 = vpop.xlane.xlu1 %4460 }
 0x9f0   : > { %v8474_v46 = vsub.f32 %v8398_v47, %v4476_v8  ;;  %v4477_v10 = vmul.f32 0.0078125, %v4461_v45  ;;  %4514 = vadd.xlane.f32.xlu0 %v4496_v12  ;;  %v4497_v13 = vmul.f32 %v8469_v38, %v8469_v38 }
 0x9f2   : > { %v8479_v19 = vsub.f32 %v8402_v62, %v4477_v10  ;;  %4516 = vadd.xlane.f32.xlu1 %v4497_v13  ;;  %v4508_v9 = vmul.f32 %v8474_v46, %v8474_v46 }
 0x9f4   : > { %4538 = vadd.xlane.f32.xlu0 %v4508_v9  ;;  %v4509_v6 = vmul.f32 %v8479_v19, %v8479_v19 }
 0x9f6   : > { %4540 = vadd.xlane.f32.xlu1 %v4509_v6 }
 0xa38   : > { %v4519_v47 = vpop.xlane.xlu0 %4518 }
 0xa39   : > { %v4546_v14 = vmul.f32 0.0078125, %v4519_v47 }
 0xa3a   : > { %v4521_v3 = vpop.xlane.xlu1 %4520 }
 0xa3b   : > { %v4562_v59 = vadd.f32 1e-05, %v4546_v14  ;;  %v4547_v37 = vmul.f32 0.0078125, %v4521_v3 }
 0xa3d   : > { %6005 = vrsqrt.f32 %v4562_v59  ;;  %v4563_v34 = vadd.f32 1e-05, %v4547_v37 }
 0xa3f   : > { %6007 = vrsqrt.f32 %v4563_v34 }
 0xa47   : > { %v6006_v62 = vpop.eup %6005 }
 0xa48   : > { %v4594_v61 = vmul.f32 %v6006_v62, %v8406_v27 }
 0xa49   : > { %v6008_v15 = vpop.eup %6007 }
 0xa4a   : > { %v4616_v2 = vmul.f32 %v8489_v51, %v4594_v61  ;;  %v4595_v25 = vmul.f32 %v6008_v15, %v8409_v58 }
 0xa4b   : > { %v4523_v28 = vpop.xlane.xlu0 %4522 }
 0xa4c   : > { %v4638_v31 = vadd.f32 %v8497_v29, %v4616_v2  ;;  %v4617_v18 = vmul.f32 %v8489_v51, %v4595_v25  ;;  %v4548_v1 = vmul.f32 0.0078125, %v4523_v28 }
 0xa4d   : > { %v4525_v54 = vpop.xlane.xlu1 %4524 }
 0xa4e   : > { %4654 = vst [vmem:[%s8503_s19 + $0x20] sm:$0xff] %v4638_v31  ;;  %v4639_v27 = vadd.f32 %v8497_v29, %v4617_v18  ;;  %v4564_v23 = vadd.f32 1e-05, %v4548_v1  ;;  %v4549_v22 = vmul.f32 0.0078125, %v4525_v54 }
 0xa50   : > { %4655 = vst [vmem:[%s8503_s19 + $0x28] sm:$0xff] %v4639_v27  ;;  %6009 = vrsqrt.f32 %v4564_v23  ;;  %v4565_v48 = vadd.f32 1e-05, %v4549_v22 }
 0xa52   : > { %6011 = vrsqrt.f32 %v4565_v48 }
 0xa57   : > { %v4527_v58 = vpop.xlane.xlu0 %4526 }
 0xa58   : > { %v4550_v39 = vmul.f32 0.0078125, %v4527_v58 }
 0xa59   : > { %v4529_v53 = vpop.xlane.xlu1 %4528 }
 0xa5a   : > { %v6010_v52 = vpop.eup %6009  ;;  %v4566_v36 = vadd.f32 1e-05, %v4550_v39  ;;  %v4551_v55 = vmul.f32 0.0078125, %v4529_v53 }
 0xa5b   : > { %v4596_v50 = vmul.f32 %v6010_v52, %v8416_v60 }
 0xa5c   : > { %v6012_v57 = vpop.eup %6011  ;;  %6013 = vrsqrt.f32 %v4566_v36  ;;  %v4567_v11 = vadd.f32 1e-05, %v4551_v55 }
 0xa5d   : > { %v4618_v17 = vmul.f32 %v8489_v51, %v4596_v50  ;;  %v4597_v49 = vmul.f32 %v6012_v57, %v8419_v24 }
 0xa5e   : > { %6015 = vrsqrt.f32 %v4567_v11 }
 0xa5f   : > { %v4640_v16 = vadd.f32 %v8497_v29, %v4618_v17  ;;  %v4619_v0 = vmul.f32 %v8489_v51, %v4597_v49  ;;  %v4531_v21 = vpop.xlane.xlu0 %4530 }
 0xa60   : > { %v4552_v32 = vmul.f32 0.0078125, %v4531_v21 }
 0xa61   : > { %4656 = vst [vmem:[%s8503_s19 + $0x30] sm:$0xff] %v4640_v16  ;;  %v4641_v5 = vadd.f32 %v8497_v29, %v4619_v0  ;;  %v4533_v43 = vpop.xlane.xlu1 %4532 }
 0xa62   : > { %v4568_v60 = vadd.f32 1e-05, %v4552_v32  ;;  %v4553_v30 = vmul.f32 0.0078125, %v4533_v43 }
 0xa63   : > { %4657 = vst [vmem:[%s8503_s19 + $0x38] sm:$0xff] %v4641_v5 }
 0xa64   : > { %6017 = vrsqrt.f32 %v4568_v60  ;;  %v4569_v41 = vadd.f32 1e-05, %v4553_v30 }
 0xa66   : > { %v6014_v33 = vpop.eup %6013  ;;  %6019 = vrsqrt.f32 %v4569_v41 }
 0xa67   : > { %v4598_v24 = vmul.f32 %v6014_v33, %v8426_v63  ;;  %v4535_v56 = vpop.xlane.xlu0 %4534 }
 0xa68   : > { %v6016_v8 = vpop.eup %6015  ;;  %v4554_v12 = vmul.f32 0.0078125, %v4535_v56 }
 0xa69   : > { %v4620_v45 = vmul.f32 %v8489_v51, %v4598_v24  ;;  %v4599_v10 = vmul.f32 %v6016_v8, %v8429_v4  ;;  %v4537_v13 = vpop.xlane.xlu1 %4536 }
 0xa6a   : > { %v4570_v9 = vadd.f32 1e-05, %v4554_v12  ;;  %v4555_v6 = vmul.f32 0.0078125, %v4537_v13 }
 0xa6b   : > { %v4642_v47 = vadd.f32 %v8497_v29, %v4620_v45  ;;  %v4621_v14 = vmul.f32 %v8489_v51, %v4599_v10 }
 0xa6c   : > { %6021 = vrsqrt.f32 %v4570_v9  ;;  %v4571_v3 = vadd.f32 1e-05, %v4555_v6 }
 0xa6d   : > { %4658 = vst [vmem:[%s8503_s19 + $0x40] sm:$0xff] %v4642_v47  ;;  %v4643_v63 = vadd.f32 %v8497_v29, %v4621_v14 }
 0xa6e   : > { %v6018_v59 = vpop.eup %6017  ;;  %6023 = vrsqrt.f32 %v4571_v3 }
 0xa6f   : > { %4659 = vst [vmem:[%s8503_s19 + $0x48] sm:$0xff] %v4643_v63  ;;  %v4600_v37 = vmul.f32 %v6018_v59, %v8436_v7 }
 0xa70   : > { %v6020_v4 = vpop.eup %6019 }
 0xa71   : > { %v4622_v34 = vmul.f32 %v8489_v51, %v4600_v37  ;;  %v4601_v62 = vmul.f32 %v6020_v4, %v8439_v42 }
 0xa73   : > { %v4644_v61 = vadd.f32 %v8497_v29, %v4622_v34  ;;  %v4623_v15 = vmul.f32 %v8489_v51, %v4601_v62 }
 0xa75   : > { %4660 = vst [vmem:[%s8503_s19 + $0x50] sm:$0xff] %v4644_v61  ;;  %v4645_v2 = vadd.f32 %v8497_v29, %v4623_v15  ;;  %v4511_v25 = vpop.xlane.xlu0 %4510 }
 0xa76   : > { %v6022_v28 = vpop.eup %6021  ;;  %v4542_v31 = vmul.f32 0.0078125, %v4511_v25 }
 0xa77   : > { %4661 = vst [vmem:[%s8503_s19 + $0x58] sm:$0xff] %v4645_v2  ;;  %v4602_v18 = vmul.f32 %v6022_v28, %v8446_v44  ;;  %v4513_v7 = vpop.xlane.xlu1 %4512 }
 0xa78   : > { %v6024_v1 = vpop.eup %6023  ;;  %v4558_v54 = vadd.f32 1e-05, %v4542_v31  ;;  %v4543_v27 = vmul.f32 0.0078125, %v4513_v7 }
 0xa79   : > { %v4624_v42 = vmul.f32 %v8489_v51, %v4602_v18  ;;  %v4603_v23 = vmul.f32 %v6024_v1, %v8449_v20 }
 0xa7a   : > { %6025 = vrsqrt.f32 %v4558_v54  ;;  %v4559_v22 = vadd.f32 1e-05, %v4543_v27 }
 0xa7b   : > { %v4646_v48 = vadd.f32 %v8497_v29, %v4624_v42  ;;  %v4625_v58 = vmul.f32 %v8489_v51, %v4603_v23 }
 0xa7c   : > { %6027 = vrsqrt.f32 %v4559_v22 }
 0xa7d   : > { %4662 = vst [vmem:[%s8503_s19 + $0x60] sm:$0xff] %v4646_v48  ;;  %v4647_v39 = vadd.f32 %v8497_v29, %v4625_v58  ;;  %v4515_v44 = vpop.xlane.xlu0 %4514 }
 0xa7e   : > { %v4544_v53 = vmul.f32 0.0078125, %v4515_v44 }
 0xa7f   : > { %4663 = vst [vmem:[%s8503_s19 + $0x68] sm:$0xff] %v4647_v39  ;;  %v4517_v52 = vpop.xlane.xlu1 %4516 }
 0xa80   : > { %v4560_v36 = vadd.f32 1e-05, %v4544_v53  ;;  %v4545_v55 = vmul.f32 0.0078125, %v4517_v52 }
 0xa81   : > { %v4539_v50 = vpop.xlane.xlu0 %4538 }
 0xa82   : > { %6029 = vrsqrt.f32 %v4560_v36  ;;  %v4561_v57 = vadd.f32 1e-05, %v4545_v55  ;;  %v4556_v20 = vmul.f32 0.0078125, %v4539_v50 }
 0xa83   : > { %v4541_v11 = vpop.xlane.xlu1 %4540 }
 0xa84   : > { %v6026_v17 = vpop.eup %6025  ;;  %6031 = vrsqrt.f32 %v4561_v57  ;;  %v4572_v49 = vadd.f32 1e-05, %v4556_v20  ;;  %v4557_v16 = vmul.f32 0.0078125, %v4541_v11 }
 0xa85   : > { %v4590_v0 = vmul.f32 %v6026_v17, %v8456_v35 }
 0xa86   : > { %v6028_v21 = vpop.eup %6027  ;;  %6033 = vrsqrt.f32 %v4572_v49  ;;  %v4573_v32 = vadd.f32 1e-05, %v4557_v16 }
 0xa87   : > { %v4612_v5 = vmul.f32 %v8489_v51, %v4590_v0  ;;  %v4591_v43 = vmul.f32 %v6028_v21, %v8459_v40 }
 0xa88   : > { %6035 = vrsqrt.f32 %v4573_v32 }
 0xa89   : > { %v4634_v60 = vadd.f32 %v8497_v29, %v4612_v5  ;;  %v4613_v30 = vmul.f32 %v8489_v51, %v4591_v43 }
 0xa8b   : > { %4650 = vst [vmem:[%s8503_s19] sm:$0xff] %v4634_v60  ;;  %v4635_v41 = vadd.f32 %v8497_v29, %v4613_v30 }
 0xa8c   : > { %v6030_v33 = vpop.eup %6029 }
 0xa8d   : > { %4651 = vst [vmem:[%s8503_s19 + $0x8] sm:$0xff] %v4635_v41  ;;  %v4592_v35 = vmul.f32 %v6030_v33, %v8466_v26 }
 0xa8e   : > { %v6032_v24 = vpop.eup %6031 }
 0xa8f   : > { %v4614_v56 = vmul.f32 %v8489_v51, %v4592_v35  ;;  %v4593_v40 = vmul.f32 %v6032_v24, %v8469_v38 }
 0xa90   : > { %v6034_v8 = vpop.eup %6033 }
 0xa91   : > { %v4636_v12 = vadd.f32 %v8497_v29, %v4614_v56  ;;  %v4615_v45 = vmul.f32 %v8489_v51, %v4593_v40  ;;  %v4604_v10 = vmul.f32 %v6034_v8, %v8474_v46 }
 0xa92   : > { %v6036_v13 = vpop.eup %6035 }
 0xa93   : > { %4652 = vst [vmem:[%s8503_s19 + $0x10] sm:$0xff] %v4636_v12  ;;  %v4637_v9 = vadd.f32 %v8497_v29, %v4615_v45  ;;  %v4626_v26 = vmul.f32 %v8489_v51, %v4604_v10  ;;  %v4605_v6 = vmul.f32 %v6036_v13, %v8479_v19 }
 0xa95   : > { %4653 = vst [vmem:[%s8503_s19 + $0x18] sm:$0xff] %v4637_v9  ;;  %v4648_v38 = vadd.f32 %v8497_v29, %v4626_v26  ;;  %v4627_v47 = vmul.f32 %v8489_v51, %v4605_v6 }
 0xa97   : > { %4664 = vst [vmem:[%s8503_s19 + $0x70] sm:$0xff] %v4648_v38  ;;  %v4649_v46 = vadd.f32 %v8497_v29, %v4627_v47 }
 0xa99   : > { %4665 = vst [vmem:[%s8503_s19 + $0x78] sm:$0xff] %v4649_v46 }
 0xa9a   : > { %6066 = shalt.err (!%p6063_p5)
}
 0xa9b   : > { %s6067_s25 = scalar_lea.hbm %s8566_s20, 2048  ;;  %s6071_s27 = scalar_lea.hbm %s8822_s26, 4096 }
 0xa9c   : > { %p6068_p6 = scmp.ne.s32.totalorder %s8566_s20, %s6067_s25  ;;  %p6072_p10 = scmp.lt.u32.totalorder %s8566_s20, %s8822_s26 }
 0xa9d   : > { %p6073_p11 = scmp.lt.u32.totalorder %s6071_s27, %s6067_s25  ;;  %p6075_p13 = scmp.lt.u32.totalorder %s6067_s25, %s8566_s20 }
 0xa9e   : > { %p6069_p7 = pnand %p6068_p6, %p6278_p4 }
 0xa9f   : > { %p6074_p12 = por %p6073_p11, %p6072_p10 }
 0xaa0   : > { %p6070_p9 = pneg %p6069_p7 }
 0xaa1   : > { %p6076_p0 = por %p6075_p13, %p6074_p12 }
 0xaa3   : > { %p6077_p1 = pnand %p6076_p0, %p6070_p9 }
 0xaa5   : > { %6080 = shalt.err (!%p6077_p1)
}
 0xaa6   : > { %s6136_s2 = smov 128   ;;  %s6137_s22 = smov 8  }
 0xaa7   : > { %5546 = dma.vmem_to_hbm [thread:$0]  (%p6278_p4), %s8568_s3, 2048, %s8566_s20, %s8575_s21, %s6136_s2, %s6136_s2, %s6137_s22  }
 0xaa8 PF: > { %s8823_s28 = sld [smem:[#allocation11_spill]]  ;;  %s8824_s19 = sld [smem:[#allocation8_spill]] }
 0xaae   : > { %p5552_p2 = scmp.ge.s32.totalorder %s8823_s28, 2  ;;  %s4697_s1 = sand.u32 1, %s8824_s19  }
 0xaaf   : > { %s4698_s25 = scalar_lea.sflag [#allocation6], %s4697_s1 }
 0xab0   : > { %p5549_p3 = pnand %p5552_p2, %p6285_p8 }
 0xab2   : > { %6106 = dma.done.wait (!%p5549_p3), %s4698_s25, 2048  }
 0xab3   : > { %6108 = vsyncadd (!%p5549_p3), %s4698_s25, 4294965248  ;;  %s32_s22 = sadd.s32 1, %s8823_s28   ;;  %s8826_s27 = sld [smem:[#allocation9_spill]] }
 0xab4   : > { %p29_p5 = scmp.ge.s32.totalorder %s32_s22, 4   ;;  %s8827_s20 = sld [smem:[#allocation15_spill]] }
 0xab5   : > { %s8828_s21 = sld [smem:[#allocation10_spill]]  ;;  %s8829_s1 = sld [smem:[#allocation12_spill]] }
 0xab6   : > { %s8830_s0 = smov %s6115_s30  ;;  %31 = sbr.rel (!%p29_p5) target bundleno = 10 (0xa), region = 141 }
 0xab9   : > { %s8831_s30 = smov %s8826_s27 }
 0xabd   :  { %4703 = vsyncpa [#allocation6], 1 }
 0xabe   :  { %4705 = vsyncpa [#allocation6 + $0x1], 1 }

</bundles_post_ra>
